<compile_context>
chip_gen: v7x
topology: tpu7x:2x2x1
jax: 0.10.0
libtpu: 0.0.40
codegen_flags: <defaults>
</compile_context>

<pallas_src>
import functools

import jax
import jax.numpy as jnp
from jax import lax
from jax.experimental import pallas as pl
from jax.experimental.pallas import tpu as pltpu


def _round_up(x, m):
    return (x + m - 1) // m * m


# ---------------------------------------------------------------------------
# Kernels
# ---------------------------------------------------------------------------

def _node_embed_dia_kernel(io_ref, tab_ref, out_ref, acc_ref, *,
                           node_dim, dia_dim):
    """Fused synchronic + diachronic embedding with a vocab-tiled MXU gather.

    Grid: (node_blocks, vocab_blocks); axis 1 is the reduction ("arbitrary").

    io_ref  : (bn, 2)   f32  col 0 = node index (integer-valued float),
                             col 1 = time value.
    tab_ref : (bv, 4*od) f32 one vocab tile of the fused table; lane layout is
                             [ syn | dia | w | b ], each segment od lanes wide,
                             dia/w/b occupying lanes [dia_dim, node_dim).
    out_ref : (bn, od)  f32  lane-dense output block.
    acc_ref : (bn, 4*od) f32 VMEM scratch accumulating the gathered rows.
    """
    k = pl.program_id(1)

    @pl.when(k == 0)
    def _():
        acc_ref[...] = jnp.zeros_like(acc_ref)

    bn = io_ref.shape[0]
    bv = tab_ref.shape[0]
    # One-hot row selector for this vocab tile -> single MXU matmul gather.
    # NOTE: indices outside [0, vocab) never match and yield an all-zero row
    # (unlike torch.nn.Embedding, which raises).
    idx = io_ref[:, 0:1].astype(jnp.int32)                         # (bn, 1)
    row_ids = k * bv + lax.broadcasted_iota(jnp.int32, (bn, bv), 1)
    onehot = (idx == row_ids).astype(jnp.float32)                  # (bn, bv)
    acc_ref[...] += jnp.dot(onehot, tab_ref[...],
                            preferred_element_type=jnp.float32)

    @pl.when(k == pl.num_programs(1) - 1)
    def _():
        od = out_ref.shape[1]
        rows = acc_ref[...]
        syn = rows[:, 0 * od:1 * od]
        dia = rows[:, 1 * od:2 * od]
        w = rows[:, 2 * od:3 * od]
        b = rows[:, 3 * od:4 * od]
        t = io_ref[:, 1:2]                                         # (bn, 1)
        # Confine the diachronic update to lanes [dia_dim, node_dim); this is
        # also NaN-safe for non-finite t in the zero-padded lanes.
        lane = lax.broadcasted_iota(jnp.int32, (1, od), 1)
        in_band = jnp.logical_and(lane >= dia_dim, lane < node_dim)
        delta = jnp.where(in_band, dia * jnp.sin(w * t + b), 0.0)
        out_ref[...] = (syn + delta).astype(out_ref.dtype)


def _node_embed_syn_kernel(io_ref, tab_ref, out_ref):
    """Pure synchronic lookup (diachronic=False): accumulate straight into the
    resident output block across the vocab-tile axis."""
    k = pl.program_id(1)

    @pl.when(k == 0)
    def _():
        out_ref[...] = jnp.zeros_like(out_ref)

    bn = io_ref.shape[0]
    bv = tab_ref.shape[0]
    idx = io_ref[:, 0:1].astype(jnp.int32)
    row_ids = k * bv + lax.broadcasted_iota(jnp.int32, (bn, bv), 1)
    onehot = (idx == row_ids).astype(jnp.float32)
    out_ref[...] += jnp.dot(onehot, tab_ref[...],
                            preferred_element_type=jnp.float32)


# ---------------------------------------------------------------------------
# Wrapper
# ---------------------------------------------------------------------------

def prepare_node_embedding_params(syn_tab, dia_tab, w_tab, b_tab, *,
                                  vocab_block=1024):
    """Build the fused, lane-aligned, vocab-padded table ONCE (hoisted out of
    the per-call path: it reads/writes the entire O(V*4*od) table in HBM)."""
    vocab, node_dim = syn_tab.shape
    dia_dim = dia_tab.shape[1]
    if node_dim != 2 * dia_dim:
        raise ValueError("forward() requires node_dim == 2*dia_dim "
                         "(gamma == 0.5), as the PyTorch slice-add implies")

    od = _round_up(node_dim, 128)                     # lane-dense segment width
    bv = max(8, min(_round_up(vocab, 8), _round_up(vocab_block, 8)))
    vp = _round_up(vocab, bv)                         # vocab padded to tile

    def seg(tab, lane_lo):
        out = jnp.zeros((vp, od), jnp.float32)
        return out.at[:vocab, lane_lo:lane_lo + tab.shape[1]].set(
            tab.astype(jnp.float32))

    fused = jnp.concatenate(
        [seg(syn_tab, 0), seg(dia_tab, dia_dim),
         seg(w_tab, dia_dim), seg(b_tab, dia_dim)], axis=1)        # (vp, 4*od)

    return dict(fused_table=fused, vocab=vocab, node_dim=node_dim,
                dia_dim=dia_dim, out_dim=od, vocab_block=bv)


def node_embedding_forward(params, indices, time_indices=None, *,
                           diachronic=False, block_nodes=512):
    """Forward pass of NodeEmbedding.

    indices      : (num_nodes,) int
    time_indices : (num_nodes,) float (required iff diachronic=True)
    returns      : (num_nodes, node_dim) float32
    """
    fused = params["fused_table"]
    node_dim = params["node_dim"]
    dia_dim = params["dia_dim"]
    od = params["out_dim"]
    bv = params["vocab_block"]
    vp, fused_cols = fused.shape

    n = int(indices.shape[0])
    # Node-block size: multiple of 128 (fills MXU rows on all generations),
    # default 512 to amortize per-grid-step overhead, clamped for tiny inputs.
    bn = min(_round_up(block_nodes, 128), _round_up(max(n, 1), 128))
    padded_n = _round_up(n, bn)

    # Single (padded_n, 2) f32 input: col 0 = index (exact for vocab < 2^24),
    # col 1 = time.  One small DMA per step instead of two.
    io = jnp.zeros((padded_n, 2), jnp.float32)
    io = io.at[:n, 0].set(jnp.asarray(indices, jnp.int32).astype(jnp.float32))
    if diachronic:
        if time_indices is None:
            raise ValueError("time_indices is required when diachronic=True")
        io = io.at[:n, 1].set(jnp.asarray(time_indices, jnp.float32))

    grid = (padded_n // bn, vp // bv)

    if diachronic:
        kernel = functools.partial(_node_embed_dia_kernel,
                                   node_dim=node_dim, dia_dim=dia_dim)
        tab_cols = fused_cols                          # syn | dia | w | b
        scratch_shapes = [pltpu.VMEM((bn, fused_cols), jnp.float32)]
    else:
        kernel = _node_embed_syn_kernel
        tab_cols = od                                  # only the syn segment is DMA'd
        scratch_shapes = []

    in_specs = [
        pl.BlockSpec((bn, 2), lambda i, k: (i, 0)),            # idx+t block
        pl.BlockSpec((bv, tab_cols), lambda i, k: (k, 0)),     # vocab tile
    ]
    out_spec = pl.BlockSpec((bn, od), lambda i, k: (i, 0))     # lane-dense

    # Generation-aware VMEM budget with headroom (narrow probe; does not mask
    # kernel errors).  ~48 MiB on v7x (64 MiB/TC), ~96 MiB on v5e/v6e.
    try:
        vmem_cap = int(pltpu.get_tpu_info().vmem_capacity_bytes)
    except Exception:
        vmem_cap = 64 << 20
    foot = (2 * bv * tab_cols * 4                 # double-buffered table tiles
            + 2 * bn * 128 * 4                    # io blocks (lane-padded)
            + 2 * bn * od * 4                     # out blocks
            + (bn * fused_cols * 4 if diachronic else 0)   # acc scratch
            + bn * bv * 4)                        # in-flight one-hot operand
    vmem_limit = min(int(vmem_cap * 3 // 4),
                     max(32 << 20, 2 * foot + (8 << 20)))

    out = pl.pallas_call(
        kernel,
        out_shape=jax.ShapeDtypeStruct((padded_n, od), jnp.float32),
        grid_spec=pltpu.PrefetchScalarGridSpec(
            num_scalar_prefetch=0,
            grid=grid,
            in_specs=in_specs,
            out_specs=out_spec,
            scratch_shapes=scratch_shapes),
        compiler_params=pltpu.CompilerParams(
            dimension_semantics=("parallel", "arbitrary"),
            vmem_limit_bytes=vmem_limit),
    )(io, fused)

    return out[:n, :node_dim]


# ---------------------------------------------------------------------------
# Reference + test
# ---------------------------------------------------------------------------

def _reference_forward(indices, time_indices, syn, dia, w, b, diachronic=False):
    out = syn[indices]
    if diachronic:
        dia_dim = dia.shape[1]
        delta = dia[indices] * jnp.sin(w[indices] * time_indices[:, None]
                                       + b[indices])
        out = out.at[:, dia_dim:].add(delta)
    return out


if __name__ == "__main__":
    # Synthetic config: len(entity_vocab)=64, node_dim=32, gamma=0.5 -> dia_dim=16.
    vocab = 64
    node_dim = 32
    gamma = 0.5
    dia_dim = int(node_dim * gamma)
    num_nodes = 16

    key = jax.random.PRNGKey(0)
    k_syn, k_dia, k_w, k_b, k_idx, k_t = jax.random.split(key, 6)

    def make_table(k, dim):
        tab = 0.1 * jax.random.normal(k, (vocab, dim), dtype=jnp.float32)
        return tab.at[0].set(0.0)  # padding_idx=0

    syn_tab = make_table(k_syn, node_dim)
    dia_tab = make_table(k_dia, dia_dim)
    w_tab = make_table(k_w, dia_dim)
    b_tab = make_table(k_b, dia_dim)

    indices = jax.random.randint(k_idx, (num_nodes,), 0, vocab, dtype=jnp.int32)
    time_indices = jax.random.uniform(k_t, (num_nodes,), dtype=jnp.float32) * 10.0

    # Fused table built once (hoisted out of the per-call path).
    params = prepare_node_embedding_params(syn_tab, dia_tab, w_tab, b_tab)

    # Diachronic path.
    out = jax.block_until_ready(node_embedding_forward(
        params, indices, time_indices, diachronic=True))
    ref = _reference_forward(indices, time_indices, syn_tab, dia_tab, w_tab,
                             b_tab, diachronic=True)
    assert out.shape == (num_nodes, node_dim)
    assert jnp.allclose(out, ref, rtol=1e-4, atol=1e-4), "diachronic mismatch"

    # Non-diachronic path (only the synchronic table segment is DMA'd).
    out_syn = jax.block_until_ready(node_embedding_forward(
        params, indices, diachronic=False))
    assert jnp.allclose(out_syn, syn_tab[indices], rtol=1e-5, atol=1e-5), \
        "synchronic mismatch"

    print("KERNEL_OK")
</pallas_src>

<mosaic_0001>
module attributes {stable_mosaic.version = 11 : i64} {
  func.func @_node_embed_dia_kernel(%arg0: i32, %arg1: i32, %arg2: memref<128x2xf32, #tpu.memory_space<vmem>>, %arg3: memref<64x512xf32, #tpu.memory_space<vmem>>, %arg4: memref<128x128xf32, #tpu.memory_space<vmem>>, %arg5: memref<128x512xf32, #tpu.memory_space<vmem>>) attributes {dimension_semantics = [#tpu.dimension_semantics<parallel>, #tpu.dimension_semantics<arbitrary>], iteration_bounds = array<i64: 1, 1>, scalar_prefetch = 0 : i64, scratch_operands = 1 : i64, tpu.core_type = #tpu.core_type<tc>, window_params = [{transform_indices = @transform_0, window_bounds = array<i64: 128, 2>}, {transform_indices = @transform_1, window_bounds = array<i64: 64, 512>}, {transform_indices = @transform_2, window_bounds = array<i64: 128, 128>}]} {
    %c0_i32 = arith.constant 0 : i32
    %0 = arith.cmpi eq, %arg1, %c0_i32 : i32
    %1 = arith.extui %0 : i1 to i32
    %c0_i32_0 = arith.constant 0 : i32
    %2 = arith.cmpi ne, %1, %c0_i32_0 : i32
    scf.if %2 {
      %cst_10 = arith.constant 0.000000e+00 : f32
      %21 = vector.broadcast %cst_10 : f32 to vector<128x512xf32>
      %c0_11 = arith.constant 0 : index
      %c0_12 = arith.constant 0 : index
      %22 = vector.load %arg5[%c0_11, %c0_12] : memref<128x512xf32, #tpu.memory_space<vmem>>, vector<128x512xf32>
      tpu.vector_store %arg5[%c0_11, %c0_12], %21 {strides = array<i32>} : memref<128x512xf32, #tpu.memory_space<vmem>>, vector<128x512xf32>,
    } else {
    }
    %c0 = arith.constant 0 : index
    %c0_1 = arith.constant 0 : index
    %3 = vector.load %arg2[%c0, %c0_1] : memref<128x2xf32, #tpu.memory_space<vmem>>, vector<128x1xf32>
    %4 = arith.fptosi %3 : vector<128x1xf32> to vector<128x1xi32>
    %c64_i32 = arith.constant 64 : i32
    %5 = arith.muli %arg1, %c64_i32 : i32
    %6 = tpu.iota {dimensions = array<i32: 1>} : vector<128x64xi32>
    %7 = vector.broadcast %5 : i32 to vector<128x64xi32>
    %8 = arith.addi %7, %6 : vector<128x64xi32>
    %9 = vector.broadcast %4 : vector<128x1xi32> to vector<128x64xi32>
    %10 = arith.cmpi eq, %9, %8 : vector<128x64xi32>
    %11 = arith.extui %10 : vector<128x64xi1> to vector<128x64xi32>
    %12 = arith.sitofp %11 : vector<128x64xi32> to vector<128x64xf32>
    %c0_2 = arith.constant 0 : index
    %c0_3 = arith.constant 0 : index
    %13 = vector.load %arg5[%c0_2, %c0_3] : memref<128x512xf32, #tpu.memory_space<vmem>>, vector<128x512xf32>
    %c0_4 = arith.constant 0 : index
    %c0_5 = arith.constant 0 : index
    %14 = vector.load %arg3[%c0_4, %c0_5] : memref<64x512xf32, #tpu.memory_space<vmem>>, vector<64x512xf32>
    %cst = arith.constant dense<0.000000e+00> : vector<128x512xf32>
    %15 = tpu.matmul %12, %14, %cst {dimension_numbers = #tpu.dot_dimension_numbers<[1], [0], [0], [1], [0, 0, 1, 1], [], []>} : vector<128x64xf32>, vector<64x512xf32>, vector<128x512xf32> -> vector<128x512xf32>
    %16 = arith.addf %13, %15 : vector<128x512xf32>
    %c0_6 = arith.constant 0 : index
    %c0_7 = arith.constant 0 : index
    %17 = vector.load %arg5[%c0_6, %c0_7] : memref<128x512xf32, #tpu.memory_space<vmem>>, vector<128x512xf32>
    tpu.vector_store %arg5[%c0_6, %c0_7], %16 {strides = array<i32>} : memref<128x512xf32, #tpu.memory_space<vmem>>, vector<128x512xf32>,
    %c0_i32_8 = arith.constant 0 : i32
    %18 = arith.cmpi eq, %arg1, %c0_i32_8 : i32
    %19 = arith.extui %18 : i1 to i32
    %c0_i32_9 = arith.constant 0 : i32
    %20 = arith.cmpi ne, %19, %c0_i32_9 : i32
    scf.if %20 {
      %c0_10 = arith.constant 0 : index
      %c0_11 = arith.constant 0 : index
      %21 = vector.load %arg5[%c0_10, %c0_11] : memref<128x512xf32, #tpu.memory_space<vmem>>, vector<128x512xf32>
      %22 = vector.extract_strided_slice %21 {offsets = [0, 0], sizes = [128, 128], strides = [1, 1]} : vector<128x512xf32> to vector<128x128xf32>
      %23 = vector.extract_strided_slice %21 {offsets = [0, 128], sizes = [128, 128], strides = [1, 1]} : vector<128x512xf32> to vector<128x128xf32>
      %24 = vector.extract_strided_slice %21 {offsets = [0, 256], sizes = [128, 128], strides = [1, 1]} : vector<128x512xf32> to vector<128x128xf32>
      %25 = vector.extract_strided_slice %21 {offsets = [0, 384], sizes = [128, 128], strides = [1, 1]} : vector<128x512xf32> to vector<128x128xf32>
      %c0_12 = arith.constant 0 : index
      %c1 = arith.constant 1 : index
      %26 = vector.load %arg2[%c0_12, %c1] : memref<128x2xf32, #tpu.memory_space<vmem>>, vector<128x1xf32>
      %27 = tpu.iota {dimensions = array<i32: 1>} : vector<1x128xi32>
      %c16_i32 = arith.constant 16 : i32
      %28 = vector.broadcast %c16_i32 : i32 to vector<1x128xi32>
      %29 = arith.cmpi sge, %27, %28 : vector<1x128xi32>
      %c32_i32 = arith.constant 32 : i32
      %30 = vector.broadcast %c32_i32 : i32 to vector<1x128xi32>
      %31 = arith.cmpi slt, %27, %30 : vector<1x128xi32>
      %32 = arith.andi %29, %31 : vector<1x128xi1>
      %33 = vector.broadcast %26 : vector<128x1xf32> to vector<128x128xf32>
      %34 = arith.mulf %24, %33 : vector<128x128xf32>
      %35 = arith.addf %34, %25 : vector<128x128xf32>
      %36 = math.sin %35 : vector<128x128xf32>
      %37 = arith.mulf %23, %36 : vector<128x128xf32>
      %cst_13 = arith.constant 0.000000e+00 : f32
      %38 = vector.shape_cast %32 : vector<1x128xi1> to vector<1x128xi1>
      %39 = vector.broadcast %38 : vector<1x128xi1> to vector<128x128xi1>
      %40 = vector.broadcast %cst_13 : f32 to vector<128x128xf32>
      %41 = arith.select %39, %37, %40 : vector<128x128xi1>, vector<128x128xf32>
      %42 = arith.addf %22, %41 : vector<128x128xf32>
      %c0_14 = arith.constant 0 : index
      %c0_15 = arith.constant 0 : index
      %43 = vector.load %arg4[%c0_14, %c0_15] : memref<128x128xf32, #tpu.memory_space<vmem>>, vector<128x128xf32>
      tpu.vector_store %arg4[%c0_14, %c0_15], %42 {strides = array<i32>} : memref<128x128xf32, #tpu.memory_space<vmem>>, vector<128x128xf32>,
    } else {
    }
    return
  }
  func.func @transform_0(%arg0: i32, %arg1: i32) -> (i32, i32) {
    %c0_i32 = arith.constant 0 : i32
    %c0_i32_0 = arith.constant 0 : i32
    return %arg0, %c0_i32 : i32, i32
  }
  func.func @transform_1(%arg0: i32, %arg1: i32) -> (i32, i32) {
    %c0_i32 = arith.constant 0 : i32
    %c0_i32_0 = arith.constant 0 : i32
    return %arg1, %c0_i32 : i32, i32
  }
  func.func @transform_2(%arg0: i32, %arg1: i32) -> (i32, i32) {
    %c0_i32 = arith.constant 0 : i32
    %c0_i32_0 = arith.constant 0 : i32
    return %arg0, %c0_i32 : i32, i32
  }
}

</mosaic_0001>

<bundles_post_ra>
// kernel: tpu_custom_call.1
= control target key start
LH: loop header
LB: loop body
LE: loop exit
PB: predicated region body
PF: predicated region fallthrough
CT: control target
= control target key end

     0   :  { %7 = vsyncpa [#allocation4], 0  ;;  %s4833_s0 = inlined_call_operand.vmem [shape: f32[128,2], index: 0, kind: input, shape index: {}]   ;;  %s4834_s1 = inlined_call_operand.hbm [shape: f32[64,512], index: 1, kind: input, shape index: {}]   ;;  %s4835_s2 = inlined_call_operand.hbm [shape: f32[128,128], index: 2, kind: output, shape index: {}]  }
   0x1   :  { %8 = vsyncpa [#allocation5], 0  ;;  %s3138_s9 = smov [#allocation3]   ;;  %s3090_s13 = scalar_lea.hbm %s4834_s1, 4096 }
   0x2   :  { %s16_s10 = sshll.u32 %s3138_s9, 4  ;;  %p3091_p0 = scmp.ne.s32.totalorder %s4834_s1, %s3090_s13  ;;  %s17_s10 = int_to_ptr.vmem [resolvable:$true] %s16_s10 }
   0x3   :  { %p3094_p1 = scmp.lt.u32.totalorder %s3090_s13, %s4834_s1 }
   0x5   :  { %p3096_p2 = pnand %p3094_p1, %p3091_p0 }
   0x7   :  { %3099 = shalt.err (!%p3096_p2)
}
   0x8   :  { %s3100_s18 = scalar_lea.vmem %s17_s10, 4096  ;;  %p3105_p4 = scmp.lt.s32.totalorder %s17_s10, %s17_s10 }
   0x9   :  { %p3101_p3 = scmp.ne.s32.totalorder %s17_s10, %s3100_s18  ;;  %p3106_p5 = scmp.lt.s32.totalorder %s3100_s18, %s3100_s18 }
   0xb   :  { %p3107_p6 = por %p3106_p5, %p3105_p4 }
   0xd   :  { %p3108_p7 = pnand %p3107_p6, %p3101_p3 }
   0xf   :  { %3111 = shalt.err (!%p3108_p7)
}
  0x10   :  { %s3139_s19 = smov 512   ;;  %s3140_s20 = smov 32  }
  0x11   :  { %22 = dma.hbm_to_vmem [thread:$0]  %s4834_s1, 4096, %s17_s10, [#allocation4], %s3139_s19, %s3139_s19, %s3140_s20  }
  0x12   :  { %3134 = dma.done.wait [#allocation4], 4096  }
  0x13   :  { %3135 = vsyncadd [#allocation4], 4294963200  ;;  %v3141_v0 = vmov 0   ;;  %v3142_v1 = vmov 0.0   ;;  %v3185_v2 = vld [vmem:[%s4833_s0 + $0x10] sm:$0xff]  ;;  %v3190_v3 = vld [vmem:[%s4833_s0] sm:$0xff] }
  0x14   :  { %3023 = vset.pattern.permute.xlu1 %v3141_v0  ;;  %3022 = vset.pattern.permute.xlu0 %v3141_v0  ;;  %v3195_v4 = vld [vmem:[%s4833_s0 + $0x18] sm:$0xff]  ;;  %v2915_v5 = vtrunc.f32 %v3185_v2  ;;  %v2911_v6 = vtrunc.f32 %v3190_v3  ;;  %v3203_v8 = vld [vmem:[%s4833_s0 + $0x8] sm:$0xff]  ;;  %v3213_v10 = vld [vmem:[%s4833_s0 + $0x20] sm:$0xff]  ;;  %vm323_vm0 = vcmask 523264  }
  0x15   :  { %436 = vmatprep.mubr.f32.mxu0 %v3142_v1  ;;  %597 = vmatprep.mubr.f32.mxu1 %v3142_v1  ;;  %v2917_v7 = vtrunc.f32 %v3195_v4  ;;  %v3208_v9 = vld [vmem:[%s4833_s0 + $0x28] sm:$0xff]  ;;  %v2913_v11 = vtrunc.f32 %v3203_v8  ;;  %v2919_v15 = vtrunc.f32 %v3213_v10  ;;  %v3221_v16 = vld [vmem:[%s4833_s0 + $0x38] sm:$0xff]  ;;  %v3226_v19 = vld [vmem:[%s4833_s0 + $0x30] sm:$0xff] }
  0x16   :  { %v2916_v12 = vcvt.f32.s32 %v2915_v5  ;;  %v2912_v13 = vcvt.f32.s32 %v2911_v6  ;;  %v2921_v14 = vtrunc.f32 %v3208_v9  ;;  %v292_v20 = vld [vmem:[#allocation3 + $0x8] sm:$0xff]  ;;  %v294_v22 = vld [vmem:[#allocation3 + $0x18] sm:$0xff]  ;;  %v291_v24 = vld [vmem:[#allocation3] sm:$0xff]  ;;  %v2925_v30 = vtrunc.f32 %v3221_v16 }
  0x17   :  { %v2918_v17 = vcvt.f32.s32 %v2917_v7  ;;  %v2914_v18 = vcvt.f32.s32 %v2913_v11  ;;  %v296_v21 = vld [vmem:[#allocation3 + $0x28] sm:$0xff]  ;;  %v298_v23 = vld [vmem:[#allocation3 + $0x38] sm:$0xff]  ;;  %v295_v25 = vld [vmem:[#allocation3 + $0x20] sm:$0xff]  ;;  %v2920_v29 = vcvt.f32.s32 %v2919_v15  ;;  %v2923_v36 = vtrunc.f32 %v3226_v19 }
  0x18   :  { %138 = vperm.xlu1 %3023, %v2916_v12   ;;  %132 = vperm.xlu0 %3022, %v2912_v13   ;;  %v293_v26 = vld [vmem:[#allocation3 + $0x10] sm:$0xff]  ;;  %v2922_v28 = vcvt.f32.s32 %v2921_v14  ;;  %v3232_v31 = vld [vmem:[%s4833_s0 + $0x48] sm:$0xff]  ;;  %v3237_v32 = vld [vmem:[%s4833_s0 + $0x40] sm:$0xff]  ;;  %v2879_v37 = vpack.c.bf16 %v296_v21, %v292_v20  ;;  %v2895_v38 = vpack.c.bf16 %v298_v23, %v294_v22  ;;  %v2881_v39 = vpack.c.bf16 %v295_v25, %v291_v24 }
  0x19   :  { %v297_v27 = vld [vmem:[#allocation3 + $0x30] sm:$0xff]  ;;  %v300_v33 = vld [vmem:[#allocation3 + $0x48] sm:$0xff]  ;;  %v302_v35 = vld [vmem:[#allocation3 + $0x58] sm:$0xff]  ;;  %v2926_v55 = vcvt.f32.s32 %v2925_v30  ;;  %v2924_v56 = vcvt.f32.s32 %v2923_v36  ;;  %v2929_v57 = vtrunc.f32 %v3232_v31  ;;  %v2927_v58 = vtrunc.f32 %v3237_v32 }
  0x1a   :  { %v304_v34 = vld [vmem:[#allocation3 + $0x68] sm:$0xff]  ;;  %v306_v40 = vld [vmem:[#allocation3 + $0x78] sm:$0xff]  ;;  %v299_v41 = vld [vmem:[#allocation3 + $0x40] sm:$0xff]  ;;  %v2897_v43 = vpack.c.bf16 %v297_v27, %v293_v26  ;;  %2880 = vmatprep.subr.bf16.mxu0 %v2879_v37  ;;  %2896 = vmatprep.subr.bf16.mxu1 %v2895_v38 }
  0x1b   :  { %v303_v42 = vld [vmem:[#allocation3 + $0x60] sm:$0xff]  ;;  %v2883_v44 = vpack.c.bf16 %v304_v34, %v300_v33  ;;  %v2899_v45 = vpack.c.bf16 %v306_v40, %v302_v35  ;;  %v301_v46 = vld [vmem:[#allocation3 + $0x50] sm:$0xff]  ;;  %v308_v48 = vld [vmem:[#allocation3 + $0x88] sm:$0xff]  ;;  %2882 = vmatpush1.bf16.msra.mxu0 %v2881_v39 }
  0x1c   :  { %141 = vperm.xlu1 %3023, %v2918_v17   ;;  %135 = vperm.xlu0 %3022, %v2914_v18   ;;  %v305_v47 = vld [vmem:[#allocation3 + $0x70] sm:$0xff]  ;;  %v312_v49 = vld [vmem:[#allocation3 + $0xa8] sm:$0xff]  ;;  %v310_v50 = vld [vmem:[#allocation3 + $0x98] sm:$0xff]  ;;  %v2885_v52 = vpack.c.bf16 %v303_v42, %v299_v41  ;;  %v2930_v17 = vcvt.f32.s32 %v2929_v57  ;;  %v2928_v18 = vcvt.f32.s32 %v2927_v58 }
  0x1d   :  { %v314_v51 = vld [vmem:[#allocation3 + $0xb8] sm:$0xff]  ;;  %2898 = vmatpush1.bf16.msra.mxu1 %v2897_v43  ;;  %v2901_v53 = vpack.c.bf16 %v305_v47, %v301_v46  ;;  %v307_v54 = vld [vmem:[#allocation3 + $0x80] sm:$0xff]  ;;  %v309_v60 = vld [vmem:[#allocation3 + $0x90] sm:$0xff]  ;;  %2884 = vmatprep.subr.bf16.mxu0 %v2883_v44  ;;  %v2887_v0 = vpack.c.bf16 %v312_v49, %v308_v48 }
  0x1e   :  { %v311_v59 = vld [vmem:[#allocation3 + $0xa0] sm:$0xff]  ;;  %v313_v61 = vld [vmem:[#allocation3 + $0xb0] sm:$0xff]  ;;  %v3245_v62 = vld [vmem:[%s4833_s0 + $0x58] sm:$0xff]  ;;  %2900 = vmatprep.subr.bf16.mxu1 %v2899_v45  ;;  %v2903_v5 = vpack.c.bf16 %v314_v51, %v310_v50  ;;  %v3143_v45 = vmov 1  }
  0x1f   :  { %v3250_v63 = vld [vmem:[%s4833_s0 + $0x50] sm:$0xff]  ;;  %v316_v6 = vld [vmem:[#allocation3 + $0xc8] sm:$0xff]  ;;  %v318_v11 = vld [vmem:[#allocation3 + $0xd8] sm:$0xff]  ;;  %2886 = vmatpush1.bf16.msra.mxu0 %v2885_v52  ;;  %v2889_v13 = vpack.c.bf16 %v311_v59, %v307_v54  ;;  %v2905_v14 = vpack.c.bf16 %v313_v61, %v309_v60  ;;  %v2933_v20 = vtrunc.f32 %v3245_v62 }
  0x20   :  { %147 = vperm.xlu1 %3023, %v2922_v28   ;;  %144 = vperm.xlu0 %3022, %v2920_v29   ;;  %v320_v7 = vld [vmem:[#allocation3 + $0xe8] sm:$0xff]  ;;  %v322_v12 = vld [vmem:[#allocation3 + $0xf8] sm:$0xff]  ;;  %v315_v15 = vld [vmem:[#allocation3 + $0xc0] sm:$0xff]  ;;  %v2931_v21 = vtrunc.f32 %v3250_v63 }
  0x21   :  { %2902 = vmatpush1.bf16.msra.mxu1 %v2901_v53  ;;  %v319_v22 = vld [vmem:[#allocation3 + $0xe0] sm:$0xff]  ;;  %v317_v23 = vld [vmem:[#allocation3 + $0xd0] sm:$0xff]  ;;  %v107_v25 = vld [vmem:[%s4833_s0 + $0x68] sm:$0xff]  ;;  %2888 = vmatprep.subr.bf16.mxu0 %v2887_v0  ;;  %v2891_v27 = vpack.c.bf16 %v320_v7, %v316_v6  ;;  %v2907_v28 = vpack.c.bf16 %v322_v12, %v318_v11  ;;  %v2934_v33 = vcvt.f32.s32 %v2933_v20 }
  0x22   :  { %v321_v24 = vld [vmem:[#allocation3 + $0xf0] sm:$0xff]  ;;  %v106_v26 = vld [vmem:[%s4833_s0 + $0x60] sm:$0xff]  ;;  %2904 = vmatprep.subr.bf16.mxu1 %v2903_v5  ;;  %v2893_v29 = vpack.c.bf16 %v319_v22, %v315_v15  ;;  %v2932_v34 = vcvt.f32.s32 %v2931_v21  ;;  %v2937_v35 = vtrunc.f32 %v107_v25  ;;  %v109_v37 = vld [vmem:[%s4833_s0 + $0x78] sm:$0xff] }
  0x23   :  { %2890 = vmatpush1.bf16.msra.mxu0 %v2889_v13  ;;  %v2909_v30 = vpack.c.bf16 %v321_v24, %v317_v23  ;;  %v2935_v36 = vtrunc.f32 %v106_v26  ;;  %v108_v38 = vld [vmem:[%s4833_s0 + $0x70] sm:$0xff]  ;;  %v2941_v41 = vtrunc.f32 %v109_v37  ;;  %s3150_s0 = smov [#allocation6]  }
  0x24   :  { %153 = vperm.xlu1 %3023, %v2926_v55   ;;  %150 = vperm.xlu0 %3022, %v2924_v56   ;;  %v2938_v39 = vcvt.f32.s32 %v2937_v35  ;;  %v2939_v42 = vtrunc.f32 %v108_v38  ;;  %s2755_s26 = sshll.u32 %s3150_s0, 4  ;;  %s2756_s26 = int_to_ptr.vmem [resolvable:$true] %s2755_s26 }
  0x25   :  { %2906 = vmatpush1.bf16.msra.mxu1 %v2905_v14  ;;  %2892 = vmatprep.subr.bf16.mxu0 %v2891_v27  ;;  %v2936_v40 = vcvt.f32.s32 %v2935_v36  ;;  %v2942_v43 = vcvt.f32.s32 %v2941_v41  ;;  %s3112_s1 = scalar_lea.vmem %s2756_s26, 2048  ;;  %p3117_p9 = scmp.lt.s32.totalorder %s2756_s26, %s2756_s26 }
  0x26   :  { %2908 = vmatprep.subr.bf16.mxu1 %v2907_v28  ;;  %v2940_v44 = vcvt.f32.s32 %v2939_v42  ;;  %p3113_p8 = scmp.ne.s32.totalorder %s2756_s26, %s3112_s1  ;;  %p3118_p10 = scmp.lt.s32.totalorder %s3112_s1, %s3112_s1 }
  0x27   :  { %2894 = vmatpush1.bf16.msra.mxu0 %v2893_v29 }
  0x28   :  { %159 = vperm.xlu1 %3023, %v2930_v17   ;;  %156 = vperm.xlu0 %3022, %v2928_v18   ;;  %p3119_p11 = por %p3118_p10, %p3117_p9 }
  0x29   :  { %2910 = vmatpush1.bf16.msra.mxu1 %v2909_v30 }
  0x2a   :  { %p3120_p12 = pnand %p3119_p11, %p3113_p8 }
  0x2c   :  { %165 = vperm.xlu1 %3023, %v2934_v33   ;;  %162 = vperm.xlu0 %3022, %v2932_v34  }
  0x30   :  { %171 = vperm.xlu1 %3023, %v2938_v39   ;;  %168 = vperm.xlu0 %3022, %v2936_v40  }
  0x34   :  { %177 = vperm.xlu1 %3023, %v2942_v43   ;;  %174 = vperm.xlu0 %3022, %v2940_v44  }
  0x38   :  { %3024 = vset.pattern.permute.xlu0 %v3143_v45  ;;  %3025 = vset.pattern.permute.xlu1 %v3143_v45 }
  0x39   :  { %910 = vperm.xlu0 %3024, %v3190_v3   ;;  %915 = vperm.xlu1 %3025, %v3203_v8  }
  0x3d   :  { %920 = vperm.xlu1 %3025, %v3185_v2   ;;  %925 = vperm.xlu0 %3024, %v3195_v4   ;;  %v127_v2 = vlaneseq }
  0x3f   :  { %v3278_v3 = vand.u32 127, %v127_v2 }
  0x41   :  { %930 = vperm.xlu1 %3025, %v3213_v10   ;;  %935 = vperm.xlu0 %3024, %v3208_v9  }
  0x45   :  { %940 = vperm.xlu1 %3025, %v3226_v19   ;;  %945 = vperm.xlu0 %3024, %v3221_v16  }
  0x49   :  { %950 = vperm.xlu1 %3025, %v3237_v32   ;;  %955 = vperm.xlu0 %3024, %v3232_v31  }
  0x4d   :  { %960 = vperm.xlu1 %3025, %v3250_v63   ;;  %965 = vperm.xlu0 %3024, %v3245_v62  }
  0x51   :  { %970 = vperm.xlu1 %3025, %v106_v26   ;;  %975 = vperm.xlu0 %3024, %v107_v25  }
  0x55   :  { %980 = vperm.xlu1 %3025, %v108_v38   ;;  %985 = vperm.xlu0 %3024, %v109_v37  }
  0x97   :  { %v133_v4 = vpop.permute.xlu0 %132  ;;  %v139_v9 = vpop.permute.xlu1 %138 }
  0x98   :  { %vm179_vm1 = vcmp.eq.s32.totalorder %v133_v4, %v3278_v3  ;;  %vm181_vm2 = vcmp.eq.s32.totalorder %v139_v9, %v3278_v3 }
  0x99   :  { %v2767_v8 = vsel %vm179_vm1, 1.0, %v3142_v1  ;;  %v2769_v19 = vsel %vm181_vm2, 1.0, %v3142_v1 }
  0x9a   :  { %2783 = vmatmul.mubr.msk.f32.vlgmr.msra.gmra.mrb[0].mxu0 %vm323_vm0, %v2767_v8  ;;  %2799 = vmatmul.mubr.msk.f32.vlgmr.msra.gmra.mrb[0].mxu1 %vm323_vm0, %v2767_v8 }
  0x9b   :  { %v136_v10 = vpop.permute.xlu0 %135  ;;  %442 = vmatprep.mubr.f32.mxu0 %v3142_v1  ;;  %603 = vmatprep.mubr.f32.mxu1 %v3142_v1  ;;  %v142_v31 = vpop.permute.xlu1 %141 }
  0x9c   :  { %vm180_vm3 = vcmp.eq.s32.totalorder %v136_v10, %v3278_v3  ;;  %vm182_vm4 = vcmp.eq.s32.totalorder %v142_v31, %v3278_v3 }
  0x9d   :  { %v2768_v16 = vsel %vm180_vm3, 1.0, %v3142_v1  ;;  %v2770_v46 = vsel %vm182_vm4, 1.0, %v3142_v1 }
  0x9e   :  { %2784 = vmatmul.mubr.msk.f32.gmra.mrb[2].mxu0 %vm323_vm0, %v2768_v16  ;;  %2800 = vmatmul.mubr.msk.f32.gmra.mrb[2].mxu1 %vm323_vm0, %v2768_v16 }
  0x9f   :  { %448 = vmatprep.mubr.f32.mxu0 %v3142_v1  ;;  %609 = vmatprep.mubr.f32.mxu1 %v3142_v1  ;;  %v145_v32 = vpop.permute.xlu0 %144  ;;  %v148_v47 = vpop.permute.xlu1 %147 }
  0xa0   :  { %vm183_vm5 = vcmp.eq.s32.totalorder %v145_v32, %v3278_v3  ;;  %vm184_vm6 = vcmp.eq.s32.totalorder %v148_v47, %v3278_v3 }
  0xa1   :  { %v2771_v48 = vsel %vm183_vm5, 1.0, %v3142_v1  ;;  %v2772_v50 = vsel %vm184_vm6, 1.0, %v3142_v1 }
  0xa2   :  { %2785 = vmatmul.mubr.msk.f32.gmra.mrb[4].mxu0 %vm323_vm0, %v2769_v19  ;;  %2801 = vmatmul.mubr.msk.f32.gmra.mrb[4].mxu1 %vm323_vm0, %v2769_v19 }
  0xa3   :  { %454 = vmatprep.mubr.f32.mxu0 %v3142_v1  ;;  %615 = vmatprep.mubr.f32.mxu1 %v3142_v1  ;;  %v151_v49 = vpop.permute.xlu0 %150  ;;  %v154_v51 = vpop.permute.xlu1 %153 }
  0xa4   :  { %vm185_vm7 = vcmp.eq.s32.totalorder %v151_v49, %v3278_v3  ;;  %vm186_vm8 = vcmp.eq.s32.totalorder %v154_v51, %v3278_v3 }
  0xa5   :  { %v2773_v52 = vsel %vm185_vm7, 1.0, %v3142_v1  ;;  %v2774_v54 = vsel %vm186_vm8, 1.0, %v3142_v1 }
  0xa6   :  { %2786 = vmatmul.mubr.msk.f32.gmra.mrb[6].mxu0 %vm323_vm0, %v2770_v46  ;;  %2802 = vmatmul.mubr.msk.f32.gmra.mrb[6].mxu1 %vm323_vm0, %v2770_v46 }
  0xa7   :  { %460 = vmatprep.mubr.f32.mxu0 %v3142_v1  ;;  %621 = vmatprep.mubr.f32.mxu1 %v3142_v1  ;;  %v157_v53 = vpop.permute.xlu0 %156  ;;  %v160_v55 = vpop.permute.xlu1 %159 }
  0xa8   :  { %vm187_vm9 = vcmp.eq.s32.totalorder %v157_v53, %v3278_v3  ;;  %vm188_vm10 = vcmp.eq.s32.totalorder %v160_v55, %v3278_v3  ;;  %v4847_v55 = vmov 683565275  }
  0xa9   :  { %v2775_v56 = vsel %vm187_vm9, 1.0, %v3142_v1  ;;  %v2776_v58 = vsel %vm188_vm10, 1.0, %v3142_v1 }
  0xaa   :  { %2787 = vmatmul.mubr.msk.f32.gmra.mrb[8].mxu0 %vm323_vm0, %v2771_v48  ;;  %2803 = vmatmul.mubr.msk.f32.gmra.mrb[8].mxu1 %vm323_vm0, %v2771_v48 }
  0xab   :  { %466 = vmatprep.mubr.f32.mxu0 %v3142_v1  ;;  %627 = vmatprep.mubr.f32.mxu1 %v3142_v1  ;;  %v163_v57 = vpop.permute.xlu0 %162  ;;  %v166_v59 = vpop.permute.xlu1 %165 }
  0xac   :  { %vm189_vm11 = vcmp.eq.s32.totalorder %v163_v57, %v3278_v3  ;;  %vm190_vm12 = vcmp.eq.s32.totalorder %v166_v59, %v3278_v3  ;;  %v4845_v57 = vmov 2475754826  }
  0xad   :  { %v2777_v60 = vsel %vm189_vm11, 1.0, %v3142_v1  ;;  %v2778_v62 = vsel %vm190_vm12, 1.0, %v3142_v1 }
  0xae   :  { %2788 = vmatmul.mubr.msk.f32.gmra.mrb[10].mxu0 %vm323_vm0, %v2772_v50  ;;  %2804 = vmatmul.mubr.msk.f32.gmra.mrb[10].mxu1 %vm323_vm0, %v2772_v50 }
  0xaf   :  { %472 = vmatprep.mubr.f32.mxu0 %v3142_v1  ;;  %633 = vmatprep.mubr.f32.mxu1 %v3142_v1  ;;  %v169_v61 = vpop.permute.xlu0 %168  ;;  %v172_v63 = vpop.permute.xlu1 %171 }
  0xb0   :  { %vm191_vm13 = vcmp.eq.s32.totalorder %v169_v61, %v3278_v3  ;;  %vm192_vm14 = vcmp.eq.s32.totalorder %v172_v63, %v3278_v3 }
  0xb1   :  { %v2779_v0 = vsel %vm191_vm13, 1.0, %v3142_v1  ;;  %v2780_v6 = vsel %vm192_vm14, 1.0, %v3142_v1 }
  0xb2   :  { %2789 = vmatmul.mubr.msk.f32.gmra.mrb[12].mxu0 %vm323_vm0, %v2773_v52  ;;  %2805 = vmatmul.mubr.msk.f32.gmra.mrb[12].mxu1 %vm323_vm0, %v2773_v52 }
  0xb3   :  { %478 = vmatprep.mubr.f32.mxu0 %v3142_v1  ;;  %639 = vmatprep.mubr.f32.mxu1 %v3142_v1  ;;  %v175_v5 = vpop.permute.xlu0 %174  ;;  %v178_v7 = vpop.permute.xlu1 %177 }
  0xb4   :  { %vm193_vm15 = vcmp.eq.s32.totalorder %v175_v5, %v3278_v3  ;;  %vm194_vm1 = vcmp.eq.s32.totalorder %v178_v7, %v3278_v3 }
  0xb5   :  { %v2781_v11 = vsel %vm193_vm15, 1.0, %v3142_v1  ;;  %v2782_v12 = vsel %vm194_vm1, 1.0, %v3142_v1 }
  0xb6   :  { %2790 = vmatmul.mubr.msk.f32.gmra.mrb[14].mxu0 %vm323_vm0, %v2774_v54  ;;  %2806 = vmatmul.mubr.msk.f32.gmra.mrb[14].mxu1 %vm323_vm0, %v2774_v54 }
  0xb7   :  { %484 = vmatprep.mubr.f32.mxu0 %v3142_v1  ;;  %645 = vmatprep.mubr.f32.mxu1 %v3142_v1 }
  0xb8   :  { %v911_v13 = vpop.permute.xlu0 %910  ;;  %v916_v14 = vpop.permute.xlu1 %915 }
  0xba   :  { %2791 = vmatmul.mubr.msk.f32.gmra.mrb[16].mxu0 %vm323_vm0, %v2775_v56  ;;  %2807 = vmatmul.mubr.msk.f32.gmra.mrb[16].mxu1 %vm323_vm0, %v2775_v56 }
  0xbb   :  { %490 = vmatprep.mubr.f32.mxu0 %v3142_v1  ;;  %651 = vmatprep.mubr.f32.mxu1 %v3142_v1 }
  0xbc   :  { %v921_v29 = vpop.permute.xlu1 %920 }
  0xbe   :  { %2792 = vmatmul.mubr.msk.f32.gmra.mrb[18].mxu0 %vm323_vm0, %v2776_v58  ;;  %2808 = vmatmul.mubr.msk.f32.gmra.mrb[18].mxu1 %vm323_vm0, %v2776_v58 }
  0xbf   :  { %496 = vmatprep.mubr.f32.mxu0 %v3142_v1  ;;  %657 = vmatprep.mubr.f32.mxu1 %v3142_v1 }
  0xc2   :  { %2793 = vmatmul.mubr.msk.f32.gmra.mrb[20].mxu0 %vm323_vm0, %v2777_v60  ;;  %2809 = vmatmul.mubr.msk.f32.gmra.mrb[20].mxu1 %vm323_vm0, %v2777_v60 }
  0xc3   :  { %502 = vmatprep.mubr.f32.mxu0 %v3142_v1  ;;  %663 = vmatprep.mubr.f32.mxu1 %v3142_v1 }
  0xc6   :  { %2794 = vmatmul.mubr.msk.f32.gmra.mrb[22].mxu0 %vm323_vm0, %v2778_v62  ;;  %2810 = vmatmul.mubr.msk.f32.gmra.mrb[22].mxu1 %vm323_vm0, %v2778_v62  ;;  %v4841_v62 = vmov 2131351028  }
  0xc7   :  { %508 = vmatprep.mubr.f32.mxu0 %v3142_v1  ;;  %669 = vmatprep.mubr.f32.mxu1 %v3142_v1 }
  0xca   :  { %2795 = vmatmul.mubr.msk.f32.gmra.mrb[24].mxu0 %vm323_vm0, %v2779_v0  ;;  %2811 = vmatmul.mubr.msk.f32.gmra.mrb[24].mxu1 %vm323_vm0, %v2779_v0  ;;  %v4839_v0 = vmov 2102212464  }
  0xcb   :  { %514 = vmatprep.mubr.f32.mxu0 %v3142_v1  ;;  %675 = vmatprep.mubr.f32.mxu1 %v3142_v1 }
  0xce   :  { %2796 = vmatmul.mubr.msk.f32.gmra.mrb[26].mxu0 %vm323_vm0, %v2780_v6  ;;  %2812 = vmatmul.mubr.msk.f32.gmra.mrb[26].mxu1 %vm323_vm0, %v2780_v6  ;;  %v4850_v6 = vmov 920167782  }
  0xcf   :  { %520 = vmatprep.mubr.f32.mxu0 %v3142_v1  ;;  %681 = vmatprep.mubr.f32.mxu1 %v3142_v1 }
  0xd2   :  { %2797 = vmatmul.mubr.msk.f32.gmra.mrb[28].mxu0 %vm323_vm0, %v2781_v11  ;;  %2813 = vmatmul.mubr.msk.f32.gmra.mrb[28].mxu1 %vm323_vm0, %v2781_v11 }
  0xd3   :  { %526 = vmatprep.mubr.f32.mxu0 %v3142_v1  ;;  %687 = vmatprep.mubr.f32.mxu1 %v3142_v1 }
  0xd6   :  { %2798 = vmatmul.mubr.msk.f32.gmra.mrb[30].mxu0 %vm323_vm0, %v2782_v12  ;;  %2814 = vmatmul.mubr.msk.f32.gmra.mrb[30].mxu1 %vm323_vm0, %v2782_v12 }
 0x16d   :  { %v3374_v15 = vpop.f32.mrb[0].mxu0  ;;  %v599_v17 = vpop.f32.mrb[0].mxu1 }
 0x16e   :  { %v988_v18 = vmul.f32 %v911_v13, %v599_v17  ;;  %v3376_v20 = vpop.f32.mrb[1].mxu0  ;;  %v601_v21 = vpop.f32.mrb[1].mxu1 }
 0x170   :  { %v3378_v22 = vadd.f32 %v988_v18, %v601_v21  ;;  %v4843_v18 = vmov 1326507024  }
 0x171   :  { %v3380_v23 = vpop.f32.mrb[2].mxu0  ;;  %v605_v24 = vpop.f32.mrb[2].mxu1 }
 0x172   :  { %v4838_v1 = vand.u32 2147483647, %v3378_v22  ;;  %v1023_v25 = vand.u32 2139095040, %v3378_v22  ;;  %v3384_v26 = vpop.f32.mrb[3].mxu0  ;;  %v607_v27 = vpop.f32.mrb[3].mxu1  ;;  %v989_v28 = vmul.f32 %v916_v14, %v605_v24  ;;  %vm1022_vm14 = vcmp.lt.s32.totalorder %v3378_v22, 0 }
 0x174   :  { %v1024_v30 = vshrl.u32 %v1023_v25, 23  ;;  %v1027_v33 = vand.u32 8388607, %v4838_v1  ;;  %v3388_v34 = vadd.f32 %v989_v28, %v607_v27 }
 0x175   :  { %v3390_v35 = vpop.f32.mrb[4].mxu0  ;;  %v611_v36 = vpop.f32.mrb[4].mxu1 }
 0x176   :  { %v2815_v37 = vadd.s32 4294967169, %v1024_v30  ;;  %v990_v38 = vmul.f32 %v921_v29, %v611_v36  ;;  %v3392_v39 = vpop.f32.mrb[5].mxu0  ;;  %v613_v40 = vpop.f32.mrb[5].mxu1  ;;  %v4837_v41 = vand.u32 2147483647, %v3388_v34  ;;  %v1127_v42 = vand.u32 2139095040, %v3388_v34 }
 0x177   :  { %v1028_v43 = vor.u32 8388608, %v1027_v33  ;;  %vm1126_vm1 = vcmp.lt.s32.totalorder %v3388_v34, 0 }
 0x178   :  { %v1030_v44 = vadd.s32 1, %v2815_v37  ;;  %v3396_v45 = vadd.f32 %v990_v38, %v613_v40  ;;  %v1128_v2 = vshrl.u32 %v1127_v42, 23  ;;  %v3400_v4 = vand.u32 8388607, %v4837_v41 }
 0x179   :  { %v3402_v8 = vpop.f32.mrb[6].mxu0  ;;  %v3405_v10 = vpop.f32.mrb[6].mxu1  ;;  %v3411_v48 = vshll.u32 %v1028_v43, 8 }
 0x17a   :  { %vm1031_vm0 = vcmp.gt.s32.totalorder %v1030_v44, 0  ;;  %v1231_v9 = vand.u32 2139095040, %v3396_v45  ;;  %v2819_v19 = vadd.s32 4294967169, %v1128_v2  ;;  %v3407_v31 = vpop.f32.mrb[7].mxu0  ;;  %v3409_v32 = vpop.f32.mrb[7].mxu1  ;;  %v1132_v49 = vor.u32 8388608, %v3400_v4 }
 0x17b   :  { %v1032_v16 = vsel %vm1031_vm0, %v1030_v44, 0  ;;  %v4836_v50 = vand.u32 2147483647, %v3396_v45 }
 0x17c   :  { %v1033_v46 = vshrl.u32 %v1032_v16, 5  ;;  %v1034_v47 = vand.u32 31, %v1032_v16  ;;  %v3415_v51 = vshrl.u32 %v1231_v9, 23  ;;  %v1134_v59 = vadd.s32 1, %v2819_v19 }
 0x17d   :  { %v3417_v52 = vpop.f32.mrb[8].mxu0  ;;  %v3419_v53 = vpop.f32.mrb[8].mxu1 }
 0x17e   :  { %4854 = vst [vmem:[#allocation9_spill] sm:$0xff] %v3417_v52  ;;  %v1035_v54 = vsub.s32 32, %v1034_v47  ;;  %v1037_v56 = vshll.u32 %v4847_v55, %v1034_v47  ;;  %v1040_v58 = vshll.u32 %v4845_v57, %v1034_v47  ;;  %v3423_v60 = vpop.f32.mrb[9].mxu0  ;;  %v3425_v61 = vpop.f32.mrb[9].mxu1  ;;  %v1043_v63 = vshll.u32 %v4841_v62, %v1034_v47 }
 0x17f   :  { %v1046_v5 = vshll.u32 %v4839_v0, %v1034_v47  ;;  %v1049_v7 = vshll.u32 %v4850_v6, %v1034_v47  ;;  %vm1052_vm2 = vcmp.lt.s32.totalorder %v1033_v46, 1  ;;  %vm1053_vm3 = vcmp.lt.s32.totalorder %v1033_v46, 2 }
 0x180   :  { %v1038_v11 = vshrl.u32 %v4845_v57, %v1035_v54  ;;  %v1041_v12 = vshrl.u32 %v4841_v62, %v1035_v54  ;;  %v1044_v13 = vshrl.u32 %v4839_v0, %v1035_v54  ;;  %v1036_v14 = vshrl.u32 %v4847_v55, %v1035_v54 }
 0x181   :  { %v1047_v17 = vshrl.u32 %v4850_v6, %v1035_v54  ;;  %v1050_v21 = vshrl.u32 %v4843_v18, %v1035_v54  ;;  %vm1054_vm4 = vcmp.lt.s32.totalorder %v1033_v46, 3  ;;  %v3436_v24 = vpop.f32.mrb[10].mxu0  ;;  %v3438_v25 = vpop.f32.mrb[10].mxu1  ;;  %vm1135_vm5 = vcmp.gt.s32.totalorder %v1134_v59, 0 }
 0x182   :  { %4855 = vst [vmem:[#allocation10_spill] sm:$0xff] %v3436_v24  ;;  %v1039_v27 = vor.u32 %v1038_v11, %v1037_v56  ;;  %v1042_v28 = vor.u32 %v1041_v12, %v1040_v58  ;;  %v1045_v29 = vor.u32 %v1044_v13, %v1043_v63  ;;  %v3440_v30 = vpop.f32.mrb[11].mxu0  ;;  %v3442_v33 = vpop.f32.mrb[11].mxu1  ;;  %vm1055_vm6 = vcmp.lt.s32.totalorder %v1033_v46, 4 }
 0x183   :  { %4856 = vst [vmem:[#allocation11_spill] sm:$0xff] %v3440_v30  ;;  %v1048_v36 = vor.u32 %v1047_v17, %v1046_v5  ;;  %v1051_v37 = vor.u32 %v1050_v21, %v1049_v7  ;;  %v1136_v38 = vsel %vm1135_vm5, %v1134_v59, 0  ;;  %v3461_v11 = vshll.u32 %v1132_v49, 8 }
 0x184   :  { %v1056_v40 = vsel %vm1052_vm2, %v1036_v14, %v1039_v27  ;;  %v1057_v42 = vsel %vm1055_vm6, %v1045_v29, 2102212464  ;;  %v1060_v43 = vsel %vm1052_vm2, %v1039_v27, %v1042_v28  ;;  %v1064_v44 = vsel %vm1052_vm2, %v1042_v28, %v1045_v29 }
 0x185   :  { %v1058_v2 = vsel %vm1054_vm4, %v1042_v28, %v1057_v42  ;;  %v1061_v4 = vsel %vm1055_vm6, %v1048_v36, 920167782  ;;  %v1065_v9 = vsel %vm1055_vm6, %v1051_v37, 1326507024  ;;  %v3448_v16 = vshrl.u32 %v1136_v38, 5  ;;  %v3450_v19 = vpop.f32.mrb[12].mxu0  ;;  %v926_v28 = vpop.permute.xlu0 %925 }
 0x186   :  { %4857 = vst [vmem:[#allocation12_spill] sm:$0xff] %v3450_v19  ;;  %v1059_v47 = vsel %vm1053_vm3, %v1056_v40, %v1058_v2  ;;  %v1062_v54 = vsel %vm1054_vm4, %v1045_v29, %v1061_v4  ;;  %v1066_v56 = vsel %vm1054_vm4, %v1048_v36, %v1065_v9  ;;  %v1138_v58 = vand.u32 31, %v1136_v38  ;;  %v3455_v59 = vpop.f32.mrb[12].mxu1  ;;  %v3457_v63 = vpop.f32.mrb[13].mxu0 }
 0x187   :  { %4858 = vst [vmem:[#allocation13_spill] sm:$0xff] %v3457_v63  ;;  %v1063_v5 = vsel %vm1053_vm3, %v1060_v43, %v1062_v54  ;;  %v1067_v7 = vsel %vm1053_vm3, %v1064_v44, %v1066_v56  ;;  %v3465_v12 = vand.u32 8388607, %v4836_v50  ;;  %v3467_v13 = vpop.f32.mrb[13].mxu1  ;;  %v1075_v46 = vmul.u32 %v3411_v48, %v1059_v47 }
 0x188   :  { %v3470_v14 = vmul.u32.u64.low %v3411_v48, %v1067_v7  ;;  %v3471_v17 = vmul.u32.u64.high %v3411_v48, %v1067_v7, %v3470_v14  ;;  %v3474_v21 = vmul.u32.u64.low %v3411_v48, %v1063_v5  ;;  %v3475_v27 = vmul.u32.u64.high %v3411_v48, %v1063_v5, %v3474_v21 }
 0x189   :  { %v1139_v49 = vsub.s32 32, %v1138_v58  ;;  %v2823_v29 = vadd.s32 4294967169, %v3415_v51  ;;  %v991_v36 = vmul.f32 %v926_v28, %v3405_v10  ;;  %v3481_v37 = vpop.f32.mrb[14].mxu0  ;;  %v3483_v38 = vpop.f32.mrb[14].mxu1  ;;  %v1141_v40 = vshll.u32 %v4847_v55, %v1138_v58 }
 0x18a   :  { %4859 = vst [vmem:[#allocation14_spill] sm:$0xff] %v3481_v37  ;;  %v1144_v42 = vshll.u32 %v4845_v57, %v1138_v58  ;;  %v1147_v43 = vshll.u32 %v4841_v62, %v1138_v58  ;;  %vm1156_vm7 = vcmp.lt.s32.totalorder %v3448_v16, 1  ;;  %v3489_v44 = vpop.f32.mrb[15].mxu0  ;;  %v3491_v48 = vpop.f32.mrb[15].mxu1  ;;  %v1150_v4 = vshll.u32 %v4839_v0, %v1138_v58 }
 0x18b   :  { %4860 = vst [vmem:[#allocation15_spill] sm:$0xff] %v3489_v44  ;;  %v1142_v51 = vshrl.u32 %v4845_v57, %v1139_v49  ;;  %v1145_v10 = vshrl.u32 %v4841_v62, %v1139_v49  ;;  %v1148_v2 = vshrl.u32 %v4839_v0, %v1139_v49  ;;  %vm1077_vm8 = vc.u32 %v3471_v17, %v3474_v21 }
 0x18c   :  { %v1078_v9 = vadd.s32 1, %v3475_v27  ;;  %v1151_v47 = vshrl.u32 %v4850_v6, %v1139_v49  ;;  %v1153_v54 = vshll.u32 %v4850_v6, %v1138_v58  ;;  %v1154_v14 = vshrl.u32 %v4843_v18, %v1139_v49 }
 0x18d   :  { %v1143_v56 = vor.u32 %v1142_v51, %v1141_v40  ;;  %v1146_v5 = vor.u32 %v1145_v10, %v1144_v42  ;;  %v1149_v7 = vor.u32 %v1148_v2, %v1147_v43  ;;  %vm1157_vm9 = vcmp.lt.s32.totalorder %v3448_v16, 2 }
 0x18e   :  { %v1079_v28 = vsel %vm1077_vm8, %v1078_v9, %v3475_v27  ;;  %v1152_v50 = vor.u32 %v1151_v47, %v1150_v4  ;;  %vm1159_vm10 = vcmp.lt.s32.totalorder %v3448_v16, 4  ;;  %v1140_v1 = vshrl.u32 %v4847_v55, %v1139_v49 }
 0x18f   :  { %v1080_v41 = vadd.s32 %v1079_v28, %v1075_v46  ;;  %v1155_v0 = vor.u32 %v1154_v14, %v1153_v54  ;;  %v1161_v62 = vsel %vm1159_vm10, %v1149_v7, 2102212464  ;;  %vm1158_vm11 = vcmp.lt.s32.totalorder %v3448_v16, 3 }
 0x190   :  { %v1164_v58 = vsel %vm1156_vm7, %v1143_v56, %v1146_v5  ;;  %v1165_v40 = vsel %vm1159_vm10, %v1152_v50, 920167782  ;;  %v1168_v42 = vsel %vm1156_vm7, %v1146_v5, %v1149_v7  ;;  %v1160_v43 = vsel %vm1156_vm7, %v1140_v1, %v1143_v56 }
 0x191   :  { %v1081_v27 = vadd.s32 536870912, %v1080_v41  ;;  %v1166_v51 = vsel %vm1158_vm11, %v1149_v7, %v1165_v40  ;;  %v1169_v10 = vsel %vm1159_vm10, %v1155_v0, 1326507024  ;;  %v1162_v46 = vsel %vm1158_vm11, %v1146_v5, %v1161_v62 }
 0x192   :  { %v1167_v49 = vsel %vm1157_vm9, %v1164_v58, %v1166_v51  ;;  %v1170_v2 = vsel %vm1158_vm11, %v1152_v50, %v1169_v10  ;;  %v1238_v4 = vadd.s32 1, %v2823_v29  ;;  %v1163_v0 = vsel %vm1157_vm9, %v1160_v43, %v1162_v46  ;;  %v3549_v51 = vpop.f32.mrb[16].mxu1 }
 0x193   :  { %v1082_v9 = vshrl.u32 %v1081_v27, 30  ;;  %v1171_v47 = vsel %vm1157_vm9, %v1168_v42, %v1170_v2  ;;  %v3519_v54 = vmul.u32.u64.low %v3461_v11, %v1167_v49  ;;  %v3520_v14 = vmul.u32.u64.high %v3461_v11, %v1167_v49, %v3519_v54 }
 0x194   :  { %v3524_v28 = vmul.u32.u64.low %v3461_v11, %v1171_v47  ;;  %v3525_v1 = vmul.u32.u64.high %v3461_v11, %v1171_v47, %v3524_v28  ;;  %vm1239_vm12 = vcmp.gt.s32.totalorder %v1238_v4, 0  ;;  %v3530_v29 = vadd.f32 %v991_v36, %v3409_v32  ;;  %v3541_v32 = vpop.f32.mrb[16].mxu0 }
 0x195   :  { %v1083_v62 = vshll.u32 %v1082_v9, 30  ;;  %v1240_v50 = vsel %vm1239_vm12, %v1238_v4, 0  ;;  %v1182_v7 = vadd.s32 1, %v3520_v14  ;;  %v1236_v58 = vor.u32 8388608, %v3465_v12  ;;  %4861 = vst [vmem:[#allocation16_spill] sm:$0xff] %v3541_v32  ;;  %v3553_v47 = vpop.f32.mrb[17].mxu0 }
 0x196   :  { %v1242_v56 = vand.u32 31, %v1240_v50  ;;  %v1179_v40 = vmul.u32 %v3461_v11, %v1163_v0  ;;  %vm1181_vm13 = vc.u32 %v3525_v1, %v3519_v54  ;;  %v931_v11 = vpop.permute.xlu1 %930  ;;  %v1106_v10 = vsub.s32 4, %v1082_v9  ;;  %4863 = vst [vmem:[#allocation17_spill] sm:$0xff] %v3553_v47 }
 0x197   :  { %v3532_v5 = vsub.s32 %v1080_v41, %v1083_v62  ;;  %v1183_v27 = vsel %vm1181_vm13, %v1182_v7, %v3520_v14  ;;  %v1076_v41 = vadd.s32 %v3474_v21, %v3471_v17  ;;  %v3547_v36 = vshll.u32 %v1236_v58, 8  ;;  %v3555_v14 = vpop.f32.mrb[17].mxu1 }
 0x198   :  { %v1243_v42 = vsub.s32 32, %v1242_v56  ;;  %v1184_v43 = vadd.s32 %v1183_v27, %v1179_v40  ;;  %v4862_v2 = vmov 2131351028   ;;  %v1241_v62 = vshrl.u32 %v1240_v50, 5 }
 0x199   :  { %v1086_v16 = vsub.s32 0, %v3532_v5  ;;  %v4864_v17 = vmov 2102212464   ;;  %v3559_v0 = vmul.f32 %v931_v11, %v3419_v53  ;;  %v1245_v58 = vshll.u32 %v4847_v55, %v1242_v56 }
 0x19a   :  { %v1185_v46 = vadd.s32 536870912, %v1184_v43  ;;  %v1246_v49 = vshrl.u32 %v4845_v57, %v1243_v42  ;;  %v1249_v4 = vshrl.u32 %v4862_v2, %v1243_v42  ;;  %v1252_v21 = vshrl.u32 %v4864_v17, %v1243_v42 }
 0x19b   :  { %v2816_v12 = vmin.u32 %v1086_v16, %v3532_v5  ;;  %v1248_v40 = vshll.u32 %v4845_v57, %v1242_v56  ;;  %v1255_v16 = vshrl.u32 %v4850_v6, %v1243_v42  ;;  %v1251_v18 = vshll.u32 %v4862_v2, %v1242_v56 }
 0x19c   :  { %v1186_v7 = vshrl.u32 %v1185_v46, 30  ;;  %v1254_v32 = vshll.u32 %v4864_v17, %v1242_v56  ;;  %v4865_v47 = vmov 1326507024   ;;  %v4866_v50 = vand.u32 2147483647, %v3378_v22 }
 0x19d   :  { %v1088_v28 = vclz %v2816_v12  ;;  %v1258_v12 = vshrl.u32 %v4865_v47, %v1243_v42  ;;  %v1107_v53 = vsel %vm1022_vm14, %v1106_v10, %v1082_v9  ;;  %v1247_v46 = vor.u32 %v1246_v49, %v1245_v58 }
 0x19e   :  { %vm3569_vm15 = vcmp.le.f32.partialorder %v4866_v50, 0.7853982  ;;  %v1187_v11 = vshll.u32 %v1186_v7, 30  ;;  %v1253_v57 = vor.u32 %v1252_v21, %v1251_v18  ;;  %v1256_v55 = vor.u32 %v1255_v16, %v1254_v32 }
 0x19f   :  { %v2817_v27 = vadd.s32 4294967294, %v1088_v28  ;;  %v1250_v28 = vor.u32 %v1249_v4, %v1248_v40  ;;  %v1257_v44 = vshll.u32 %v4850_v6, %v1242_v56  ;;  %v1210_v50 = vsub.s32 4, %v1186_v7 }
 0x1a0   :  { %v3577_v63 = vsub.s32 %v1184_v43, %v1187_v11  ;;  %vm1260_vm2 = vcmp.lt.s32.totalorder %v1241_v62, 1  ;;  %vm1262_vm3 = vcmp.lt.s32.totalorder %v1241_v62, 3  ;;  %vm1263_vm4 = vcmp.lt.s32.totalorder %v1241_v62, 4 }
 0x1a1   :  { %vm2818_vm0 = vcmp.lt.s32.totalorder %v2817_v27, 0  ;;  %v1259_v52 = vor.u32 %v1258_v12, %v1257_v44  ;;  %v1268_v49 = vsel %vm1260_vm2, %v1247_v46, %v1250_v28  ;;  %v4869_v56 = vand.u32 2147483647, %v3388_v34 }
 0x1a2   :  { %v1091_v19 = vsel %vm2818_vm0, 0, %v2817_v27  ;;  %v1190_v10 = vsub.s32 0, %v3577_v63  ;;  %v1265_v4 = vsel %vm1263_vm4, %v1253_v57, 2102212464  ;;  %v1269_v44 = vsel %vm1263_vm4, %v1256_v55, 920167782 }
 0x1a3   :  { %v1092_v24 = vsub.s32 32, %v1091_v19  ;;  %v1096_v30 = vsub.s32 4294967266, %v1091_v19  ;;  %v1093_v9 = vshll.u32 %v3532_v5, %v1091_v19  ;;  %vm3584_vm5 = vcmp.le.f32.partialorder %v4869_v56, 0.7853982 }
 0x1a4   :  { %v2820_v21 = vmin.u32 %v1190_v10, %v3577_v63  ;;  %v4872_v19 = vmov 683565275   ;;  %vm1261_vm6 = vcmp.lt.s32.totalorder %v1241_v62, 2  ;;  %v1270_v58 = vsel %vm1262_vm3, %v1253_v57, %v1269_v44 }
 0x1a5   :  { %v1094_v18 = vshrl.u32 %v1076_v41, %v1092_v24  ;;  %v1097_v32 = vadd.s32 127, %v1096_v30  ;;  %v1244_v5 = vshrl.u32 %v4872_v19, %v1243_v42  ;;  %v1271_v30 = vsel %vm1261_vm6, %v1268_v49, %v1270_v58 }
 0x1a6   :  { %v4849_v41 = vand.u32 2147483647, %v3530_v29  ;;  %v1192_v16 = vclz %v2820_v21  ;;  %v1266_v12 = vsel %vm1262_vm3, %v1250_v28, %v1265_v4  ;;  %v1272_v11 = vsel %vm1260_vm2, %v1250_v28, %v1253_v57 }
 0x1a7   :  { %v1095_v40 = vor.u32 %v1094_v18, %v1093_v9  ;;  %v1098_v24 = vshll.u32 %v1097_v32, 23  ;;  %v1264_v27 = vsel %vm1260_vm2, %v1244_v5, %v1247_v46  ;;  %v1109_v42 = vsel %vm3569_vm15, 0, %v1107_v53 }
 0x1a8   :  { %v1211_v10 = vsel %vm1126_vm1, %v1210_v50, %v1186_v7  ;;  %v1273_v9 = vsel %vm1263_vm4, %v1259_v52, 1326507024  ;;  %v2821_v18 = vadd.s32 4294967294, %v1192_v16  ;;  %v1267_v57 = vsel %vm1261_vm6, %v1264_v27, %v1266_v12 }
 0x1a9   :  { %v1099_v56 = vor.u32 4788187, %v1098_v24  ;;  %v1274_v49 = vsel %vm1262_vm3, %v1256_v55, %v1273_v9  ;;  %v3605_v32 = vmul.u32.u64.low %v3547_v36, %v1271_v30  ;;  %v3606_v44 = vmul.u32.u64.high %v3547_v36, %v1271_v30, %v3605_v32 }
 0x1aa   :  { %v1102_v4 = vcvt.s32.f32 %v1095_v40  ;;  %v1275_v28 = vsel %vm1261_vm6, %v1272_v11, %v1274_v49  ;;  %vm2822_vm7 = vcmp.lt.s32.totalorder %v2821_v18, 0  ;;  %v1335_v52 = vand.u32 2139095040, %v3530_v29 }
 0x1ab   :  { %v1100_v46 = vand.u32 2147483647, %v1099_v56  ;;  %v3612_v53 = vmul.u32.u64.low %v3547_v36, %v1275_v28  ;;  %v3613_v7 = vmul.u32.u64.high %v3547_v36, %v1275_v28, %v3612_v53  ;;  %v1113_v55 = vadd.s32 3, %v1109_v42 }
 0x1ac   :  { %v1180_v21 = vadd.s32 %v3519_v54, %v3525_v1  ;;  %v1195_v5 = vsel %vm2822_vm7, 0, %v2821_v18  ;;  %v1213_v40 = vsel %vm3584_vm5, 0, %v1211_v10  ;;  %v1286_v62 = vadd.s32 1, %v3606_v44  ;;  %v936_v18 = vpop.permute.xlu0 %935 }
 0x1ad   :  { %v1103_v50 = vmul.f32 %v1102_v4, %v1100_v46  ;;  %v1196_v58 = vsub.s32 32, %v1195_v5  ;;  %v1200_v24 = vsub.s32 4294967266, %v1195_v5  ;;  %v1283_v16 = vmul.u32 %v3547_v36, %v1267_v57 }
 0x1ae   :  { %v1336_v27 = vshrl.u32 %v1335_v52, 23  ;;  %v3624_v12 = vadd.f32 %v3559_v0, %v3425_v61  ;;  %v1197_v11 = vshll.u32 %v3577_v63, %v1195_v5  ;;  %vm1285_vm8 = vc.u32 %v3613_v7, %v3605_v32 }
 0x1af   :  { %v1104_v30 = vxor.u32 2147483648, %v1103_v50  ;;  %v1198_v56 = vshrl.u32 %v1180_v21, %v1196_v58  ;;  %v1201_v54 = vadd.s32 127, %v1200_v24  ;;  %v1287_v42 = vsel %vm1285_vm8, %v1286_v62, %v3606_v44  ;;  %v3650_v62 = vpop.f32.mrb[18].mxu1 }
 0x1b0   :  { %v2827_v10 = vadd.s32 4294967169, %v1336_v27  ;;  %v1339_v36 = vand.u32 8388607, %v4849_v41  ;;  %v1288_v9 = vadd.s32 %v1287_v42, %v1283_v16  ;;  %v993_v46 = vmul.f32 %v936_v18, %v3438_v25 }
 0x1b1   :  { %v1105_v1 = vsel %vm1022_vm14, %v1104_v30, %v1103_v50  ;;  %v1199_v0 = vor.u32 %v1198_v56, %v1197_v11  ;;  %v1202_v63 = vshll.u32 %v1201_v54, 23  ;;  %v3638_v4 = vand.u32 3, %v1113_v55  ;;  %v3662_v56 = vpop.f32.mrb[19].mxu1 }
 0x1b2   :  { %v1108_v61 = vsel %vm3569_vm15, %v3378_v22, %v1105_v1  ;;  %v1342_v49 = vadd.s32 1, %v2827_v10  ;;  %v1289_v57 = vadd.s32 536870912, %v1288_v9  ;;  %v1217_v28 = vadd.s32 3, %v1213_v40  ;;  %v3648_v40 = vpop.f32.mrb[18].mxu0 }
 0x1b3   :  { %3026 = vcosq.f32 %v1108_v61  ;;  %v1203_v44 = vor.u32 4788187, %v1202_v63  ;;  %v1340_v53 = vor.u32 8388608, %v1339_v36  ;;  %v1206_v50 = vcvt.s32.f32 %v1199_v0  ;;  %4873 = vst [vmem:[#allocation18_spill] sm:$0xff] %v3648_v40  ;;  %v3660_v11 = vpop.f32.mrb[19].mxu0 }
 0x1b4   :  { %3028 = vsinq.f32 %v1108_v61  ;;  %vm1343_vm9 = vcmp.gt.s32.totalorder %v1342_v49, 0  ;;  %v1290_v37 = vshrl.u32 %v1289_v57, 30  ;;  %vm1230_vm10 = vcmp.lt.s32.totalorder %v3396_v45, 0  ;;  %4874 = vst [vmem:[#allocation19_spill] sm:$0xff] %v3660_v11 }
 0x1b5   :  { %v1204_v52 = vand.u32 2147483647, %v1203_v44  ;;  %v1344_v21 = vsel %vm1343_vm9, %v1342_v49, 0  ;;  %v1439_v58 = vand.u32 2139095040, %v3624_v12  ;;  %vm905_vm11 = vcmp.ge.s32.totalorder %v3278_v3, 16 }
 0x1b6   :  { %v1346_v5 = vand.u32 31, %v1344_v21  ;;  %vm906_vm12 = vcmp.lt.s32.totalorder %v3278_v3, 32  ;;  %vm1116_vm13 = vcmp.eq.s32.totalorder %v3638_v4, 0  ;;  %v1291_v55 = vshll.u32 %v1290_v37, 30 }
 0x1b7   :  { %v1207_v25 = vmul.f32 %v1206_v50, %v1204_v52  ;;  %v3646_v24 = vadd.f32 %v993_v46, %v3442_v33  ;;  %vm1115_vm14 = vcmp.lt.s32.totalorder %v3638_v4, 2  ;;  %vm1119_vm15 = vcmp.eq.s32.totalorder %v3638_v4, 2  ;;  %vm3707_vm3 = vmand %vm905_vm11, %vm906_vm12 }
 0x1b8   :  { %v3654_v30 = vand.u32 3, %v1217_v28  ;;  %v3658_v16 = vadd.s32 %v3605_v32, %v3613_v7  ;;  %v1347_v27 = vsub.s32 32, %v1346_v5  ;;  %vm1112_vm0 = vweird.f32 %v3378_v22 }
 0x1b9   :  { %v1208_v33 = vxor.u32 2147483648, %v1207_v25  ;;  %v3665_v54 = vsub.s32 %v1288_v9, %v1291_v55  ;;  %v1314_v1 = vsub.s32 4, %v1290_v37  ;;  %v3667_v42 = vshll.u32 %v1340_v53, 8 }
 0x1ba   :  { %v3669_v10 = vshrl.u32 %v1344_v21, 5  ;;  %v1349_v36 = vshll.u32 %v4872_v19, %v1346_v5  ;;  %v4875_v61 = vmov 2475754826   ;;  %v3673_v7 = vshrl.u32 %v1439_v58, 23 }
 0x1bb   :  { %v1350_v32 = vshrl.u32 %v4875_v61, %v1347_v27  ;;  %v1209_v0 = vsel %vm1126_vm1, %v1208_v33, %v1207_v25  ;;  %v1294_v63 = vsub.s32 0, %v3665_v54  ;;  %v1353_v18 = vshrl.u32 %v4862_v2, %v1347_v27 }
 0x1bc   :  { %v1356_v9 = vshrl.u32 %v4864_v17, %v1347_v27  ;;  %v1212_v46 = vsel %vm3584_vm5, %v3388_v34, %v1209_v0  ;;  %v1352_v44 = vshll.u32 %v4875_v61, %v1346_v5  ;;  %v1355_v57 = vshll.u32 %v4862_v2, %v1346_v5 }
 0x1bd   :  { %v3027_v49 = vpop.eup %3026  ;;  %v1359_v28 = vshrl.u32 %v4850_v6, %v1347_v27  ;;  %3030 = vcosq.f32 %v1212_v46  ;;  %v2824_v50 = vmin.u32 %v1294_v63, %v3665_v54  ;;  %v3689_v21 = vsel %vm1230_vm10, %v1314_v1, %v1290_v37 }
 0x1be   :  { %v3029_v53 = vpop.eup %3028  ;;  %v1120_v52 = vxor.u32 2147483648, %v3027_v49  ;;  %3032 = vsinq.f32 %v1212_v46  ;;  %v1351_v25 = vor.u32 %v1350_v32, %v1349_v36  ;;  %v1358_v43 = vshll.u32 %v4864_v17, %v1346_v5 }
 0x1bf   :  { %v1117_v58 = vxor.u32 2147483648, %v3029_v53  ;;  %v1296_v33 = vclz %v2824_v50  ;;  %v1354_v0 = vor.u32 %v1353_v18, %v1352_v44  ;;  %v1357_v41 = vor.u32 %v1356_v9, %v1355_v57 }
 0x1c0   :  { %v1121_v55 = vsel %vm1119_vm15, %v1120_v52, %v3029_v53  ;;  %v1360_v40 = vor.u32 %v1359_v28, %v1358_v43  ;;  %v4876_v63 = vmov 920167782   ;;  %v1362_v37 = vshrl.u32 %v4865_v47, %v1347_v27 }
 0x1c1   :  { %v1118_v6 = vsel %vm1116_vm13, %v3027_v49, %v1117_v58  ;;  %v1361_v11 = vshll.u32 %v4876_v63, %v1346_v5  ;;  %vm1223_vm1 = vcmp.eq.s32.totalorder %v3654_v30, 2  ;;  %v2825_v36 = vadd.s32 4294967294, %v1296_v33 }
 0x1c2   :  { %v1122_v1 = vsel %vm1115_vm14, %v1118_v6, %v1121_v55  ;;  %v1348_v32 = vshrl.u32 %v4872_v19, %v1347_v27  ;;  %vm1364_vm2 = vcmp.lt.s32.totalorder %v3669_v10, 1  ;;  %vm1220_vm4 = vcmp.eq.s32.totalorder %v3654_v30, 0 }
 0x1c3   :  { %v1123_v5 = vsel %vm1112_vm0, nan, %v1122_v1  ;;  %v1363_v6 = vor.u32 %v1362_v37, %v1361_v11  ;;  %vm1365_vm5 = vcmp.lt.s32.totalorder %v3669_v10, 2  ;;  %vm1367_vm6 = vcmp.lt.s32.totalorder %v3669_v10, 4 }
 0x1c4   :  { %v2684_v4 = vmul.f32 %v1123_v5, %v3376_v20  ;;  %vm1219_vm7 = vcmp.lt.s32.totalorder %v3654_v30, 2  ;;  %v4879_v3 = vand.u32 2147483647, %v3396_v45  ;;  %vm2826_vm9 = vcmp.lt.s32.totalorder %v2825_v36, 0  ;;  %v3782_v30 = vpop.f32.mrb[20].mxu0 }
 0x1c5   :  { %vm1366_vm11 = vcmp.lt.s32.totalorder %v3669_v10, 3  ;;  %v1369_v22 = vsel %vm1367_vm6, %v1357_v41, 2102212464  ;;  %v1299_v11 = vsel %vm2826_vm9, 0, %v2825_v36  ;;  %v1368_v9 = vsel %vm1364_vm2, %v1348_v32, %v1351_v25 }
 0x1c6   :  { %vm3720_vm8 = vcmp.le.f32.partialorder %v4879_v3, 0.7853982  ;;  %v1372_v20 = vsel %vm1364_vm2, %v1351_v25, %v1354_v0  ;;  %v1373_v49 = vsel %vm1367_vm6, %v1360_v40, 920167782  ;;  %v2702_v46 = vsel %vm3707_vm3, %v2684_v4, 0.0 }
 0x1c7   :  { %v1300_v44 = vsub.s32 32, %v1299_v11  ;;  %v1304_v57 = vsub.s32 4294967266, %v1299_v11  ;;  %v1370_v28 = vsel %vm1366_vm11, %v1354_v0, %v1369_v22  ;;  %v2718_v53 = vadd.f32 %v2702_v46, %v3374_v15  ;;  %v3031_v25 = vpop.eup %3030 }
 0x1c8   :  { %v1301_v52 = vshll.u32 %v3665_v54, %v1299_v11  ;;  %v1374_v50 = vsel %vm1366_vm11, %v1357_v41, %v1373_v49  ;;  %v1376_v58 = vsel %vm1364_vm2, %v1354_v0, %v1357_v41  ;;  %v1377_v37 = vsel %vm1367_vm6, %v1363_v6, 1326507024  ;;  %v3033_v1 = vpop.eup %3032 }
 0x1c9   :  { %v1302_v43 = vshrl.u32 %v3658_v16, %v1300_v44  ;;  %v1305_v55 = vadd.s32 127, %v1304_v57  ;;  %v1375_v33 = vsel %vm1365_vm5, %v1372_v20, %v1374_v50  ;;  %2734 = vst [vmem:[#allocation6] sm:$0xff] %v2718_v53  ;;  %v1224_v15 = vxor.u32 2147483648, %v3031_v25 }
 0x1ca   :  { %v1378_v54 = vsel %vm1366_vm11, %v1360_v40, %v1377_v37  ;;  %v3751_v36 = vmul.u32.u64.low %v3667_v42, %v1375_v33  ;;  %v3752_v32 = vmul.u32.u64.high %v3667_v42, %v1375_v33, %v3751_v36  ;;  %v1221_v41 = vxor.u32 2147483648, %v3033_v1 }
 0x1cb   :  { %v1303_v16 = vor.u32 %v1302_v43, %v1301_v52  ;;  %v1306_v0 = vshll.u32 %v1305_v55, 23  ;;  %v1379_v5 = vsel %vm1365_vm5, %v1376_v58, %v1378_v54  ;;  %v1225_v6 = vsel %vm1223_vm1, %v1224_v15, %v3033_v1  ;;  %v3787_v43 = vpop.f32.mrb[21].mxu0 }
 0x1cc   :  { %v3760_v4 = vmul.u32.u64.low %v3667_v42, %v1379_v5  ;;  %v3761_v3 = vmul.u32.u64.high %v3667_v42, %v1379_v5, %v3760_v4  ;;  %v1436_v40 = vand.u32 2147483647, %v3624_v12  ;;  %v1222_v22 = vsel %vm1220_vm4, %v3031_v25, %v1221_v41 }
 0x1cd   :  { %v1307_v11 = vor.u32 4788187, %v1306_v0  ;;  %v1371_v20 = vsel %vm1365_vm5, %v1368_v9, %v1370_v28  ;;  %v2831_v49 = vadd.s32 4294967169, %v3673_v7  ;;  %vm1216_vm12 = vweird.f32 %v3388_v34  ;;  %v3784_v7 = vpop.f32.mrb[20].mxu1 }
 0x1ce   :  { %v1226_v46 = vsel %vm1219_vm7, %v1222_v22, %v1225_v6  ;;  %v1317_v44 = vsel %vm3720_vm8, 0, %v3689_v21  ;;  %v1390_v57 = vadd.s32 1, %v3752_v32  ;;  %v1310_v50 = vcvt.s32.f32 %v1303_v16 }
 0x1cf   :  { %v1227_v53 = vsel %vm1216_vm12, nan, %v1226_v46  ;;  %v1308_v52 = vand.u32 2147483647, %v1307_v11  ;;  %v1446_v58 = vadd.s32 1, %v2831_v49  ;;  %v1387_v9 = vmul.u32 %v3667_v42, %v1371_v20 }
 0x1d0   :  { %v2685_v10 = vmul.f32 %v1227_v53, %v3384_v26  ;;  %vm1389_vm13 = vc.u32 %v3761_v3, %v3751_v36  ;;  %v1443_v34 = vand.u32 8388607, %v1436_v40  ;;  %v1321_v28 = vadd.s32 3, %v1317_v44  ;;  %v3789_v26 = vpop.f32.mrb[21].mxu1 }
 0x1d1   :  { %v1311_v21 = vmul.f32 %v1310_v50, %v1308_v52  ;;  %v1391_v25 = vsel %vm1389_vm13, %v1390_v57, %v3752_v32  ;;  %vm1447_vm14 = vcmp.gt.s32.totalorder %v1446_v58, 0  ;;  %v1543_v5 = vand.u32 2139095040, %v3646_v24 }
 0x1d2   :  { %v2703_v42 = vsel %vm3707_vm3, %v2685_v10, 0.0  ;;  %v1392_v55 = vadd.s32 %v1391_v25, %v1387_v9  ;;  %v1448_v33 = vsel %vm1447_vm14, %v1446_v58, 0  ;;  %v1444_v41 = vor.u32 8388608, %v1443_v34 }
 0x1d3   :  { %v2719_v37 = vadd.f32 %v2703_v42, %v3380_v23  ;;  %v1312_v1 = vxor.u32 2147483648, %v1311_v21  ;;  %v1450_v15 = vand.u32 31, %v1448_v33  ;;  %v3796_v16 = vand.u32 3, %v1321_v28 }
 0x1d4   :  { %v1393_v54 = vadd.s32 536870912, %v1392_v55  ;;  %v3804_v23 = vshrl.u32 %v1448_v33, 5  ;;  %v1544_v28 = vshrl.u32 %v1543_v5, 23  ;;  %vm1334_vm0 = vcmp.lt.s32.totalorder %v3530_v29, 0 }
 0x1d5   :  { %2735 = vst [vmem:[#allocation6 + $0x8] sm:$0xff] %v2719_v37  ;;  %v1313_v32 = vsel %vm1230_vm10, %v1312_v1, %v1311_v21  ;;  %v1451_v0 = vsub.s32 32, %v1450_v15  ;;  %v1453_v22 = vshll.u32 %v4872_v19, %v1450_v15  ;;  %v1456_v20 = vshll.u32 %v4875_v61, %v1450_v15 }
 0x1d6   :  { %v1316_v6 = vsel %vm3720_vm8, %v3396_v45, %v1313_v32  ;;  %v3802_v4 = vshrl.u32 %v1393_v54, 30  ;;  %v1459_v44 = vshll.u32 %v4862_v2, %v1450_v15  ;;  %v1462_v52 = vshll.u32 %v4864_v17, %v1450_v15 }
 0x1d7   :  { %3034 = vcosq.f32 %v1316_v6  ;;  %v1454_v11 = vshrl.u32 %v4875_v61, %v1451_v0  ;;  %v1457_v49 = vshrl.u32 %v4862_v2, %v1451_v0  ;;  %v1460_v27 = vshrl.u32 %v4864_v17, %v1451_v0 }
 0x1d8   :  { %3036 = vsinq.f32 %v1316_v6  ;;  %v1395_v46 = vshll.u32 %v3802_v4, 30  ;;  %v1463_v50 = vshrl.u32 %v4876_v63, %v1451_v0  ;;  %v1465_v9 = vshll.u32 %v4876_v63, %v1450_v15 }
 0x1d9   :  { %v1455_v57 = vor.u32 %v1454_v11, %v1453_v22  ;;  %v1458_v53 = vor.u32 %v1457_v49, %v1456_v20  ;;  %v1461_v10 = vor.u32 %v1460_v27, %v1459_v44  ;;  %v1466_v34 = vshrl.u32 %v4865_v47, %v1451_v0 }
 0x1da   :  { %v3815_v58 = vsub.s32 %v1392_v55, %v1395_v46  ;;  %vm1327_vm10 = vcmp.eq.s32.totalorder %v3796_v16, 2  ;;  %v1464_v21 = vor.u32 %v1463_v50, %v1462_v52  ;;  %vm1324_vm15 = vcmp.eq.s32.totalorder %v3796_v16, 0 }
 0x1db   :  { %v1467_v42 = vor.u32 %v1466_v34, %v1465_v9  ;;  %v3823_v33 = vshll.u32 %v1444_v41, 8  ;;  %v1540_v55 = vand.u32 2147483647, %v3646_v24  ;;  %vm1323_vm1 = vcmp.lt.s32.totalorder %v3796_v16, 2 }
 0x1dc   :  { %v1398_v25 = vsub.s32 0, %v3815_v58  ;;  %v1452_v37 = vshrl.u32 %v4872_v19, %v1451_v0  ;;  %vm1468_vm2 = vcmp.lt.s32.totalorder %v3804_v23, 1  ;;  %vm1470_vm4 = vcmp.lt.s32.totalorder %v3804_v23, 3 }
 0x1dd   :  { %vm1471_vm5 = vcmp.lt.s32.totalorder %v3804_v23, 4  ;;  %vm1320_vm6 = vweird.f32 %v3396_v45  ;;  %v1476_v15 = vsel %vm1468_vm2, %v1455_v57, %v1458_v53  ;;  %v1480_v41 = vsel %vm1468_vm2, %v1458_v53, %v1461_v10  ;;  %v3888_v45 = vpop.f32.mrb[22].mxu1 }
 0x1de   :  { %v2828_v1 = vmin.u32 %v1398_v25, %v3815_v58  ;;  %v1477_v54 = vsel %vm1471_vm5, %v1464_v21, 920167782  ;;  %v1473_v32 = vsel %vm1471_vm5, %v1461_v10, 2102212464  ;;  %v1481_v5 = vsel %vm1471_vm5, %v1467_v42, 1326507024 }
 0x1df   :  { %v1478_v0 = vsel %vm1470_vm4, %v1461_v10, %v1477_v54  ;;  %v2835_v6 = vadd.s32 4294967169, %v1544_v28  ;;  %v1388_v22 = vadd.s32 %v3751_v36, %v3761_v3  ;;  %v1418_v20 = vsub.s32 4, %v3802_v4 }
 0x1e0   :  { %v1400_v11 = vclz %v2828_v1  ;;  %vm1469_vm7 = vcmp.lt.s32.totalorder %v3804_v23, 2  ;;  %v1472_v46 = vsel %vm1468_vm2, %v1452_v37, %v1455_v57  ;;  %v1482_v27 = vsel %vm1470_vm4, %v1464_v21, %v1481_v5 }
 0x1e1   :  { %v3035_v49 = vpop.eup %3034  ;;  %v1479_v44 = vsel %vm1469_vm7, %v1476_v15, %v1478_v0  ;;  %v1550_v52 = vadd.s32 1, %v2835_v6  ;;  %v1474_v36 = vsel %vm1470_vm4, %v1458_v53, %v1473_v32  ;;  %v1483_v3 = vsel %vm1469_vm7, %v1480_v41, %v1482_v27 }
 0x1e2   :  { %v3037_v50 = vpop.eup %3036  ;;  %v1328_v10 = vxor.u32 2147483648, %v3035_v49  ;;  %v2829_v9 = vadd.s32 4294967294, %v1400_v11  ;;  %v3854_v28 = vmul.u32.u64.low %v3823_v33, %v1483_v3  ;;  %v3855_v57 = vmul.u32.u64.high %v3823_v33, %v1483_v3, %v3854_v28 }
 0x1e3   :  { %v1325_v34 = vxor.u32 2147483648, %v3037_v50  ;;  %vm1551_vm8 = vcmp.gt.s32.totalorder %v1550_v52, 0  ;;  %v3860_v21 = vmul.u32.u64.low %v3823_v33, %v1479_v44  ;;  %v3861_v42 = vmul.u32.u64.high %v3823_v33, %v1479_v44, %v3860_v21 }
 0x1e4   :  { %v1329_v25 = vsel %vm1327_vm10, %v1328_v10, %v3037_v50  ;;  %vm2830_vm9 = vcmp.lt.s32.totalorder %v2829_v9, 0  ;;  %v1419_v1 = vsel %vm1334_vm0, %v1418_v20, %v3802_v4  ;;  %v1475_v15 = vsel %vm1469_vm7, %v1472_v46, %v1474_v36  ;;  %v3886_v46 = vpop.f32.mrb[22].mxu0 }
 0x1e5   :  { %v1326_v53 = vsel %vm1324_vm15, %v3035_v49, %v1325_v34  ;;  %v1403_v37 = vsel %vm2830_vm9, 0, %v2829_v9  ;;  %v1552_v0 = vsel %vm1551_vm8, %v1550_v52, 0  ;;  %v4882_v6 = vand.u32 2147483647, %v3530_v29  ;;  %v3895_v50 = vpop.f32.mrb[23].mxu0 }
 0x1e6   :  { %v1330_v54 = vsel %vm1323_vm1, %v1326_v53, %v1329_v25  ;;  %v1404_v41 = vsub.s32 32, %v1403_v37  ;;  %v1408_v32 = vsub.s32 4294967266, %v1403_v37  ;;  %v1405_v4 = vshll.u32 %v3815_v58, %v1403_v37 }
 0x1e7   :  { %v1331_v5 = vsel %vm1320_vm6, nan, %v1330_v54  ;;  %vm3877_vm11 = vcmp.le.f32.partialorder %v4882_v6, 0.7853982  ;;  %vm1493_vm12 = vc.u32 %v3855_v57, %v3860_v21  ;;  %v1494_v49 = vadd.s32 1, %v3861_v42 }
 0x1e8   :  { %v2686_v16 = vmul.f32 %v1331_v5, %v3392_v39  ;;  %v1406_v23 = vshrl.u32 %v1388_v22, %v1404_v41  ;;  %v1409_v20 = vadd.s32 127, %v1408_v32  ;;  %v1421_v44 = vsel %vm3877_vm11, 0, %v1419_v1  ;;  %v3897_v39 = vpop.f32.mrb[23].mxu1 }
 0x1e9   :  { %v1491_v27 = vmul.u32 %v3823_v33, %v1475_v15  ;;  %v1547_v58 = vand.u32 8388607, %v1540_v55  ;;  %v1554_v52 = vand.u32 31, %v1552_v0  ;;  %v1495_v36 = vsel %vm1493_vm12, %v1494_v49, %v3861_v42 }
 0x1ea   :  { %v2704_v22 = vsel %vm3707_vm3, %v2686_v16, 0.0  ;;  %v1407_v10 = vor.u32 %v1406_v23, %v1405_v4  ;;  %v1410_v9 = vshll.u32 %v1409_v20, 23  ;;  %v3906_v34 = vshrl.u32 %v1552_v0, 5 }
 0x1eb   :  { %v2720_v33 = vadd.f32 %v2704_v22, %v3390_v35  ;;  %v1496_v3 = vadd.s32 %v1495_v36, %v1491_v27  ;;  %v1555_v28 = vsub.s32 32, %v1554_v52  ;;  %v1557_v37 = vshll.u32 %v4872_v19, %v1554_v52 }
 0x1ec   :  { %v1411_v25 = vor.u32 4788187, %v1410_v9  ;;  %v1414_v53 = vcvt.s32.f32 %v1407_v10  ;;  %v1560_v1 = vshll.u32 %v4875_v61, %v1554_v52  ;;  %v1563_v42 = vshll.u32 %v4862_v2, %v1554_v52 }
 0x1ed   :  { %2736 = vst [vmem:[#allocation6 + $0x10] sm:$0xff] %v2720_v33  ;;  %v1497_v15 = vadd.s32 536870912, %v1496_v3  ;;  %v1558_v54 = vshrl.u32 %v4875_v61, %v1555_v28  ;;  %v1561_v41 = vshrl.u32 %v4862_v2, %v1555_v28  ;;  %v1564_v35 = vshrl.u32 %v4864_v17, %v1555_v28 }
 0x1ee   :  { %v1412_v32 = vand.u32 2147483647, %v1411_v25  ;;  %v1566_v0 = vshll.u32 %v4864_v17, %v1554_v52  ;;  %v1567_v5 = vshrl.u32 %v4876_v63, %v1555_v28  ;;  %v1569_v23 = vshll.u32 %v4876_v63, %v1554_v52  ;;  %v941_v52 = vpop.permute.xlu1 %940 }
 0x1ef   :  { %v3916_v6 = vshrl.u32 %v1497_v15, 30  ;;  %v1559_v4 = vor.u32 %v1558_v54, %v1557_v37  ;;  %v1562_v16 = vor.u32 %v1561_v41, %v1560_v1  ;;  %v1565_v49 = vor.u32 %v1564_v35, %v1563_v42 }
 0x1f0   :  { %v1415_v20 = vmul.f32 %v1414_v53, %v1412_v32  ;;  %v1568_v27 = vor.u32 %v1567_v5, %v1566_v0  ;;  %v1570_v22 = vshrl.u32 %v4865_v47, %v1555_v28  ;;  %v1425_v10 = vadd.s32 3, %v1421_v44 }
 0x1f1   :  { %v1499_v9 = vshll.u32 %v3916_v6, 30  ;;  %v1548_v36 = vor.u32 8388608, %v1547_v58  ;;  %vm1572_vm13 = vcmp.lt.s32.totalorder %v3906_v34, 1  ;;  %vm1575_vm14 = vcmp.lt.s32.totalorder %v3906_v34, 4 }
 0x1f2   :  { %v1416_v33 = vxor.u32 2147483648, %v1415_v20  ;;  %v1571_v25 = vor.u32 %v1570_v22, %v1569_v23  ;;  %v1580_v37 = vsel %vm1572_vm13, %v1559_v4, %v1562_v16  ;;  %vm1573_vm10 = vcmp.lt.s32.totalorder %v3906_v34, 2 }
 0x1f3   :  { %v3925_v1 = vsub.s32 %v1496_v3, %v1499_v9  ;;  %vm1574_vm15 = vcmp.lt.s32.totalorder %v3906_v34, 3  ;;  %v1581_v44 = vsel %vm1575_vm14, %v1568_v27, 920167782  ;;  %v1556_v53 = vshrl.u32 %v4872_v19, %v1555_v28 }
 0x1f4   :  { %v1417_v58 = vsel %vm1334_vm0, %v1416_v33, %v1415_v20  ;;  %v1577_v15 = vsel %vm1575_vm14, %v1565_v49, 2102212464  ;;  %v1582_v3 = vsel %vm1574_vm15, %v1565_v49, %v1581_v44  ;;  %v1588_v32 = vshll.u32 %v1548_v36, 8  ;;  %v946_v36 = vpop.permute.xlu0 %945 }
 0x1f5   :  { %v1420_v54 = vsel %vm3877_vm11, %v3530_v29, %v1417_v58  ;;  %v1502_v41 = vsub.s32 0, %v3925_v1  ;;  %v1583_v42 = vsel %vm1573_vm10, %v1580_v37, %v1582_v3  ;;  %v1576_v28 = vsel %vm1572_vm13, %v1556_v53, %v1559_v4 }
 0x1f6   :  { %3038 = vcosq.f32 %v1420_v54  ;;  %v1584_v35 = vsel %vm1572_vm13, %v1562_v16, %v1565_v49  ;;  %v1585_v0 = vsel %vm1575_vm14, %v1571_v25, 1326507024  ;;  %v1578_v5 = vsel %vm1574_vm15, %v1562_v16, %v1577_v15  ;;  %v951_v25 = vpop.permute.xlu1 %950 }
 0x1f7   :  { %3040 = vsinq.f32 %v1420_v54  ;;  %v2832_v11 = vmin.u32 %v1502_v41, %v3925_v1  ;;  %v1586_v23 = vsel %vm1574_vm15, %v1568_v27, %v1585_v0  ;;  %v994_v49 = vmul.f32 %v941_v52, %v3455_v59 }
 0x1f8   :  { %v1587_v20 = vsel %vm1573_vm10, %v1584_v35, %v1586_v23  ;;  %v3957_v22 = vmul.u32.u64.low %v1588_v32, %v1583_v42  ;;  %v3958_v4 = vmul.u32.u64.high %v1588_v32, %v1583_v42, %v3957_v22  ;;  %v1426_v9 = vand.u32 3, %v1425_v10 }
 0x1f9   :  { %v1504_v33 = vclz %v2832_v11  ;;  %v3962_v37 = vmul.u32.u64.low %v1588_v32, %v1587_v20  ;;  %v3963_v44 = vmul.u32.u64.high %v1588_v32, %v1587_v20, %v3962_v37  ;;  %v3966_v16 = vadd.f32 %v994_v49, %v3467_v13 }
 0x1fa   :  { %v995_v27 = vmul.f32 %v946_v36, %v3483_v38  ;;  %v1522_v53 = vsub.s32 4, %v3916_v6  ;;  %v1579_v15 = vsel %vm1573_vm10, %v1576_v28, %v1578_v5  ;;  %v996_v59 = vmul.f32 %v951_v25, %v3549_v51 }
 0x1fb   :  { %v2833_v58 = vadd.s32 4294967294, %v1504_v33  ;;  %vm3975_vm0 = vcmp.le.f32.partialorder %v1436_v40, 0.7853982  ;;  %vm1438_vm1 = vcmp.lt.s32.totalorder %v3624_v12, 0  ;;  %v1598_v13 = vadd.s32 1, %v3958_v4 }
 0x1fc   :  { %v1647_v38 = vand.u32 2139095040, %v3966_v16  ;;  %vm1427_vm2 = vcmp.lt.s32.totalorder %v1426_v9, 2  ;;  %v3983_v52 = vadd.f32 %v995_v27, %v3491_v48  ;;  %v3986_v34 = vadd.f32 %v996_v59, %v3555_v14  ;;  %v4004_v59 = vpop.f32.mrb[24].mxu0 }
 0x1fd   :  { %vm2834_vm4 = vcmp.lt.s32.totalorder %v2833_v58, 0  ;;  %v1492_v51 = vadd.s32 %v3860_v21, %v3855_v57  ;;  %v1595_v3 = vmul.u32 %v1588_v32, %v1579_v15  ;;  %vm1597_vm5 = vc.u32 %v3963_v44, %v3957_v22 }
 0x1fe   :  { %v1507_v40 = vsel %vm2834_vm4, 0, %v2833_v58  ;;  %v1523_v42 = vsel %vm1438_vm1, %v1522_v53, %v3916_v6  ;;  %v1599_v48 = vsel %vm1597_vm5, %v1598_v13, %v3958_v4  ;;  %vm1431_vm6 = vcmp.eq.s32.totalorder %v1426_v9, 2  ;;  %v4006_v13 = vpop.f32.mrb[24].mxu1 }
 0x1ff   :  { %v1508_v54 = vsub.s32 32, %v1507_v40  ;;  %v1512_v41 = vsub.s32 4294967266, %v1507_v40  ;;  %v1600_v14 = vadd.s32 %v1599_v48, %v1595_v3  ;;  %v1644_v35 = vand.u32 2147483647, %v3966_v16  ;;  %v4009_v3 = vpop.f32.mrb[25].mxu0 }
 0x200   :  { %v3039_v28 = vpop.eup %3038  ;;  %v1648_v0 = vshrl.u32 %v1647_v38, 23  ;;  %v1509_v32 = vshll.u32 %v3925_v1, %v1507_v40  ;;  %v1525_v20 = vsel %vm3975_vm0, 0, %v1523_v42  ;;  %vm1428_vm7 = vcmp.eq.s32.totalorder %v1426_v9, 0 }
 0x201   :  { %v3041_v57 = vpop.eup %3040  ;;  %v1432_v21 = vxor.u32 2147483648, %v3039_v28  ;;  %v1510_v11 = vshrl.u32 %v1492_v51, %v1508_v54  ;;  %v1513_v5 = vadd.s32 127, %v1512_v41  ;;  %v1601_v49 = vadd.s32 536870912, %v1600_v14  ;;  %v4011_v54 = vpop.f32.mrb[25].mxu1 }
 0x202   :  { %v1429_v23 = vxor.u32 2147483648, %v3041_v57  ;;  %v2839_v6 = vadd.s32 4294967169, %v1648_v0  ;;  %v1651_v27 = vand.u32 8388607, %v1644_v35  ;;  %vm1424_vm8 = vweird.f32 %v3530_v29 }
 0x203   :  { %v1433_v4 = vsel %vm1431_vm6, %v1432_v21, %v3041_v57  ;;  %v1511_v36 = vor.u32 %v1510_v11, %v1509_v32  ;;  %v1514_v33 = vshll.u32 %v1513_v5, 23  ;;  %v1602_v37 = vshrl.u32 %v1601_v49, 30 }
 0x204   :  { %v1430_v25 = vsel %vm1428_vm7, %v3039_v28, %v1429_v23  ;;  %v1654_v58 = vadd.s32 1, %v2839_v6  ;;  %v1529_v15 = vadd.s32 3, %v1525_v20  ;;  %v1751_v40 = vand.u32 2139095040, %v3983_v52 }
 0x205   :  { %v1434_v1 = vsel %vm1427_vm2, %v1430_v25, %v1433_v4  ;;  %v1515_v53 = vor.u32 4788187, %v1514_v33  ;;  %v1603_v51 = vshll.u32 %v1602_v37, 30  ;;  %v1518_v9 = vcvt.s32.f32 %v1511_v36 }
 0x206   :  { %v1435_v38 = vsel %vm1424_vm8, nan, %v1434_v1  ;;  %vm1655_vm9 = vcmp.gt.s32.totalorder %v1654_v58, 0  ;;  %v1626_v28 = vsub.s32 4, %v1602_v37  ;;  %v1652_v0 = vor.u32 8388608, %v1651_v27 }
 0x207   :  { %v2687_v41 = vmul.f32 %v1435_v38, %v3407_v31  ;;  %v1516_v29 = vand.u32 2147483647, %v1515_v53  ;;  %v1656_v42 = vsel %vm1655_vm9, %v1654_v58, 0  ;;  %v4014_v48 = vsub.s32 %v1600_v14, %v1603_v51 }
 0x208   :  { %v1658_v57 = vand.u32 31, %v1656_v42  ;;  %vm1542_vm11 = vcmp.lt.s32.totalorder %v3646_v24, 0  ;;  %v1752_v31 = vshrl.u32 %v1751_v40, 23  ;;  %v4021_v49 = vand.u32 3, %v1529_v15 }
 0x209   :  { %v2705_v21 = vsel %vm3707_vm3, %v2687_v41, 0.0  ;;  %v1519_v32 = vmul.f32 %v1518_v9, %v1516_v29  ;;  %v1606_v5 = vsub.s32 0, %v4014_v48  ;;  %v1596_v14 = vadd.s32 %v3957_v22, %v3963_v44 }
 0x20a   :  { %v2721_v11 = vadd.f32 %v2705_v21, %v3402_v8  ;;  %v1659_v23 = vsub.s32 32, %v1658_v57  ;;  %v1748_v6 = vand.u32 2147483647, %v3983_v52  ;;  %v4029_v36 = vsel %vm1542_vm11, %v1626_v28, %v1602_v37 }
 0x20b   :  { %v1520_v20 = vxor.u32 2147483648, %v1519_v32  ;;  %v2836_v4 = vmin.u32 %v1606_v5, %v4014_v48  ;;  %v4031_v8 = vshrl.u32 %v1656_v42, 5  ;;  %v4033_v33 = vshll.u32 %v1652_v0, 8 }
 0x20c   :  { %2737 = vst [vmem:[#allocation6 + $0x18] sm:$0xff] %v2721_v11  ;;  %v1662_v27 = vshrl.u32 %v4875_v61, %v1659_v23  ;;  %v1665_v22 = vshrl.u32 %v4862_v2, %v1659_v23  ;;  %v1668_v44 = vshrl.u32 %v4864_v17, %v1659_v23  ;;  %v1667_v37 = vshll.u32 %v4862_v2, %v1658_v57 }
 0x20d   :  { %v1521_v25 = vsel %vm1438_vm1, %v1520_v20, %v1519_v32  ;;  %v1608_v1 = vclz %v2836_v4  ;;  %v2843_v53 = vadd.s32 4294967169, %v1752_v31  ;;  %v1661_v15 = vshll.u32 %v4872_v19, %v1658_v57 }
 0x20e   :  { %v1524_v58 = vsel %vm3975_vm0, %v3624_v12, %v1521_v25  ;;  %v1664_v38 = vshll.u32 %v4875_v61, %v1658_v57  ;;  %v1670_v51 = vshll.u32 %v4864_v17, %v1658_v57  ;;  %v1669_v41 = vor.u32 %v1668_v44, %v1667_v37 }
 0x20f   :  { %3042 = vcosq.f32 %v1524_v58  ;;  %v2837_v40 = vadd.s32 4294967294, %v1608_v1  ;;  %v1671_v29 = vshrl.u32 %v4876_v63, %v1659_v23  ;;  %vm4050_vm12 = vcmp.le.f32.partialorder %v1540_v55, 0.7853982 }
 0x210   :  { %3044 = vsinq.f32 %v1524_v58  ;;  %v1663_v9 = vor.u32 %v1662_v27, %v1661_v15  ;;  %v1666_v42 = vor.u32 %v1665_v22, %v1664_v38  ;;  %v1673_v28 = vshll.u32 %v4876_v63, %v1658_v57 }
 0x211   :  { %v1674_v0 = vshrl.u32 %v4865_v47, %v1659_v23  ;;  %vm2838_vm13 = vcmp.lt.s32.totalorder %v2837_v40, 0  ;;  %v1660_v21 = vshrl.u32 %v4872_v19, %v1659_v23  ;;  %v1672_v32 = vor.u32 %v1671_v29, %v1670_v51 }
 0x212   :  { %vm1676_vm14 = vcmp.lt.s32.totalorder %v4031_v8, 1  ;;  %v1611_v11 = vsel %vm2838_vm13, 0, %v2837_v40  ;;  %vm1677_vm10 = vcmp.lt.s32.totalorder %v4031_v8, 2  ;;  %vm1679_vm15 = vcmp.lt.s32.totalorder %v4031_v8, 4 }
 0x213   :  { %v1675_v5 = vor.u32 %v1674_v0, %v1673_v28  ;;  %vm1532_vm0 = vcmp.eq.s32.totalorder %v4021_v49, 0  ;;  %v1612_v55 = vsub.s32 32, %v1611_v11  ;;  %v1616_v31 = vsub.s32 4294967266, %v1611_v11 }
 0x214   :  { %vm1678_vm1 = vcmp.lt.s32.totalorder %v4031_v8, 3  ;;  %v1681_v57 = vsel %vm1679_vm15, %v1669_v41, 2102212464  ;;  %v1613_v20 = vshll.u32 %v4014_v48, %v1611_v11  ;;  %v1684_v23 = vsel %vm1676_vm14, %v1663_v9, %v1666_v42 }
 0x215   :  { %v1685_v4 = vsel %vm1679_vm15, %v1672_v32, 920167782  ;;  %v1688_v25 = vsel %vm1676_vm14, %v1666_v42, %v1669_v41  ;;  %vm1528_vm2 = vweird.f32 %v3624_v12  ;;  %v1614_v27 = vshrl.u32 %v1596_v14, %v1612_v55 }
 0x216   :  { %v1617_v22 = vadd.s32 127, %v1616_v31  ;;  %v1686_v44 = vsel %vm1678_vm1, %v1669_v41, %v1685_v4  ;;  %v1689_v58 = vsel %vm1679_vm15, %v1675_v5, 1326507024  ;;  %v1680_v1 = vsel %vm1676_vm14, %v1660_v21, %v1663_v9  ;;  %v4091_v4 = vpop.f32.mrb[26].mxu0 }
 0x217   :  { %v1682_v37 = vsel %vm1678_vm1, %v1666_v42, %v1681_v57  ;;  %v1687_v48 = vsel %vm1677_vm10, %v1684_v23, %v1686_v44  ;;  %v1690_v15 = vsel %vm1678_vm1, %v1672_v32, %v1689_v58  ;;  %v1615_v38 = vor.u32 %v1614_v27, %v1613_v20  ;;  %v4101_v27 = vpop.f32.mrb[27].mxu0 }
 0x218   :  { %v1618_v51 = vshll.u32 %v1617_v22, 23  ;;  %v1691_v40 = vsel %vm1677_vm10, %v1688_v25, %v1690_v15  ;;  %v1758_v29 = vadd.s32 1, %v2843_v53  ;;  %vm1535_vm4 = vcmp.eq.s32.totalorder %v4021_v49, 2  ;;  %v4093_v25 = vpop.f32.mrb[26].mxu1 }
 0x219   :  { %v3043_v28 = vpop.eup %3042  ;;  %v4075_v14 = vmul.u32.u64.low %v4033_v33, %v1691_v40  ;;  %v4076_v0 = vmul.u32.u64.high %v4033_v33, %v1691_v40, %v4075_v14  ;;  %v4079_v41 = vmul.u32.u64.low %v4033_v33, %v1687_v48  ;;  %v4080_v11 = vmul.u32.u64.high %v4033_v33, %v1687_v48, %v4079_v41  ;;  %v4103_v22 = vpop.f32.mrb[27].mxu1 }
 0x21a   :  { %v3045_v9 = vpop.eup %3044  ;;  %v1536_v42 = vxor.u32 2147483648, %v3043_v28  ;;  %v1619_v21 = vor.u32 4788187, %v1618_v51  ;;  %v1629_v32 = vsel %vm4050_vm12, 0, %v4029_v36  ;;  %v1683_v5 = vsel %vm1677_vm10, %v1680_v1, %v1682_v37 }
 0x21b   :  { %v1533_v53 = vxor.u32 2147483648, %v3045_v9  ;;  %v1755_v55 = vand.u32 8388607, %v1748_v6  ;;  %vm1759_vm5 = vcmp.gt.s32.totalorder %v1758_v29, 0  ;;  %v1622_v20 = vcvt.s32.f32 %v1615_v38 }
 0x21c   :  { %v1537_v31 = vsel %vm1535_vm4, %v1536_v42, %v3045_v9  ;;  %v1620_v57 = vand.u32 2147483647, %v1619_v21  ;;  %v1760_v23 = vsel %vm1759_vm5, %v1758_v29, 0  ;;  %vm1531_vm6 = vcmp.lt.s32.totalorder %v4021_v49, 2 }
 0x21d   :  { %v1534_v36 = vsel %vm1532_vm0, %v3043_v28, %v1533_v53  ;;  %vm1701_vm7 = vc.u32 %v4076_v0, %v4079_v41  ;;  %v1702_v8 = vadd.s32 1, %v4080_v11  ;;  %v1699_v1 = vmul.u32 %v4033_v33, %v1683_v5 }
 0x21e   :  { %v1538_v44 = vsel %vm1531_vm6, %v1534_v36, %v1537_v31  ;;  %v1623_v58 = vmul.f32 %v1622_v20, %v1620_v57  ;;  %v1762_v37 = vand.u32 31, %v1760_v23  ;;  %v1633_v15 = vadd.s32 3, %v1629_v32  ;;  %v4889_v32 = vld [vmem:[#allocation9_spill] sm:$0xff] }
 0x21f   :  { %v1539_v48 = vsel %vm1528_vm2, nan, %v1538_v44  ;;  %v1703_v49 = vsel %vm1701_vm7, %v1702_v8, %v4080_v11  ;;  %v1756_v38 = vor.u32 8388608, %v1755_v55  ;;  %v4110_v14 = vshrl.u32 %v1760_v23, 5  ;;  %v956_v44 = vpop.permute.xlu0 %955 }
 0x220   :  { %v2688_v51 = vmul.f32 %v1539_v48, %v3423_v60  ;;  %v1624_v40 = vxor.u32 2147483648, %v1623_v58  ;;  %v1704_v29 = vadd.s32 %v1703_v49, %v1699_v1  ;;  %v1763_v28 = vsub.s32 32, %v1762_v37  ;;  %v961_v49 = vpop.permute.xlu1 %960 }
 0x221   :  { %v1765_v9 = vshll.u32 %v4872_v19, %v1762_v37  ;;  %v1768_v42 = vshll.u32 %v4875_v61, %v1762_v37  ;;  %v1771_v33 = vshll.u32 %v4862_v2, %v1762_v37  ;;  %v1774_v60 = vshll.u32 %v4864_v17, %v1762_v37 }
 0x222   :  { %v2706_v12 = vsel %vm3707_vm3, %v2688_v51, 0.0  ;;  %v1625_v11 = vsel %vm1542_vm11, %v1624_v40, %v1623_v58  ;;  %v1705_v21 = vadd.s32 536870912, %v1704_v29  ;;  %v1766_v55 = vshrl.u32 %v4875_v61, %v1763_v28 }
 0x223   :  { %v2722_v53 = vadd.f32 %v2706_v12, %v4889_v32  ;;  %v1628_v5 = vsel %vm4050_vm12, %v3646_v24, %v1625_v11  ;;  %v1769_v31 = vshrl.u32 %v4862_v2, %v1763_v28  ;;  %v1772_v20 = vshrl.u32 %v4864_v17, %v1763_v28 }
 0x224   :  { %3046 = vcosq.f32 %v1628_v5  ;;  %v4126_v57 = vshrl.u32 %v1705_v21, 30  ;;  %v1775_v23 = vshrl.u32 %v4876_v63, %v1763_v28  ;;  %v1767_v36 = vor.u32 %v1766_v55, %v1765_v9 }
 0x225   :  { %2738 = vst [vmem:[#allocation6 + $0x20] sm:$0xff] %v2722_v53  ;;  %3048 = vsinq.f32 %v1628_v5  ;;  %v1770_v8 = vor.u32 %v1769_v31, %v1768_v42  ;;  %v1634_v58 = vand.u32 3, %v1633_v15  ;;  %v1773_v1 = vor.u32 %v1772_v20, %v1771_v33 }
 0x226   :  { %v1707_v10 = vshll.u32 %v4126_v57, 30  ;;  %v1776_v48 = vor.u32 %v1775_v23, %v1774_v60  ;;  %v1777_v51 = vshll.u32 %v4876_v63, %v1762_v37  ;;  %v1778_v40 = vshrl.u32 %v4865_v47, %v1763_v28 }
 0x227   :  { %v997_v12 = vmul.f32 %v956_v44, %v3650_v62  ;;  %vm1780_vm8 = vcmp.lt.s32.totalorder %v4110_v14, 1  ;;  %v4137_v21 = vshll.u32 %v1756_v38, 8  ;;  %v998_v9 = vmul.f32 %v961_v49, %v3784_v7 }
 0x228   :  { %v4134_v11 = vsub.s32 %v1704_v29, %v1707_v10  ;;  %vm1646_vm9 = vcmp.lt.s32.totalorder %v3966_v16, 0  ;;  %v1764_v15 = vshrl.u32 %v4872_v19, %v1763_v28  ;;  %v1779_v42 = vor.u32 %v1778_v40, %v1777_v51 }
 0x229   :  { %vm1783_vm11 = vcmp.lt.s32.totalorder %v4110_v14, 4  ;;  %v1788_v37 = vsel %vm1780_vm8, %v1767_v36, %v1770_v8  ;;  %vm1635_vm12 = vcmp.lt.s32.totalorder %v1634_v58, 2  ;;  %vm1782_vm13 = vcmp.lt.s32.totalorder %v4110_v14, 3 }
 0x22a   :  { %v1710_v62 = vsub.s32 0, %v4134_v11  ;;  %v1785_v29 = vsel %vm1783_vm11, %v1773_v1, 2102212464  ;;  %v1789_v38 = vsel %vm1783_vm11, %v1776_v48, 920167782  ;;  %vm1632_vm14 = vweird.f32 %v3646_v24 }
 0x22b   :  { %vm1781_vm10 = vcmp.lt.s32.totalorder %v4110_v14, 2  ;;  %v1790_v7 = vsel %vm1782_vm13, %v1773_v1, %v1789_v38  ;;  %v1792_v28 = vsel %vm1780_vm8, %v1770_v8, %v1773_v1  ;;  %v1793_v33 = vsel %vm1783_vm11, %v1779_v42, 1326507024 }
 0x22c   :  { %vm4153_vm15 = vcmp.le.f32.partialorder %v1644_v35, 0.7853982  ;;  %v2840_v32 = vmin.u32 %v1710_v62, %v4134_v11  ;;  %v1784_v53 = vsel %vm1780_vm8, %v1764_v15, %v1767_v36  ;;  %v1791_v5 = vsel %vm1781_vm10, %v1788_v37, %v1790_v7 }
 0x22d   :  { %v1794_v55 = vsel %vm1782_vm13, %v1776_v48, %v1793_v33  ;;  %v1786_v31 = vsel %vm1782_vm13, %v1770_v8, %v1785_v29  ;;  %v4165_v23 = vmul.u32.u64.low %v4137_v21, %v1791_v5  ;;  %v4166_v44 = vmul.u32.u64.high %v4137_v21, %v1791_v5, %v4165_v23 }
 0x22e   :  { %v1795_v20 = vsel %vm1781_vm10, %v1792_v28, %v1794_v55  ;;  %v3047_v35 = vpop.eup %3046  ;;  %vm1636_vm0 = vcmp.eq.s32.totalorder %v1634_v58, 0  ;;  %vm1639_vm1 = vcmp.eq.s32.totalorder %v1634_v58, 2  ;;  %v1712_v10 = vclz %v2840_v32 }
 0x22f   :  { %v1730_v1 = vsub.s32 4, %v4126_v57  ;;  %v3049_v36 = vpop.eup %3048  ;;  %v1640_v49 = vxor.u32 2147483648, %v3047_v35  ;;  %v4171_v51 = vmul.u32.u64.low %v4137_v21, %v1795_v20  ;;  %v4172_v48 = vmul.u32.u64.high %v4137_v21, %v1795_v20, %v4171_v51 }
 0x230   :  { %v1855_v8 = vand.u32 2139095040, %v3986_v34  ;;  %v1637_v40 = vxor.u32 2147483648, %v3049_v36  ;;  %v2841_v15 = vadd.s32 4294967294, %v1712_v10  ;;  %v1787_v42 = vsel %vm1781_vm10, %v1784_v53, %v1786_v31 }
 0x231   :  { %v4853_v37 = vand.u32 2147483647, %v3986_v34  ;;  %v1641_v62 = vsel %vm1639_vm1, %v1640_v49, %v3049_v36  ;;  %v1806_v29 = vadd.s32 1, %v4166_v44  ;;  %v4180_v7 = vadd.f32 %v997_v12, %v3662_v56 }
 0x232   :  { %v1856_v38 = vshrl.u32 %v1855_v8, 23  ;;  %v1638_v28 = vsel %vm1636_vm0, %v3047_v35, %v1637_v40  ;;  %vm2842_vm2 = vcmp.lt.s32.totalorder %v2841_v15, 0  ;;  %v1731_v33 = vsel %vm1646_vm9, %v1730_v1, %v4126_v57  ;;  %v4892_v57 = vld [vmem:[#allocation11_spill] sm:$0xff]  ;;  %v4893_v8 = vld [vmem:[#allocation10_spill] sm:$0xff] }
 0x233   :  { %v4187_v32 = vadd.f32 %v998_v9, %v3789_v26  ;;  %v1642_v14 = vsel %vm1635_vm12, %v1638_v28, %v1641_v62  ;;  %v1700_v53 = vadd.s32 %v4079_v41, %v4076_v0  ;;  %v1715_v5 = vsel %vm2842_vm2, 0, %v2841_v15  ;;  %v4201_v0 = vpop.f32.mrb[28].mxu0  ;;  %v4203_v41 = vpop.f32.mrb[28].mxu1 }
 0x234   :  { %vm1805_vm4 = vc.u32 %v4172_v48, %v4165_v23  ;;  %v1643_v56 = vsel %vm1632_vm14, nan, %v1642_v14  ;;  %v1716_v12 = vsub.s32 32, %v1715_v5  ;;  %v1720_v55 = vsub.s32 4294967266, %v1715_v5  ;;  %v4206_v36 = vpop.f32.mrb[29].mxu0 }
 0x235   :  { %v1803_v31 = vmul.u32 %v4137_v21, %v1787_v42  ;;  %v2689_v20 = vmul.f32 %v1643_v56, %v4892_v57  ;;  %v1733_v26 = vsel %vm4153_vm15, 0, %v1731_v33  ;;  %v1807_v58 = vsel %vm1805_vm4, %v1806_v29, %v4166_v44  ;;  %v4208_v21 = vpop.f32.mrb[29].mxu1 }
 0x236   :  { %v2847_v9 = vadd.s32 4294967169, %v1856_v38  ;;  %v1717_v35 = vshll.u32 %v4134_v11, %v1715_v5  ;;  %v1718_v24 = vshrl.u32 %v1700_v53, %v1716_v12  ;;  %v1721_v10 = vadd.s32 127, %v1720_v55 }
 0x237   :  { %v1808_v1 = vadd.s32 %v1807_v58, %v1803_v31  ;;  %v2707_v49 = vsel %vm3707_vm3, %v2689_v20, 0.0  ;;  %v1737_v62 = vadd.s32 3, %v1733_v26  ;;  %v1859_v11 = vand.u32 8388607, %v4853_v37 }
 0x238   :  { %v1862_v51 = vadd.s32 1, %v2847_v9  ;;  %v2723_v44 = vadd.f32 %v2707_v49, %v4893_v8  ;;  %v1719_v40 = vor.u32 %v1718_v24, %v1717_v35  ;;  %v1722_v15 = vshll.u32 %v1721_v10, 23 }
 0x239   :  { %v1809_v42 = vadd.s32 536870912, %v1808_v1  ;;  %v1959_v33 = vand.u32 2139095040, %v4180_v7  ;;  %vm1750_vm6 = vcmp.lt.s32.totalorder %v3983_v52, 0  ;;  %v4217_v12 = vand.u32 3, %v1737_v62 }
 0x23a   :  { %vm1863_vm5 = vcmp.gt.s32.totalorder %v1862_v51, 0  ;;  %2739 = vst [vmem:[#allocation6 + $0x28] sm:$0xff] %v2723_v44  ;;  %v1723_v29 = vor.u32 4788187, %v1722_v15  ;;  %v1726_v5 = vcvt.s32.f32 %v1719_v40  ;;  %v1804_v55 = vadd.s32 %v4165_v23, %v4172_v48 }
 0x23b   :  { %v1810_v38 = vshrl.u32 %v1809_v42, 30  ;;  %v1864_v28 = vsel %vm1863_vm5, %v1862_v51, 0  ;;  %v1860_v31 = vor.u32 8388608, %v1859_v11  ;;  %v1960_v9 = vshrl.u32 %v1959_v33, 23 }
 0x23c   :  { %v1866_v14 = vand.u32 31, %v1864_v28  ;;  %v1724_v53 = vand.u32 2147483647, %v1723_v29  ;;  %v1865_v58 = vshrl.u32 %v1864_v28, 5  ;;  %vm1736_vm13 = vweird.f32 %v3966_v16 }
 0x23d   :  { %v1811_v56 = vshll.u32 %v1810_v38, 30  ;;  %v1834_v35 = vsub.s32 4, %v1810_v38  ;;  %vm1739_vm14 = vcmp.lt.s32.totalorder %v4217_v12, 2  ;;  %vm1743_vm10 = vcmp.eq.s32.totalorder %v4217_v12, 2 }
 0x23e   :  { %v1867_v57 = vsub.s32 32, %v1866_v14  ;;  %v1727_v20 = vmul.f32 %v1726_v5, %v1724_v53  ;;  %v1869_v24 = vshll.u32 %v4872_v19, %v1866_v14  ;;  %v1872_v44 = vshll.u32 %v4875_v61, %v1866_v14 }
 0x23f   :  { %v4221_v26 = vsub.s32 %v1808_v1, %v1811_v56  ;;  %v1875_v1 = vshll.u32 %v4862_v2, %v1866_v14  ;;  %v1878_v40 = vshll.u32 %v4864_v17, %v1866_v14  ;;  %v1881_v29 = vshll.u32 %v4876_v63, %v1866_v14 }
 0x240   :  { %v1870_v10 = vshrl.u32 %v4875_v61, %v1867_v57  ;;  %v1873_v49 = vshrl.u32 %v4862_v2, %v1867_v57  ;;  %v1728_v51 = vxor.u32 2147483648, %v1727_v20  ;;  %v1876_v23 = vshrl.u32 %v4864_v17, %v1867_v57 }
 0x241   :  { %v1814_v8 = vsub.s32 0, %v4221_v26  ;;  %v1879_v15 = vshrl.u32 %v4876_v63, %v1867_v57  ;;  %v1882_v5 = vshrl.u32 %v4865_v47, %v1867_v57  ;;  %vm1884_vm7 = vcmp.lt.s32.totalorder %v1865_v58, 1 }
 0x242   :  { %v1871_v48 = vor.u32 %v1870_v10, %v1869_v24  ;;  %v1729_v42 = vsel %vm1646_vm9, %v1728_v51, %v1727_v20  ;;  %v1874_v11 = vor.u32 %v1873_v49, %v1872_v44  ;;  %v1877_v33 = vor.u32 %v1876_v23, %v1875_v1 }
 0x243   :  { %v2844_v62 = vmin.u32 %v1814_v8, %v4221_v26  ;;  %v1732_v28 = vsel %vm4153_vm15, %v3966_v16, %v1729_v42  ;;  %v1880_v53 = vor.u32 %v1879_v15, %v1878_v40  ;;  %v1900_v24 = vshll.u32 %v1860_v31, 8 }
 0x244   :  { %3050 = vcosq.f32 %v1732_v28  ;;  %v2851_v10 = vadd.s32 4294967169, %v1960_v9  ;;  %v1835_v20 = vsel %vm1750_vm6, %v1834_v35, %v1810_v38  ;;  %v1868_v49 = vshrl.u32 %v4872_v19, %v1867_v57 }
 0x245   :  { %v1816_v56 = vclz %v2844_v62  ;;  %3052 = vsinq.f32 %v1732_v28  ;;  %v1883_v51 = vor.u32 %v1882_v5, %v1881_v29  ;;  %vm1886_vm8 = vcmp.lt.s32.totalorder %v1865_v58, 3 }
 0x246   :  { %vm1887_vm9 = vcmp.lt.s32.totalorder %v1865_v58, 4  ;;  %v1892_v8 = vsel %vm1884_vm7, %v1871_v48, %v1874_v11  ;;  %v1896_v23 = vsel %vm1884_vm7, %v1874_v11, %v1877_v33  ;;  %vm1885_vm12 = vcmp.lt.s32.totalorder %v1865_v58, 2 }
 0x247   :  { %v2845_v14 = vadd.s32 4294967294, %v1816_v56  ;;  %v1889_v60 = vsel %vm1887_vm9, %v1877_v33, 2102212464  ;;  %v1893_v44 = vsel %vm1887_vm9, %v1880_v53, 920167782  ;;  %v1888_v40 = vsel %vm1884_vm7, %v1868_v49, %v1871_v48 }
 0x248   :  { %v1894_v31 = vsel %vm1886_vm8, %v1877_v33, %v1893_v44  ;;  %v1897_v9 = vsel %vm1887_vm9, %v1883_v51, 1326507024  ;;  %v1890_v42 = vsel %vm1886_vm8, %v1874_v11, %v1889_v60  ;;  %vm4261_vm15 = vcmp.le.f32.partialorder %v1748_v6, 0.7853982 }
 0x249   :  { %vm2846_vm11 = vcmp.lt.s32.totalorder %v2845_v14, 0  ;;  %v1895_v38 = vsel %vm1885_vm12, %v1892_v8, %v1894_v31  ;;  %v1898_v57 = vsel %vm1886_vm8, %v1880_v53, %v1897_v9  ;;  %v1966_v53 = vadd.s32 1, %v2851_v10 }
 0x24a   :  { %v1819_v1 = vsel %vm2846_vm11, 0, %v2845_v14  ;;  %v1899_v62 = vsel %vm1885_vm12, %v1896_v23, %v1898_v57  ;;  %v4252_v5 = vmul.u32.u64.low %v1900_v24, %v1895_v38  ;;  %v4253_v33 = vmul.u32.u64.high %v1900_v24, %v1895_v38, %v4252_v5 }
 0x24b   :  { %v1820_v35 = vsub.s32 32, %v1819_v1  ;;  %v1824_v15 = vsub.s32 4294967266, %v1819_v1  ;;  %v4249_v29 = vmul.u32.u64.low %v1900_v24, %v1899_v62  ;;  %v4250_v28 = vmul.u32.u64.high %v1900_v24, %v1899_v62, %v4249_v29  ;;  %v4278_v62 = vpop.f32.mrb[30].mxu1 }
 0x24c   :  { %v1821_v48 = vshll.u32 %v4221_v26, %v1819_v1  ;;  %v1891_v51 = vsel %vm1885_vm12, %v1888_v40, %v1890_v42  ;;  %v4852_v26 = vand.u32 2147483647, %v4180_v7  ;;  %vm1967_vm0 = vcmp.gt.s32.totalorder %v1966_v53, 0  ;;  %v4276_v42 = vpop.f32.mrb[30].mxu0 }
 0x24d   :  { %v1822_v56 = vshrl.u32 %v1804_v55, %v1820_v35  ;;  %v1825_v49 = vadd.s32 127, %v1824_v15  ;;  %v1837_v44 = vsel %vm4261_vm15, 0, %v1835_v20  ;;  %vm1909_vm1 = vc.u32 %v4250_v28, %v4252_v5  ;;  %4896 = vst [vmem:[#allocation9_spill] sm:$0xff] %v4276_v42 }
 0x24e   :  { %v3051_v14 = vpop.eup %3050  ;;  %v1910_v6 = vadd.s32 1, %v4253_v33  ;;  %v1907_v58 = vmul.u32 %v1900_v24, %v1891_v51  ;;  %v1968_v9 = vsel %vm1967_vm0, %v1966_v53, 0  ;;  %vm1740_vm2 = vcmp.eq.s32.totalorder %v4217_v12, 0 }
 0x24f   :  { %v1823_v60 = vor.u32 %v1822_v56, %v1821_v48  ;;  %v1826_v8 = vshll.u32 %v1825_v49, 23  ;;  %v3053_v55 = vpop.eup %3052  ;;  %v1744_v10 = vxor.u32 2147483648, %v3051_v14  ;;  %v1970_v38 = vand.u32 31, %v1968_v9  ;;  %v4284_v49 = vpop.f32.mrb[31].mxu0 }
 0x250   :  { %v1741_v23 = vxor.u32 2147483648, %v3053_v55  ;;  %v1911_v40 = vsel %vm1909_vm1, %v1910_v6, %v4253_v33  ;;  %v1841_v29 = vadd.s32 3, %v1837_v44  ;;  %v1963_v48 = vand.u32 8388607, %v4852_v26  ;;  %v4286_v33 = vpop.f32.mrb[31].mxu1 }
 0x251   :  { %v1827_v31 = vor.u32 4788187, %v1826_v8  ;;  %v1745_v1 = vsel %vm1743_vm10, %v1744_v10, %v3053_v55  ;;  %v1830_v20 = vcvt.s32.f32 %v1823_v60  ;;  %v1912_v15 = vadd.s32 %v1911_v40, %v1907_v58  ;;  %v4897_v8 = vld [vmem:[#allocation13_spill] sm:$0xff] }
 0x252   :  { %v1742_v57 = vsel %vm1740_vm2, %v3051_v14, %v1741_v23  ;;  %v1971_v56 = vsub.s32 32, %v1970_v38  ;;  %v1969_v60 = vshrl.u32 %v1968_v9, 5  ;;  %v1973_v12 = vshll.u32 %v4872_v19, %v1970_v38 }
 0x253   :  { %v1828_v35 = vand.u32 2147483647, %v1827_v31  ;;  %v1746_v24 = vsel %vm1739_vm14, %v1742_v57, %v1745_v1  ;;  %v1913_v14 = vadd.s32 536870912, %v1912_v15  ;;  %v1976_v31 = vshll.u32 %v4875_v61, %v1970_v38  ;;  %v4898_v57 = vld [vmem:[#allocation12_spill] sm:$0xff] }
 0x254   :  { %v1747_v53 = vsel %vm1736_vm13, nan, %v1746_v24  ;;  %v1974_v10 = vshrl.u32 %v4875_v61, %v1971_v56  ;;  %v1977_v44 = vshrl.u32 %v4862_v2, %v1971_v56  ;;  %v1980_v58 = vshrl.u32 %v4864_v17, %v1971_v56 }
 0x255   :  { %v1831_v51 = vmul.f32 %v1830_v20, %v1828_v35  ;;  %v2690_v55 = vmul.f32 %v1747_v53, %v4897_v8  ;;  %v4294_v23 = vshrl.u32 %v1913_v14, 30  ;;  %v1979_v9 = vshll.u32 %v4862_v2, %v1970_v38 }
 0x256   :  { %v1982_v1 = vshll.u32 %v4864_v17, %v1970_v38  ;;  %v1983_v40 = vshrl.u32 %v4876_v63, %v1971_v56  ;;  %v1975_v53 = vor.u32 %v1974_v10, %v1973_v12  ;;  %v1978_v8 = vor.u32 %v1977_v44, %v1976_v31 }
 0x257   :  { %v1832_v6 = vxor.u32 2147483648, %v1831_v51  ;;  %v2708_v16 = vsel %vm3707_vm3, %v2690_v55, 0.0  ;;  %v1915_v24 = vshll.u32 %v4294_v23, 30  ;;  %v1981_v55 = vor.u32 %v1980_v58, %v1979_v9 }
 0x258   :  { %v2724_v35 = vadd.f32 %v2708_v16, %v4898_v57  ;;  %v1984_v26 = vor.u32 %v1983_v40, %v1982_v1  ;;  %v1985_v42 = vshll.u32 %v4876_v63, %v1970_v38  ;;  %v1986_v16 = vshrl.u32 %v4865_v47, %v1971_v56 }
 0x259   :  { %v1833_v20 = vsel %vm1750_vm6, %v1832_v6, %v1831_v51  ;;  %v4310_v37 = vsub.s32 %v1912_v15, %v1915_v24  ;;  %v1964_v51 = vor.u32 8388608, %v1963_v48  ;;  %v1972_v6 = vshrl.u32 %v4872_v19, %v1971_v56 }
 0x25a   :  { %v1836_v14 = vsel %vm4261_vm15, %v3983_v52, %v1833_v20  ;;  %2740 = vst [vmem:[#allocation6 + $0x30] sm:$0xff] %v2724_v35  ;;  %v2063_v12 = vand.u32 2139095040, %v4187_v32  ;;  %v1842_v10 = vand.u32 3, %v1841_v29  ;;  %v1987_v44 = vor.u32 %v1986_v16, %v1985_v42 }
 0x25b   :  { %3054 = vcosq.f32 %v1836_v14  ;;  %v1918_v11 = vsub.s32 0, %v4310_v37  ;;  %vm1988_vm4 = vcmp.lt.s32.totalorder %v1969_v60, 1  ;;  %vm1990_vm5 = vcmp.lt.s32.totalorder %v1969_v60, 3 }
 0x25c   :  { %3056 = vsinq.f32 %v1836_v14  ;;  %vm1991_vm6 = vcmp.lt.s32.totalorder %v1969_v60, 4  ;;  %v1992_v31 = vsel %vm1988_vm4, %v1972_v6, %v1975_v53  ;;  %v1996_v15 = vsel %vm1988_vm4, %v1975_v53, %v1978_v8 }
 0x25d   :  { %v2848_v58 = vmin.u32 %v1918_v11, %v4310_v37  ;;  %v1993_v38 = vsel %vm1991_vm6, %v1981_v55, 2102212464  ;;  %v1997_v9 = vsel %vm1991_vm6, %v1984_v26, 920167782  ;;  %v2000_v1 = vsel %vm1988_vm4, %v1978_v8, %v1981_v55 }
 0x25e   :  { %v1994_v48 = vsel %vm1990_vm5, %v1978_v8, %v1993_v38  ;;  %v1998_v56 = vsel %vm1990_vm5, %v1981_v55, %v1997_v9  ;;  %v2001_v40 = vsel %vm1991_vm6, %v1987_v44, 1326507024  ;;  %v2064_v57 = vshrl.u32 %v2063_v12, 23  ;;  %v966_v44 = vpop.permute.xlu0 %965 }
 0x25f   :  { %vm1843_vm7 = vcmp.lt.s32.totalorder %v1842_v10, 2  ;;  %vm1844_vm8 = vcmp.eq.s32.totalorder %v1842_v10, 0  ;;  %vm1854_vm9 = vcmp.lt.s32.totalorder %v3986_v34, 0  ;;  %v1920_v42 = vclz %v2848_v58  ;;  %v971_v58 = vpop.permute.xlu1 %970 }
 0x260   :  { %vm1989_vm11 = vcmp.lt.s32.totalorder %v1969_v60, 2  ;;  %v2004_v29 = vshll.u32 %v1964_v51, 8  ;;  %vm1840_vm12 = vweird.f32 %v3983_v52  ;;  %v2002_v24 = vsel %vm1990_vm5, %v1984_v26, %v2001_v40 }
 0x261   :  { %v1995_v35 = vsel %vm1989_vm11, %v1992_v31, %v1994_v48  ;;  %v1999_v20 = vsel %vm1989_vm11, %v1996_v15, %v1998_v56  ;;  %v2855_v53 = vadd.s32 4294967169, %v2064_v57  ;;  %v2849_v14 = vadd.s32 4294967294, %v1920_v42 }
 0x262   :  { %v2003_v8 = vsel %vm1989_vm11, %v2000_v1, %v2002_v24  ;;  %v4323_v16 = vmul.u32.u64.low %v2004_v29, %v1999_v20  ;;  %v4324_v55 = vmul.u32.u64.high %v2004_v29, %v1999_v20, %v4323_v16  ;;  %vm1847_vm13 = vcmp.eq.s32.totalorder %v1842_v10, 2 }
 0x263   :  { %v4327_v6 = vmul.u32.u64.low %v2004_v29, %v2003_v8  ;;  %v4328_v12 = vmul.u32.u64.high %v2004_v29, %v2003_v8, %v4327_v6  ;;  %v2060_v11 = vand.u32 2147483647, %v4187_v32  ;;  %v1908_v31 = vadd.s32 %v4252_v5, %v4250_v28 }
 0x264   :  { %vm2850_vm14 = vcmp.lt.s32.totalorder %v2849_v14, 0  ;;  %v1938_v26 = vsub.s32 4, %v4294_v23  ;;  %v2070_v60 = vadd.s32 1, %v2855_v53  ;;  %v2011_v1 = vmul.u32 %v2004_v29, %v1995_v35 }
 0x265   :  { %v3055_v51 = vpop.eup %3054  ;;  %v1923_v9 = vsel %vm2850_vm14, 0, %v2849_v14  ;;  %v999_v48 = vmul.f32 %v966_v44, %v3888_v45  ;;  %v1000_v42 = vmul.f32 %v971_v58, %v4006_v13  ;;  %vm2013_vm10 = vc.u32 %v4328_v12, %v4323_v16 }
 0x266   :  { %v3057_v15 = vpop.eup %3056  ;;  %v1848_v38 = vxor.u32 2147483648, %v3055_v51  ;;  %v1924_v40 = vsub.s32 32, %v1923_v9  ;;  %v1928_v57 = vsub.s32 4294967266, %v1923_v9  ;;  %v1925_v28 = vshll.u32 %v4310_v37, %v1923_v9 }
 0x267   :  { %v1845_v56 = vxor.u32 2147483648, %v3057_v15  ;;  %v2014_v5 = vadd.s32 1, %v4324_v55  ;;  %vm2071_vm15 = vcmp.gt.s32.totalorder %v2070_v60, 0  ;;  %v1939_v13 = vsel %vm1854_vm9, %v1938_v26, %v4294_v23 }
 0x268   :  { %v1849_v20 = vsel %vm1847_vm13, %v1848_v38, %v3057_v15  ;;  %v1926_v53 = vshrl.u32 %v1908_v31, %v1924_v40  ;;  %v1929_v29 = vadd.s32 127, %v1928_v57  ;;  %v2072_v14 = vsel %vm2071_vm15, %v2070_v60, 0  ;;  %v4899_v15 = vld [vmem:[#allocation15_spill] sm:$0xff] }
 0x269   :  { %v1846_v24 = vsel %vm1844_vm8, %v3055_v51, %v1845_v56  ;;  %v2015_v35 = vsel %vm2013_vm10, %v2014_v5, %v4324_v55  ;;  %v2067_v31 = vand.u32 8388607, %v2060_v11  ;;  %v2074_v10 = vand.u32 31, %v2072_v14 }
 0x26a   :  { %v1850_v45 = vsel %vm1843_vm7, %v1846_v24, %v1849_v20  ;;  %v1927_v8 = vor.u32 %v1926_v53, %v1925_v28  ;;  %v1930_v6 = vshll.u32 %v1929_v29, 23  ;;  %v2016_v44 = vadd.s32 %v2015_v35, %v2011_v1 }
 0x26b   :  { %v1851_v37 = vsel %vm1840_vm12, nan, %v1850_v45  ;;  %v4353_v58 = vadd.f32 %v999_v48, %v3897_v39  ;;  %v4900_v23 = vand.u32 2147483647, %v3986_v34  ;;  %v4362_v60 = vadd.f32 %v1000_v42, %v4011_v54  ;;  %v4903_v39 = vld [vmem:[#allocation14_spill] sm:$0xff] }
 0x26c   :  { %v2691_v51 = vmul.f32 %v1851_v37, %v4899_v15  ;;  %v1931_v52 = vor.u32 4788187, %v1930_v6  ;;  %v2017_v26 = vadd.s32 536870912, %v2016_v44  ;;  %v2075_v1 = vsub.s32 32, %v2074_v10 }
 0x26d   :  { %vm4357_vm0 = vcmp.le.f32.partialorder %v4900_v23, 0.7853982  ;;  %v1934_v40 = vcvt.s32.f32 %v1927_v8  ;;  %v2068_v20 = vor.u32 8388608, %v2067_v31  ;;  %v2077_v53 = vshll.u32 %v4872_v19, %v2074_v10 }
 0x26e   :  { %v2709_v38 = vsel %vm3707_vm3, %v2691_v51, 0.0  ;;  %v1941_v9 = vsel %vm4357_vm0, 0, %v1939_v13  ;;  %v1932_v56 = vand.u32 2147483647, %v1931_v52  ;;  %v4369_v57 = vshrl.u32 %v2017_v26, 30 }
 0x26f   :  { %v2725_v48 = vadd.f32 %v2709_v38, %v4903_v39  ;;  %v2078_v28 = vshrl.u32 %v4875_v61, %v2075_v1  ;;  %v2081_v5 = vshrl.u32 %v4862_v2, %v2075_v1  ;;  %v2084_v54 = vshrl.u32 %v4864_v17, %v2075_v1 }
 0x270   :  { %v1935_v42 = vmul.f32 %v1934_v40, %v1932_v56  ;;  %v2019_v24 = vshll.u32 %v4369_v57, 30  ;;  %v2080_v29 = vshll.u32 %v4875_v61, %v2074_v10  ;;  %v2073_v45 = vshrl.u32 %v2072_v14, 5 }
 0x271   :  { %2741 = vst [vmem:[#allocation6 + $0x38] sm:$0xff] %v2725_v48  ;;  %v2083_v13 = vshll.u32 %v4862_v2, %v2074_v10  ;;  %v2086_v35 = vshll.u32 %v4864_v17, %v2074_v10  ;;  %v2087_v37 = vshrl.u32 %v4876_v63, %v2075_v1  ;;  %v2079_v15 = vor.u32 %v2078_v28, %v2077_v53 }
 0x272   :  { %v1936_v8 = vxor.u32 2147483648, %v1935_v42  ;;  %v4380_v6 = vsub.s32 %v2016_v44, %v2019_v24  ;;  %v2082_v51 = vor.u32 %v2081_v5, %v2080_v29  ;;  %v2089_v52 = vshll.u32 %v4876_v63, %v2074_v10 }
 0x273   :  { %v2085_v31 = vor.u32 %v2084_v54, %v2083_v13  ;;  %v2088_v23 = vor.u32 %v2087_v37, %v2086_v35  ;;  %v2090_v26 = vshrl.u32 %v4865_v47, %v2075_v1  ;;  %v1945_v38 = vadd.s32 3, %v1941_v9 }
 0x274   :  { %v1937_v14 = vsel %vm1854_vm9, %v1936_v8, %v1935_v42  ;;  %v2022_v39 = vsub.s32 0, %v4380_v6  ;;  %v2076_v44 = vshrl.u32 %v4872_v19, %v2075_v1  ;;  %v2108_v40 = vshll.u32 %v2068_v20, 8 }
 0x275   :  { %v1940_v48 = vsel %vm4357_vm0, %v3986_v34, %v1937_v14  ;;  %v2091_v56 = vor.u32 %v2090_v26, %v2089_v52  ;;  %vm2092_vm1 = vcmp.lt.s32.totalorder %v2073_v45, 1  ;;  %vm2095_vm2 = vcmp.lt.s32.totalorder %v2073_v45, 4 }
 0x276   :  { %3058 = vcosq.f32 %v1940_v48  ;;  %v2852_v28 = vmin.u32 %v2022_v39, %v4380_v6  ;;  %v2097_v10 = vsel %vm2095_vm2, %v2085_v31, 2102212464  ;;  %v2100_v5 = vsel %vm2092_vm1, %v2079_v15, %v2082_v51 }
 0x277   :  { %3060 = vsinq.f32 %v1940_v48  ;;  %v2101_v54 = vsel %vm2095_vm2, %v2088_v23, 920167782  ;;  %vm2093_vm4 = vcmp.lt.s32.totalorder %v2073_v45, 2  ;;  %vm2094_vm5 = vcmp.lt.s32.totalorder %v2073_v45, 3 }
 0x278   :  { %v2024_v9 = vclz %v2852_v28  ;;  %v2096_v42 = vsel %vm2092_vm1, %v2076_v44, %v2079_v15  ;;  %v2098_v24 = vsel %vm2094_vm5, %v2082_v51, %v2097_v10  ;;  %v2102_v55 = vsel %vm2094_vm5, %v2085_v31, %v2101_v54 }
 0x279   :  { %v2104_v53 = vsel %vm2092_vm1, %v2082_v51, %v2085_v31  ;;  %v2105_v29 = vsel %vm2095_vm2, %v2091_v56, 1326507024  ;;  %v2042_v20 = vsub.s32 4, %v4369_v57  ;;  %v2103_v13 = vsel %vm2093_vm4, %v2100_v5, %v2102_v55 }
 0x27a   :  { %v2853_v1 = vadd.s32 4294967294, %v2024_v9  ;;  %v2106_v35 = vsel %vm2094_vm5, %v2088_v23, %v2105_v29  ;;  %v1946_v37 = vand.u32 3, %v1945_v38  ;;  %v2099_v14 = vsel %vm2093_vm4, %v2096_v42, %v2098_v24 }
 0x27b   :  { %v2107_v8 = vsel %vm2093_vm4, %v2104_v53, %v2106_v35  ;;  %v4393_v52 = vmul.u32.u64.low %v2108_v40, %v2103_v13  ;;  %v4394_v26 = vmul.u32.u64.high %v2108_v40, %v2103_v13, %v4393_v52  ;;  %vm1944_vm7 = vweird.f32 %v3986_v34 }
 0x27c   :  { %vm2854_vm6 = vcmp.lt.s32.totalorder %v2853_v1, 0  ;;  %v4396_v39 = vmul.u32.u64.low %v2108_v40, %v2107_v8  ;;  %v4397_v48 = vmul.u32.u64.high %v2108_v40, %v2107_v8, %v4396_v39  ;;  %v4904_v45 = vand.u32 2147483647, %v4180_v7 }
 0x27d   :  { %vm1958_vm9 = vcmp.lt.s32.totalorder %v4180_v7, 0  ;;  %v2027_v51 = vsel %vm2854_vm6, 0, %v2853_v1  ;;  %v2167_v31 = vand.u32 2139095040, %v4353_v58  ;;  %v2012_v23 = vadd.s32 %v4323_v16, %v4328_v12 }
 0x27e   :  { %vm4402_vm8 = vcmp.le.f32.partialorder %v4904_v45, 0.7853982  ;;  %v2028_v38 = vsub.s32 32, %v2027_v51  ;;  %v2032_v44 = vsub.s32 4294967266, %v2027_v51  ;;  %v2043_v56 = vsel %vm1958_vm9, %v2042_v20, %v4369_v57 }
 0x27f   :  { %vm1951_vm11 = vcmp.eq.s32.totalorder %v1946_v37, 2  ;;  %v2115_v28 = vmul.u32 %v2108_v40, %v2099_v14  ;;  %v2118_v10 = vadd.s32 1, %v4394_v26  ;;  %v2168_v5 = vshrl.u32 %v2167_v31, 23 }
 0x280   :  { %v3059_v54 = vpop.eup %3058  ;;  %v2029_v9 = vshll.u32 %v4380_v6, %v2027_v51  ;;  %v2030_v42 = vshrl.u32 %v2012_v23, %v2028_v38  ;;  %v2033_v24 = vadd.s32 127, %v2032_v44  ;;  %vm2117_vm12 = vc.u32 %v4397_v48, %v4393_v52 }
 0x281   :  { %v3061_v55 = vpop.eup %3060  ;;  %v1952_v16 = vxor.u32 2147483648, %v3059_v54  ;;  %v2045_v12 = vsel %vm4402_vm8, 0, %v2043_v56  ;;  %v2119_v53 = vsel %vm2117_vm12, %v2118_v10, %v4394_v26  ;;  %v2859_v57 = vadd.s32 4294967169, %v2168_v5  ;;  %v4907_v56 = vld [vmem:[#allocation17_spill] sm:$0xff]  ;;  %v976_v5 = vpop.permute.xlu0 %975 }
 0x282   :  { %v1949_v29 = vxor.u32 2147483648, %v3061_v55  ;;  %v2031_v40 = vor.u32 %v2030_v42, %v2029_v9  ;;  %v2034_v1 = vshll.u32 %v2033_v24, 23  ;;  %v2120_v20 = vadd.s32 %v2119_v53, %v2115_v28 }
 0x283   :  { %vm1948_vm13 = vcmp.eq.s32.totalorder %v1946_v37, 0  ;;  %v1953_v13 = vsel %vm1951_vm11, %v1952_v16, %v3061_v55  ;;  %v2164_v6 = vand.u32 2147483647, %v4353_v58  ;;  %v2174_v35 = vadd.s32 1, %v2859_v57  ;;  %v4908_v16 = vld [vmem:[#allocation16_spill] sm:$0xff] }
 0x284   :  { %vm1947_vm14 = vcmp.lt.s32.totalorder %v1946_v37, 2  ;;  %v1950_v8 = vsel %vm1948_vm13, %v3059_v54, %v1949_v29  ;;  %v2035_v14 = vor.u32 4788187, %v2034_v1  ;;  %v2121_v39 = vadd.s32 536870912, %v2120_v20 }
 0x285   :  { %v1954_v45 = vsel %vm1947_vm14, %v1950_v8, %v1953_v13  ;;  %v2038_v51 = vcvt.s32.f32 %v2031_v40  ;;  %v2049_v31 = vadd.s32 3, %v2045_v12  ;;  %vm2175_vm10 = vcmp.gt.s32.totalorder %v2174_v35, 0 }
 0x286   :  { %v1955_v26 = vsel %vm1944_vm7, nan, %v1954_v45  ;;  %v2036_v23 = vand.u32 2147483647, %v2035_v14  ;;  %v4423_v38 = vshrl.u32 %v2121_v39, 30  ;;  %v2176_v44 = vsel %vm2175_vm10, %v2174_v35, 0 }
 0x287   :  { %v2692_v28 = vmul.f32 %v1955_v26, %v4907_v56  ;;  %v2171_v10 = vand.u32 8388607, %v2164_v6  ;;  %v2178_v37 = vand.u32 31, %v2176_v44  ;;  %v4431_v24 = vand.u32 3, %v2049_v31 }
 0x288   :  { %v2039_v54 = vmul.f32 %v2038_v51, %v2036_v23  ;;  %v2123_v9 = vshll.u32 %v4423_v38, 30  ;;  %v4434_v55 = vmul.f32 %v976_v5, %v4093_v25  ;;  %v2116_v57 = vadd.s32 %v4393_v52, %v4397_v48 }
 0x289   :  { %v2710_v42 = vsel %vm3707_vm3, %v2692_v28, 0.0  ;;  %v2179_v34 = vsub.s32 32, %v2178_v37  ;;  %v2172_v40 = vor.u32 8388608, %v2171_v10  ;;  %v2271_v35 = vand.u32 2139095040, %v4362_v60 }
 0x28a   :  { %v2726_v12 = vadd.f32 %v2710_v42, %v4908_v16  ;;  %v2040_v53 = vxor.u32 2147483648, %v2039_v54  ;;  %v4438_v29 = vsub.s32 %v2120_v20, %v2123_v9  ;;  %v2181_v14 = vshll.u32 %v4872_v19, %v2178_v37 }
 0x28b   :  { %v2182_v1 = vshrl.u32 %v4875_v61, %v2179_v34  ;;  %v2185_v13 = vshrl.u32 %v4862_v2, %v2179_v34  ;;  %v2184_v39 = vshll.u32 %v4875_v61, %v2178_v37  ;;  %v2177_v48 = vshrl.u32 %v2176_v44, 5 }
 0x28c   :  { %2742 = vst [vmem:[#allocation6 + $0x40] sm:$0xff] %v2726_v12  ;;  %v2041_v8 = vsel %vm1958_vm9, %v2040_v53, %v2039_v54  ;;  %v2126_v25 = vsub.s32 0, %v4438_v29  ;;  %v2187_v20 = vshll.u32 %v4862_v2, %v2178_v37  ;;  %v2188_v45 = vshrl.u32 %v4864_v17, %v2179_v34 }
 0x28d   :  { %v2044_v52 = vsel %vm4402_vm8, %v4180_v7, %v2041_v8  ;;  %v2183_v31 = vor.u32 %v2182_v1, %v2181_v14  ;;  %v2186_v26 = vor.u32 %v2185_v13, %v2184_v39  ;;  %v2190_v56 = vshll.u32 %v4864_v17, %v2178_v37 }
 0x28e   :  { %3062 = vcosq.f32 %v2044_v52  ;;  %v2856_v51 = vmin.u32 %v2126_v25, %v4438_v29  ;;  %v2189_v23 = vor.u32 %v2188_v45, %v2187_v20  ;;  %v2191_v28 = vshrl.u32 %v4876_v63, %v2179_v34 }
 0x28f   :  { %3064 = vsinq.f32 %v2044_v52  ;;  %v2146_v15 = vsub.s32 4, %v4423_v38  ;;  %v4457_v5 = vshll.u32 %v2172_v40, 8  ;;  %v2272_v44 = vshrl.u32 %v2271_v35, 23 }
 0x290   :  { %v2128_v10 = vclz %v2856_v51  ;;  %v2180_v54 = vshrl.u32 %v4872_v19, %v2179_v34  ;;  %v2192_v9 = vor.u32 %v2191_v28, %v2190_v56  ;;  %v2193_v42 = vshll.u32 %v4876_v63, %v2178_v37 }
 0x291   :  { %v2194_v16 = vshrl.u32 %v4865_v47, %v2179_v34  ;;  %vm2196_vm15 = vcmp.lt.s32.totalorder %v2177_v48, 1  ;;  %vm2198_vm0 = vcmp.lt.s32.totalorder %v2177_v48, 3  ;;  %vm2199_vm1 = vcmp.lt.s32.totalorder %v2177_v48, 4 }
 0x292   :  { %v2857_v12 = vadd.s32 4294967294, %v2128_v10  ;;  %vm2052_vm2 = vcmp.eq.s32.totalorder %v4431_v24, 0  ;;  %vm2062_vm4 = vcmp.lt.s32.totalorder %v4187_v32, 0  ;;  %v2201_v40 = vsel %vm2199_vm1, %v2189_v23, 2102212464 }
 0x293   :  { %v2195_v53 = vor.u32 %v2194_v16, %v2193_v42  ;;  %v2204_v1 = vsel %vm2196_vm15, %v2183_v31, %v2186_v26  ;;  %v2205_v13 = vsel %vm2199_vm1, %v2192_v9, 920167782  ;;  %vm2051_vm5 = vcmp.lt.s32.totalorder %v4431_v24, 2 }
 0x294   :  { %vm2858_vm6 = vcmp.lt.s32.totalorder %v2857_v12, 0  ;;  %vm2197_vm7 = vcmp.lt.s32.totalorder %v2177_v48, 2  ;;  %v2206_v37 = vsel %vm2198_vm0, %v2189_v23, %v2205_v13  ;;  %v2208_v34 = vsel %vm2196_vm15, %v2186_v26, %v2189_v23 }
 0x295   :  { %vm2048_vm8 = vweird.f32 %v4180_v7  ;;  %v2131_v35 = vsel %vm2858_vm6, 0, %v2857_v12  ;;  %v2200_v8 = vsel %vm2196_vm15, %v2180_v54, %v2183_v31  ;;  %v2207_v25 = vsel %vm2197_vm7, %v2204_v1, %v2206_v37 }
 0x296   :  { %v2209_v14 = vsel %vm2199_vm1, %v2195_v53, 1326507024  ;;  %vm4476_vm9 = vcmp.le.f32.partialorder %v2060_v11, 0.7853982  ;;  %v2132_v52 = vsub.s32 32, %v2131_v35  ;;  %v2136_v20 = vsub.s32 4294967266, %v2131_v35 }
 0x297   :  { %v2202_v45 = vsel %vm2198_vm0, %v2186_v26, %v2201_v40  ;;  %v2210_v51 = vsel %vm2198_vm0, %v2192_v9, %v2209_v14  ;;  %v2133_v23 = vshll.u32 %v4438_v29, %v2131_v35  ;;  %vm2055_vm11 = vcmp.eq.s32.totalorder %v4431_v24, 2 }
 0x298   :  { %v2211_v31 = vsel %vm2197_vm7, %v2208_v34, %v2210_v51  ;;  %v4485_v56 = vmul.u32.u64.low %v4457_v5, %v2207_v25  ;;  %v4486_v28 = vmul.u32.u64.high %v4457_v5, %v2207_v25, %v4485_v56  ;;  %v3063_v10 = vpop.eup %3062  ;;  %v2134_v11 = vshrl.u32 %v2116_v57, %v2132_v52  ;;  %v4911_v51 = vld [vmem:[#allocation19_spill] sm:$0xff] }
 0x299   :  { %v2137_v54 = vadd.s32 127, %v2136_v20  ;;  %v4490_v42 = vmul.u32.u64.low %v4457_v5, %v2211_v31  ;;  %v4491_v16 = vmul.u32.u64.high %v4457_v5, %v2211_v31, %v4490_v42  ;;  %v3065_v12 = vpop.eup %3064  ;;  %v2056_v26 = vxor.u32 2147483648, %v3063_v10 }
 0x29a   :  { %v2203_v29 = vsel %vm2197_vm7, %v2200_v8, %v2202_v45  ;;  %v2863_v9 = vadd.s32 4294967169, %v2272_v44  ;;  %v2053_v53 = vxor.u32 2147483648, %v3065_v12  ;;  %v2135_v40 = vor.u32 %v2134_v11, %v2133_v23 }
 0x29b   :  { %v2138_v1 = vshll.u32 %v2137_v54, 23  ;;  %v4497_v13 = vadd.f32 %v4434_v55, %v4103_v22  ;;  %v2057_v57 = vsel %vm2055_vm11, %v2056_v26, %v3065_v12  ;;  %v2222_v37 = vadd.s32 1, %v4486_v28  ;;  %v4912_v54 = vld [vmem:[#allocation18_spill] sm:$0xff] }
 0x29c   :  { %v2268_v34 = vand.u32 2147483647, %v4362_v60  ;;  %v2278_v35 = vadd.s32 1, %v2863_v9  ;;  %v2054_v25 = vsel %vm2052_vm2, %v3063_v10, %v2053_v53  ;;  %v2147_v48 = vsel %vm2062_vm4, %v2146_v15, %v4423_v38 }
 0x29d   :  { %v2139_v14 = vor.u32 4788187, %v2138_v1  ;;  %v2219_v44 = vmul.u32 %v4457_v5, %v2203_v29  ;;  %v2058_v22 = vsel %vm2051_vm5, %v2054_v25, %v2057_v57  ;;  %v2142_v55 = vcvt.s32.f32 %v2135_v40 }
 0x29e   :  { %vm2221_vm12 = vc.u32 %v4491_v16, %v4485_v56  ;;  %vm2279_vm13 = vcmp.gt.s32.totalorder %v2278_v35, 0  ;;  %v2059_v8 = vsel %vm2048_vm8, nan, %v2058_v22  ;;  %v2149_v38 = vsel %vm4476_vm9, 0, %v2147_v48 }
 0x29f   :  { %v2140_v52 = vand.u32 2147483647, %v2139_v14  ;;  %v2223_v20 = vsel %vm2221_vm12, %v2222_v37, %v4486_v28  ;;  %v2280_v45 = vsel %vm2279_vm13, %v2278_v35, 0  ;;  %v2693_v23 = vmul.f32 %v2059_v8, %v4911_v51 }
 0x2a0   :  { %v2224_v15 = vadd.s32 %v2223_v20, %v2219_v44  ;;  %v2282_v24 = vand.u32 31, %v2280_v45  ;;  %v2275_v7 = vand.u32 8388607, %v2268_v34  ;;  %v2153_v12 = vadd.s32 3, %v2149_v38 }
 0x2a1   :  { %v2143_v5 = vmul.f32 %v2142_v55, %v2140_v52  ;;  %v2711_v31 = vsel %vm3707_vm3, %v2693_v23, 0.0  ;;  %v2281_v26 = vshrl.u32 %v2280_v45, 5  ;;  %vm2166_vm14 = vcmp.lt.s32.totalorder %v4353_v58, 0 }
 0x2a2   :  { %v2225_v10 = vadd.s32 536870912, %v2224_v15  ;;  %v2283_v11 = vsub.s32 32, %v2282_v24  ;;  %v2727_v42 = vadd.f32 %v2711_v31, %v4912_v54  ;;  %v2285_v9 = vshll.u32 %v4872_v19, %v2282_v24 }
 0x2a3   :  { %v2144_v28 = vxor.u32 2147483648, %v2143_v5  ;;  %v2291_v57 = vshll.u32 %v4862_v2, %v2282_v24  ;;  %v2288_v48 = vshll.u32 %v4875_v61, %v2282_v24  ;;  %v2294_v44 = vshll.u32 %v4864_v17, %v2282_v24 }
 0x2a4   :  { %v4522_v29 = vshrl.u32 %v2225_v10, 30  ;;  %v2286_v53 = vshrl.u32 %v4875_v61, %v2283_v11  ;;  %v2289_v40 = vshrl.u32 %v4862_v2, %v2283_v11  ;;  %2743 = vst [vmem:[#allocation6 + $0x48] sm:$0xff] %v2727_v42  ;;  %v2292_v37 = vshrl.u32 %v4864_v17, %v2283_v11 }
 0x2a5   :  { %v2145_v1 = vsel %vm2062_vm4, %v2144_v28, %v2143_v5  ;;  %v2295_v35 = vshrl.u32 %v4876_v63, %v2283_v11  ;;  %v4538_v22 = vand.u32 3, %v2153_v12  ;;  %v2276_v39 = vor.u32 8388608, %v2275_v7 }
 0x2a6   :  { %v2148_v25 = vsel %vm4476_vm9, %v4187_v32, %v2145_v1  ;;  %v2227_v14 = vshll.u32 %v4522_v29, 30  ;;  %v2287_v55 = vor.u32 %v2286_v53, %v2285_v9  ;;  %v2293_v8 = vor.u32 %v2292_v37, %v2291_v57 }
 0x2a7   :  { %3066 = vcosq.f32 %v2148_v25  ;;  %v2290_v20 = vor.u32 %v2289_v40, %v2288_v48  ;;  %v2296_v45 = vor.u32 %v2295_v35, %v2294_v44  ;;  %v2284_v51 = vshrl.u32 %v4872_v19, %v2283_v11 }
 0x2a8   :  { %3068 = vsinq.f32 %v2148_v25  ;;  %v4540_v52 = vsub.s32 %v2224_v15, %v2227_v14  ;;  %v2297_v23 = vshll.u32 %v4876_v63, %v2282_v24  ;;  %v2298_v38 = vshrl.u32 %v4865_v47, %v2283_v11 }
 0x2a9   :  { %vm2300_vm10 = vcmp.lt.s32.totalorder %v2281_v26, 1  ;;  %vm2303_vm15 = vcmp.lt.s32.totalorder %v2281_v26, 4  ;;  %v2375_v31 = vand.u32 2139095040, %v4497_v13  ;;  %vm2302_vm0 = vcmp.lt.s32.totalorder %v2281_v26, 3 }
 0x2aa   :  { %v2230_v5 = vsub.s32 0, %v4540_v52  ;;  %v2299_v10 = vor.u32 %v2298_v38, %v2297_v23  ;;  %v2304_v15 = vsel %vm2300_vm10, %v2284_v51, %v2287_v55  ;;  %v2305_v54 = vsel %vm2303_vm15, %v2293_v8, 2102212464 }
 0x2ab   :  { %v2306_v7 = vsel %vm2302_vm0, %v2290_v20, %v2305_v54  ;;  %v2308_v28 = vsel %vm2300_vm10, %v2287_v55, %v2290_v20  ;;  %v2309_v12 = vsel %vm2303_vm15, %v2296_v45, 920167782  ;;  %vm2155_vm1 = vcmp.lt.s32.totalorder %v4538_v22, 2 }
 0x2ac   :  { %v2860_v42 = vmin.u32 %v2230_v5, %v4540_v52  ;;  %vm2156_vm2 = vcmp.eq.s32.totalorder %v4538_v22, 0  ;;  %v2310_v24 = vsel %vm2302_vm0, %v2293_v8, %v2309_v12  ;;  %v2312_v11 = vsel %vm2300_vm10, %v2290_v20, %v2293_v8  ;;  %v981_v5 = vpop.permute.xlu1 %980 }
 0x2ad   :  { %v2313_v9 = vsel %vm2303_vm15, %v2299_v10, 1326507024  ;;  %vm2152_vm4 = vweird.f32 %v4187_v32  ;;  %v2250_v40 = vsub.s32 4, %v4522_v29  ;;  %vm2301_vm5 = vcmp.lt.s32.totalorder %v2281_v26, 2 }
 0x2ae   :  { %v2232_v53 = vclz %v2860_v42  ;;  %v2316_v1 = vshll.u32 %v2276_v39, 8  ;;  %v2307_v57 = vsel %vm2301_vm5, %v2304_v15, %v2306_v7  ;;  %v2311_v37 = vsel %vm2301_vm5, %v2308_v28, %v2310_v24 }
 0x2af   :  { %v2314_v35 = vsel %vm2302_vm0, %v2296_v45, %v2313_v9  ;;  %v2376_v25 = vshrl.u32 %v2375_v31, 23  ;;  %vm4558_vm6 = vcmp.le.f32.partialorder %v2164_v6, 0.7853982  ;;  %vm2159_vm7 = vcmp.eq.s32.totalorder %v4538_v22, 2 }
 0x2b0   :  { %v2861_v48 = vadd.s32 4294967294, %v2232_v53  ;;  %v2315_v44 = vsel %vm2301_vm5, %v2312_v11, %v2314_v35  ;;  %v4562_v55 = vmul.u32.u64.low %v2316_v1, %v2311_v37  ;;  %v4563_v8 = vmul.u32.u64.high %v2316_v1, %v2311_v37, %v4562_v55 }
 0x2b1   :  { %v3067_v20 = vpop.eup %3066  ;;  %v4567_v39 = vmul.u32.u64.low %v2316_v1, %v2315_v44  ;;  %v4568_v51 = vmul.u32.u64.high %v2316_v1, %v2315_v44, %v4567_v39  ;;  %v2867_v26 = vadd.s32 4294967169, %v2376_v25  ;;  %v2220_v6 = vadd.s32 %v4485_v56, %v4491_v16 }
 0x2b2   :  { %v3069_v45 = vpop.eup %3068  ;;  %v2160_v23 = vxor.u32 2147483648, %v3067_v20  ;;  %vm2862_vm8 = vcmp.lt.s32.totalorder %v2861_v48, 0  ;;  %v2251_v38 = vsel %vm2166_vm14, %v2250_v40, %v4522_v29  ;;  %v2323_v15 = vmul.u32 %v2316_v1, %v2307_v57 }
 0x2b3   :  { %v2157_v31 = vxor.u32 2147483648, %v3069_v45  ;;  %v2235_v10 = vsel %vm2862_vm8, 0, %v2861_v48  ;;  %v2382_v54 = vadd.s32 1, %v2867_v26  ;;  %v1002_v12 = vmul.f32 %v981_v5, %v4203_v41 }
 0x2b4   :  { %v2161_v42 = vsel %vm2159_vm7, %v2160_v23, %v3069_v45  ;;  %v2236_v7 = vsub.s32 32, %v2235_v10  ;;  %v2240_v28 = vsub.s32 4294967266, %v2235_v10  ;;  %v2237_v56 = vshll.u32 %v4540_v52, %v2235_v10 }
 0x2b5   :  { %v2158_v24 = vsel %vm2156_vm2, %v3067_v20, %v2157_v31  ;;  %vm2325_vm9 = vc.u32 %v4568_v51, %v4562_v55  ;;  %v2326_v16 = vadd.s32 1, %v4563_v8  ;;  %vm2383_vm11 = vcmp.gt.s32.totalorder %v2382_v54, 0 }
 0x2b6   :  { %v2162_v29 = vsel %vm2155_vm1, %v2158_v24, %v2161_v42  ;;  %v2238_v11 = vshrl.u32 %v2220_v6, %v2236_v7  ;;  %v2241_v9 = vadd.s32 127, %v2240_v28  ;;  %v2372_v40 = vand.u32 2147483647, %v4497_v13 }
 0x2b7   :  { %v2163_v53 = vsel %vm2152_vm4, nan, %v2162_v29  ;;  %v2327_v41 = vsel %vm2325_vm9, %v2326_v16, %v4563_v8  ;;  %v2384_v1 = vsel %vm2383_vm11, %v2382_v54, 0  ;;  %v2253_v22 = vsel %vm4558_vm6, 0, %v2251_v38 }
 0x2b8   :  { %v2694_v52 = vmul.f32 %v2163_v53, %v3787_v43  ;;  %v2239_v57 = vor.u32 %v2238_v11, %v2237_v56  ;;  %v2242_v37 = vshll.u32 %v2241_v9, 23  ;;  %v2328_v35 = vadd.s32 %v2327_v41, %v2323_v15 }
 0x2b9   :  { %v2386_v25 = vand.u32 31, %v2384_v1  ;;  %v4592_v48 = vadd.f32 %v1002_v12, %v4208_v21  ;;  %v2379_v43 = vand.u32 8388607, %v2372_v40  ;;  %v2257_v23 = vadd.s32 3, %v2253_v22 }
 0x2ba   :  { %v2712_v32 = vsel %vm3707_vm3, %v2694_v52, 0.0  ;;  %v2243_v44 = vor.u32 4788187, %v2242_v37  ;;  %v2329_v8 = vadd.s32 536870912, %v2328_v35  ;;  %v2246_v45 = vcvt.s32.f32 %v2239_v57 }
 0x2bb   :  { %v2728_v20 = vadd.f32 %v2712_v32, %v3782_v30  ;;  %v2387_v39 = vsub.s32 32, %v2386_v25  ;;  %v2389_v21 = vshll.u32 %v4872_v19, %v2386_v25  ;;  %v2395_v15 = vshll.u32 %v4862_v2, %v2386_v25 }
 0x2bc   :  { %v2244_v26 = vand.u32 2147483647, %v2243_v44  ;;  %v4599_v6 = vshrl.u32 %v2329_v8, 30  ;;  %v2380_v42 = vor.u32 8388608, %v2379_v43  ;;  %v2385_v7 = vshrl.u32 %v2384_v1, 5 }
 0x2bd   :  { %2744 = vst [vmem:[#allocation6 + $0x50] sm:$0xff] %v2728_v20  ;;  %v2390_v38 = vshrl.u32 %v4875_v61, %v2387_v39  ;;  %v2393_v5 = vshrl.u32 %v4862_v2, %v2387_v39  ;;  %v2396_v31 = vshrl.u32 %v4864_v17, %v2387_v39  ;;  %v2399_v54 = vshrl.u32 %v4876_v63, %v2387_v39 }
 0x2be   :  { %v2247_v10 = vmul.f32 %v2246_v45, %v2244_v26  ;;  %v2331_v30 = vshll.u32 %v4599_v6, 30  ;;  %v2392_v28 = vshll.u32 %v4875_v61, %v2386_v25  ;;  %v2398_v12 = vshll.u32 %v4864_v17, %v2386_v25 }
 0x2bf   :  { %v2391_v16 = vor.u32 %v2390_v38, %v2389_v21  ;;  %v2397_v29 = vor.u32 %v2396_v31, %v2395_v15  ;;  %v2401_v53 = vshll.u32 %v4876_v63, %v2386_v25  ;;  %v2402_v41 = vshrl.u32 %v4865_v47, %v2387_v39  ;;  %v986_v38 = vpop.permute.xlu0 %985 }
 0x2c0   :  { %v2248_v24 = vxor.u32 2147483648, %v2247_v10  ;;  %v4610_v56 = vsub.s32 %v2328_v35, %v2331_v30  ;;  %v2394_v11 = vor.u32 %v2393_v5, %v2392_v28  ;;  %v2400_v9 = vor.u32 %v2399_v54, %v2398_v12 }
 0x2c1   :  { %v4616_v57 = vand.u32 3, %v2257_v23  ;;  %v2388_v35 = vshrl.u32 %v4872_v19, %v2387_v39  ;;  %v2403_v22 = vor.u32 %v2402_v41, %v2401_v53  ;;  %vm2407_vm12 = vcmp.lt.s32.totalorder %v2385_v7, 4 }
 0x2c2   :  { %v2249_v52 = vsel %vm2166_vm14, %v2248_v24, %v2247_v10  ;;  %v2334_v1 = vsub.s32 0, %v4610_v56  ;;  %vm2404_vm13 = vcmp.lt.s32.totalorder %v2385_v7, 1  ;;  %v2409_v32 = vsel %vm2407_vm12, %v2397_v29, 2102212464 }
 0x2c3   :  { %v2252_v37 = vsel %vm4558_vm6, %v4353_v58, %v2249_v52  ;;  %v2412_v44 = vsel %vm2404_vm13, %v2391_v16, %v2394_v11  ;;  %v2413_v8 = vsel %vm2407_vm12, %v2400_v9, 920167782  ;;  %v2420_v20 = vshll.u32 %v2380_v42, 8 }
 0x2c4   :  { %3070 = vcosq.f32 %v2252_v37  ;;  %v2864_v25 = vmin.u32 %v2334_v1, %v4610_v56  ;;  %vm4628_vm14 = vcmp.le.f32.partialorder %v2268_v34, 0.7853982  ;;  %vm2405_vm10 = vcmp.lt.s32.totalorder %v2385_v7, 2 }
 0x2c5   :  { %3072 = vsinq.f32 %v2252_v37  ;;  %vm2406_vm15 = vcmp.lt.s32.totalorder %v2385_v7, 3  ;;  %v2408_v39 = vsel %vm2404_vm13, %v2388_v35, %v2391_v16  ;;  %v2416_v23 = vsel %vm2404_vm13, %v2394_v11, %v2397_v29 }
 0x2c6   :  { %v2336_v43 = vclz %v2864_v25  ;;  %v2410_v26 = vsel %vm2406_vm15, %v2394_v11, %v2409_v32  ;;  %v2414_v45 = vsel %vm2406_vm15, %v2397_v29, %v2413_v8  ;;  %v2417_v21 = vsel %vm2407_vm12, %v2403_v22, 1326507024 }
 0x2c7   :  { %v2354_v31 = vsub.s32 4, %v4599_v6  ;;  %v2415_v10 = vsel %vm2405_vm10, %v2412_v44, %v2414_v45  ;;  %v2418_v30 = vsel %vm2406_vm15, %v2400_v9, %v2417_v21  ;;  %v1003_v42 = vmul.f32 %v986_v38, %v4278_v62 }
 0x2c8   :  { %v2865_v5 = vadd.s32 4294967294, %v2336_v43  ;;  %v2419_v34 = vsel %vm2405_vm10, %v2416_v23, %v2418_v30  ;;  %v4636_v15 = vmul.u32.u64.low %v2420_v20, %v2415_v10  ;;  %v4637_v54 = vmul.u32.u64.high %v2420_v20, %v2415_v10, %v4636_v15 }
 0x2c9   :  { %v2411_v28 = vsel %vm2405_vm10, %v2408_v39, %v2410_v26  ;;  %v4642_v12 = vmul.u32.u64.low %v2420_v20, %v2419_v34  ;;  %v4643_v24 = vmul.u32.u64.high %v2420_v20, %v2419_v34, %v4642_v12  ;;  %vm2256_vm1 = vweird.f32 %v4353_v58 }
 0x2ca   :  { %vm2866_vm0 = vcmp.lt.s32.totalorder %v2865_v5, 0  ;;  %vm2263_vm2 = vcmp.eq.s32.totalorder %v4616_v57, 2  ;;  %vm2270_vm4 = vcmp.lt.s32.totalorder %v4362_v60, 0  ;;  %v2479_v29 = vand.u32 2139095040, %v4592_v48 }
 0x2cb   :  { %v2339_v16 = vsel %vm2866_vm0, 0, %v2865_v5  ;;  %v2324_v11 = vadd.s32 %v4562_v55, %v4568_v51  ;;  %v2355_v7 = vsel %vm2270_vm4, %v2354_v31, %v4599_v6  ;;  %v2427_v53 = vmul.u32 %v2420_v20, %v2411_v28 }
 0x2cc   :  { %v2340_v9 = vsub.s32 32, %v2339_v16  ;;  %v2344_v62 = vsub.s32 4294967266, %v2339_v16  ;;  %v2430_v41 = vadd.s32 1, %v4637_v54  ;;  %v2480_v52 = vshrl.u32 %v2479_v29, 23 }
 0x2cd   :  { %v4656_v1 = vadd.f32 %v1003_v42, %v4286_v33  ;;  %v2341_v35 = vshll.u32 %v4610_v56, %v2339_v16  ;;  %vm2429_vm5 = vc.u32 %v4643_v24, %v4636_v15  ;;  %v2357_v6 = vsel %vm4628_vm14, 0, %v2355_v7 }
 0x2ce   :  { %v3071_v37 = vpop.eup %3070  ;;  %v2342_v22 = vshrl.u32 %v2324_v11, %v2340_v9  ;;  %v2345_v25 = vadd.s32 127, %v2344_v62  ;;  %v2431_v32 = vsel %vm2429_vm5, %v2430_v41, %v4637_v54  ;;  %v2871_v44 = vadd.s32 4294967169, %v2480_v52 }
 0x2cf   :  { %v3073_v55 = vpop.eup %3072  ;;  %v2264_v51 = vxor.u32 2147483648, %v3071_v37  ;;  %v2432_v43 = vadd.s32 %v2431_v32, %v2427_v53  ;;  %vm2260_vm6 = vcmp.eq.s32.totalorder %v4616_v57, 0  ;;  %v2476_v39 = vand.u32 2147483647, %v4592_v48 }
 0x2d0   :  { %v2261_v8 = vxor.u32 2147483648, %v3073_v55  ;;  %v2343_v20 = vor.u32 %v2342_v22, %v2341_v35  ;;  %v2346_v33 = vshll.u32 %v2345_v25, 23  ;;  %v2486_v26 = vadd.s32 1, %v2871_v44 }
 0x2d1   :  { %v2265_v56 = vsel %vm2263_vm2, %v2264_v51, %v3073_v55  ;;  %vm2259_vm7 = vcmp.lt.s32.totalorder %v4616_v57, 2  ;;  %v2433_v21 = vadd.s32 536870912, %v2432_v43  ;;  %v2361_v31 = vadd.s32 3, %v2357_v6 }
 0x2d2   :  { %v2262_v45 = vsel %vm2260_vm6, %v3071_v37, %v2261_v8  ;;  %v2347_v23 = vor.u32 4788187, %v2346_v33  ;;  %v2350_v5 = vcvt.s32.f32 %v2343_v20  ;;  %vm2487_vm8 = vcmp.gt.s32.totalorder %v2486_v26, 0 }
 0x2d3   :  { %v2266_v38 = vsel %vm2259_vm7, %v2262_v45, %v2265_v56  ;;  %v4671_v34 = vshrl.u32 %v2433_v21, 30  ;;  %v2488_v54 = vsel %vm2487_vm8, %v2486_v26, 0  ;;  %v2483_v28 = vand.u32 8388607, %v2476_v39 }
 0x2d4   :  { %v2267_v10 = vsel %vm2256_vm1, nan, %v2266_v38  ;;  %v2348_v30 = vand.u32 2147483647, %v2347_v23  ;;  %v2490_v57 = vand.u32 31, %v2488_v54  ;;  %v4680_v62 = vand.u32 3, %v2361_v31 }
 0x2d5   :  { %v2695_v42 = vmul.f32 %v2267_v10, %v3895_v50  ;;  %v2435_v16 = vshll.u32 %v4671_v34, 30  ;;  %v2484_v53 = vor.u32 8388608, %v2483_v28  ;;  %v2583_v52 = vand.u32 2139095040, %v4656_v1 }
 0x2d6   :  { %v2351_v12 = vmul.f32 %v2350_v5, %v2348_v30  ;;  %v2491_v11 = vsub.s32 32, %v2490_v57  ;;  %v2496_v22 = vshll.u32 %v4875_v61, %v2490_v57  ;;  %v2489_v55 = vshrl.u32 %v2488_v54, 5 }
 0x2d7   :  { %v2713_v29 = vsel %vm3707_vm3, %v2695_v42, 0.0  ;;  %v4682_v7 = vsub.s32 %v2432_v43, %v2435_v16  ;;  %v2499_v51 = vshll.u32 %v4862_v2, %v2490_v57  ;;  %v2502_v33 = vshll.u32 %v4864_v17, %v2490_v57 }
 0x2d8   :  { %v2729_v58 = vadd.f32 %v2713_v29, %v3886_v46  ;;  %v2352_v9 = vxor.u32 2147483648, %v2351_v12  ;;  %v2494_v50 = vshrl.u32 %v4875_v61, %v2491_v11  ;;  %v2497_v41 = vshrl.u32 %v4862_v2, %v2491_v11 }
 0x2d9   :  { %v2438_v35 = vsub.s32 0, %v4682_v7  ;;  %v2493_v46 = vshll.u32 %v4872_v19, %v2490_v57  ;;  %v2500_v6 = vshrl.u32 %v4864_v17, %v2491_v11  ;;  %v2503_v43 = vshrl.u32 %v4876_v63, %v2491_v11 }
 0x2da   :  { %2745 = vst [vmem:[#allocation6 + $0x58] sm:$0xff] %v2729_v58  ;;  %v2353_v37 = vsel %vm2270_vm4, %v2352_v9, %v2351_v12  ;;  %v2498_v8 = vor.u32 %v2497_v41, %v2496_v22  ;;  %v2428_v14 = vadd.s32 %v4636_v15, %v4643_v24  ;;  %v4702_v26 = vshll.u32 %v2484_v53, 8 }
 0x2db   :  { %v2356_v25 = vsel %vm4628_vm14, %v4362_v60, %v2353_v37  ;;  %v2868_v32 = vmin.u32 %v2438_v35, %v4682_v7  ;;  %v2495_v44 = vor.u32 %v2494_v50, %v2493_v46  ;;  %v2501_v20 = vor.u32 %v2500_v6, %v2499_v51 }
 0x2dc   :  { %3074 = vcosq.f32 %v2356_v25  ;;  %v2584_v45 = vshrl.u32 %v2583_v52, 23  ;;  %v2492_v23 = vshrl.u32 %v4872_v19, %v2491_v11  ;;  %v2504_v21 = vor.u32 %v2503_v43, %v2502_v33 }
 0x2dd   :  { %3076 = vsinq.f32 %v2356_v25  ;;  %v2440_v56 = vclz %v2868_v32  ;;  %v2505_v38 = vshll.u32 %v4876_v63, %v2490_v57  ;;  %v2506_v5 = vshrl.u32 %v4865_v47, %v2491_v11 }
 0x2de   :  { %vm2508_vm9 = vcmp.lt.s32.totalorder %v2489_v55, 1  ;;  %vm2510_vm11 = vcmp.lt.s32.totalorder %v2489_v55, 3  ;;  %vm2511_vm12 = vcmp.lt.s32.totalorder %v2489_v55, 4  ;;  %vm2363_vm13 = vcmp.lt.s32.totalorder %v4680_v62, 2 }
 0x2df   :  { %v2869_v31 = vadd.s32 4294967294, %v2440_v56  ;;  %v2507_v10 = vor.u32 %v2506_v5, %v2505_v38  ;;  %v2513_v30 = vsel %vm2511_vm12, %v2501_v20, 2102212464  ;;  %v2516_v54 = vsel %vm2508_vm9, %v2495_v44, %v2498_v8 }
 0x2e0   :  { %v2517_v42 = vsel %vm2511_vm12, %v2504_v21, 920167782  ;;  %vm2509_vm10 = vcmp.lt.s32.totalorder %v2489_v55, 2  ;;  %v2520_v24 = vsel %vm2508_vm9, %v2498_v8, %v2501_v20  ;;  %vm2360_vm15 = vweird.f32 %v4362_v60 }
 0x2e1   :  { %vm2870_vm14 = vcmp.lt.s32.totalorder %v2869_v31, 0  ;;  %v2518_v15 = vsel %vm2510_vm11, %v2501_v20, %v2517_v42  ;;  %v2512_v57 = vsel %vm2508_vm9, %v2492_v23, %v2495_v44  ;;  %v2521_v16 = vsel %vm2511_vm12, %v2507_v10, 1326507024 }
 0x2e2   :  { %v2443_v28 = vsel %vm2870_vm14, 0, %v2869_v31  ;;  %v2519_v12 = vsel %vm2509_vm10, %v2516_v54, %v2518_v15  ;;  %vm2374_vm0 = vcmp.lt.s32.totalorder %v4497_v13, 0  ;;  %v2514_v58 = vsel %vm2510_vm11, %v2498_v8, %v2513_v30 }
 0x2e3   :  { %v2444_v29 = vsub.s32 32, %v2443_v28  ;;  %v2448_v11 = vsub.s32 4294967266, %v2443_v28  ;;  %v2522_v9 = vsel %vm2510_vm11, %v2504_v21, %v2521_v16  ;;  %v2445_v53 = vshll.u32 %v4682_v7, %v2443_v28 }
 0x2e4   :  { %v2523_v50 = vsel %vm2509_vm10, %v2520_v24, %v2522_v9  ;;  %v4717_v41 = vmul.u32.u64.low %v4702_v26, %v2519_v12  ;;  %v4718_v52 = vmul.u32.u64.high %v4702_v26, %v2519_v12, %v4717_v41  ;;  %vm2364_vm1 = vcmp.eq.s32.totalorder %v4680_v62, 0 }
 0x2e5   :  { %v2446_v35 = vshrl.u32 %v2428_v14, %v2444_v29  ;;  %v2449_v46 = vadd.s32 127, %v2448_v11  ;;  %v4722_v22 = vmul.u32.u64.low %v4702_v26, %v2523_v50  ;;  %v4723_v25 = vmul.u32.u64.high %v4702_v26, %v2523_v50, %v4722_v22 }
 0x2e6   :  { %v3075_v37 = vpop.eup %3074  ;;  %v2515_v7 = vsel %vm2509_vm10, %v2512_v57, %v2514_v58  ;;  %v2875_v32 = vadd.s32 4294967169, %v2584_v45  ;;  %vm2367_vm2 = vcmp.eq.s32.totalorder %v4680_v62, 2  ;;  %v2458_v43 = vsub.s32 4, %v4671_v34 }
 0x2e7   :  { %v3077_v51 = vpop.eup %3076  ;;  %v2368_v6 = vxor.u32 2147483648, %v3075_v37  ;;  %v2447_v8 = vor.u32 %v2446_v35, %v2445_v53  ;;  %v2450_v20 = vshll.u32 %v2449_v46, 23  ;;  %v2534_v14 = vadd.s32 1, %v4718_v52 }
 0x2e8   :  { %v2365_v44 = vxor.u32 2147483648, %v3077_v51  ;;  %v2590_v56 = vadd.s32 1, %v2875_v32  ;;  %v2531_v38 = vmul.u32 %v4702_v26, %v2515_v7  ;;  %v2580_v5 = vand.u32 2147483647, %v4656_v1 }
 0x2e9   :  { %v2369_v33 = vsel %vm2367_vm2, %v2368_v6, %v3077_v51  ;;  %v2451_v21 = vor.u32 4788187, %v2450_v20  ;;  %v2454_v45 = vcvt.s32.f32 %v2447_v8  ;;  %vm2533_vm4 = vc.u32 %v4723_v25, %v4717_v41 }
 0x2ea   :  { %v2366_v23 = vsel %vm2364_vm1, %v3075_v37, %v2365_v44  ;;  %vm2591_vm5 = vcmp.gt.s32.totalorder %v2590_v56, 0  ;;  %v2535_v30 = vsel %vm2533_vm4, %v2534_v14, %v4718_v52  ;;  %v2459_v26 = vsel %vm2374_vm0, %v2458_v43, %v4671_v34 }
 0x2eb   :  { %v2370_v55 = vsel %vm2363_vm13, %v2366_v23, %v2369_v33  ;;  %v2452_v10 = vand.u32 2147483647, %v2451_v21  ;;  %v2592_v54 = vsel %vm2591_vm5, %v2590_v56, 0  ;;  %v2536_v62 = vadd.s32 %v2535_v30, %v2531_v38 }
 0x2ec   :  { %v2371_v31 = vsel %vm2360_vm15, nan, %v2370_v55  ;;  %v2594_v15 = vand.u32 31, %v2592_v54  ;;  %vm4747_vm6 = vcmp.le.f32.partialorder %v2372_v40, 0.7853982  ;;  %v2587_v29 = vand.u32 8388607, %v2580_v5 }
 0x2ed   :  { %v2696_v42 = vmul.f32 %v2371_v31, %v4009_v3  ;;  %v2455_v24 = vmul.f32 %v2454_v45, %v2452_v10  ;;  %v2537_v57 = vadd.s32 536870912, %v2536_v62  ;;  %v2461_v34 = vsel %vm4747_vm6, 0, %v2459_v26 }
 0x2ee   :  { %v2595_v12 = vsub.s32 32, %v2594_v15  ;;  %v2597_v58 = vshll.u32 %v4872_v19, %v2594_v15  ;;  %v2603_v46 = vshll.u32 %v4862_v2, %v2594_v15  ;;  %v2606_v22 = vshll.u32 %v4864_v17, %v2594_v15 }
 0x2ef   :  { %v2714_v28 = vsel %vm3707_vm3, %v2696_v42, 0.0  ;;  %v2456_v16 = vxor.u32 2147483648, %v2455_v24  ;;  %v4756_v11 = vshrl.u32 %v2537_v57, 30  ;;  %v2593_v51 = vshrl.u32 %v2592_v54, 5 }
 0x2f0   :  { %v2730_v3 = vadd.f32 %v2714_v28, %v4004_v59  ;;  %v2598_v40 = vshrl.u32 %v4875_v61, %v2595_v12  ;;  %v2601_v9 = vshrl.u32 %v4862_v2, %v2595_v12  ;;  %v2600_v59 = vshll.u32 %v4875_v61, %v2594_v15 }
 0x2f1   :  { %v2457_v53 = vsel %vm2374_vm0, %v2456_v16, %v2455_v24  ;;  %v2604_v50 = vshrl.u32 %v4864_v17, %v2595_v12  ;;  %v2607_v52 = vshrl.u32 %v4876_v63, %v2595_v12  ;;  %v2539_v35 = vshll.u32 %v4756_v11, 30 }
 0x2f2   :  { %2746 = vst [vmem:[#allocation6 + $0x60] sm:$0xff] %v2730_v3  ;;  %v2460_v37 = vsel %vm4747_vm6, %v4497_v13, %v2457_v53  ;;  %v2599_v6 = vor.u32 %v2598_v40, %v2597_v58  ;;  %v2602_v7 = vor.u32 %v2601_v9, %v2600_v59  ;;  %v2609_v8 = vshll.u32 %v4876_v63, %v2594_v15 }
 0x2f3   :  { %3078 = vcosq.f32 %v2460_v37  ;;  %v2540_v61 = vsub.s32 %v2536_v62, %v2539_v35  ;;  %v2605_v32 = vor.u32 %v2604_v50, %v2603_v46  ;;  %v2608_v44 = vor.u32 %v2607_v52, %v2606_v22 }
 0x2f4   :  { %3080 = vsinq.f32 %v2460_v37  ;;  %v2610_v20 = vshrl.u32 %v4865_v47, %v2595_v12  ;;  %v2465_v33 = vadd.s32 3, %v2461_v34  ;;  %v2588_v14 = vor.u32 8388608, %v2587_v29 }
 0x2f5   :  { %v2542_v43 = vsub.s32 0, %v2540_v61  ;;  %vm2612_vm7 = vcmp.lt.s32.totalorder %v2593_v51, 1  ;;  %vm2614_vm8 = vcmp.lt.s32.totalorder %v2593_v51, 3  ;;  %vm2615_vm9 = vcmp.lt.s32.totalorder %v2593_v51, 4 }
 0x2f6   :  { %v2611_v56 = vor.u32 %v2610_v20, %v2609_v8  ;;  %v2617_v17 = vsel %vm2615_vm9, %v2605_v32, 2102212464  ;;  %v2620_v23 = vsel %vm2612_vm7, %v2599_v6, %v2602_v7  ;;  %v2621_v21 = vsel %vm2615_vm9, %v2608_v44, 920167782 }
 0x2f7   :  { %v2872_v2 = vmin.u32 %v2542_v43, %v2540_v61  ;;  %v2596_v38 = vshrl.u32 %v4872_v19, %v2595_v12  ;;  %v2622_v55 = vsel %vm2614_vm8, %v2605_v32, %v2621_v21  ;;  %v2624_v45 = vsel %vm2612_vm7, %v2602_v7, %v2605_v32 }
 0x2f8   :  { %v2625_v31 = vsel %vm2615_vm9, %v2611_v56, 1326507024  ;;  %v2466_v63 = vand.u32 3, %v2465_v33  ;;  %vm2613_vm11 = vcmp.lt.s32.totalorder %v2593_v51, 2  ;;  %v2628_v47 = vshll.u32 %v2588_v14, 8 }
 0x2f9   :  { %v2544_v10 = vclz %v2872_v2  ;;  %v2616_v30 = vsel %vm2612_vm7, %v2596_v38, %v2599_v6  ;;  %v2618_v54 = vsel %vm2614_vm8, %v2602_v7, %v2617_v17  ;;  %v2623_v42 = vsel %vm2613_vm11, %v2620_v23, %v2622_v55 }
 0x2fa   :  { %v2626_v26 = vsel %vm2614_vm8, %v2608_v44, %v2625_v31  ;;  %v4780_v24 = vmul.u32.u64.low %v2628_v47, %v2623_v42  ;;  %v4781_v19 = vmul.u32.u64.high %v2628_v47, %v2623_v42, %v4780_v24  ;;  %vm2464_vm12 = vweird.f32 %v4497_v13 }
 0x2fb   :  { %v2873_v62 = vadd.s32 4294967294, %v2544_v10  ;;  %v2627_v15 = vsel %vm2613_vm11, %v2624_v45, %v2626_v26  ;;  %vm2467_vm13 = vcmp.lt.s32.totalorder %v2466_v63, 2  ;;  %v2619_v16 = vsel %vm2613_vm11, %v2616_v30, %v2618_v54 }
 0x2fc   :  { %v4784_v60 = vmul.u32.u64.low %v2628_v47, %v2627_v15  ;;  %v4785_v57 = vmul.u32.u64.high %v2628_v47, %v2627_v15, %v4784_v60  ;;  %vm2468_vm10 = vcmp.eq.s32.totalorder %v2466_v63, 0  ;;  %vm2471_vm15 = vcmp.eq.s32.totalorder %v2466_v63, 2 }
 0x2fd   :  { %v3079_v28 = vpop.eup %3078  ;;  %vm2874_vm14 = vcmp.lt.s32.totalorder %v2873_v62, 0  ;;  %v2532_v40 = vadd.s32 %v4717_v41, %v4723_v25  ;;  %v2635_v50 = vmul.u32 %v2628_v47, %v2619_v16  ;;  %v2638_v52 = vadd.s32 1, %v4781_v19 }
 0x2fe   :  { %v3081_v12 = vpop.eup %3080  ;;  %v2472_v3 = vxor.u32 2147483648, %v3079_v28  ;;  %v2547_v29 = vsel %vm2874_vm14, 0, %v2873_v62  ;;  %vm2637_vm0 = vc.u32 %v4785_v57, %v4780_v24  ;;  %v2562_v56 = vsub.s32 4, %v4756_v11 }
 0x2ff   :  { %v2469_v34 = vxor.u32 2147483648, %v3081_v12  ;;  %v2548_v9 = vsub.s32 32, %v2547_v29  ;;  %v2552_v53 = vsub.s32 4294967266, %v2547_v29  ;;  %v2549_v35 = vshll.u32 %v2540_v61, %v2547_v29 }
 0x300   :  { %v2473_v58 = vsel %vm2471_vm15, %v2472_v3, %v3081_v12  ;;  %v2639_v6 = vsel %vm2637_vm0, %v2638_v52, %v4781_v19  ;;  %vm2478_vm1 = vcmp.lt.s32.totalorder %v4592_v48, 0  ;;  %vm2477_vm2 = vcmp.le.f32.partialorder %v2476_v39, 0.7853982 }
 0x301   :  { %v2470_v59 = vsel %vm2468_vm10, %v3079_v28, %v2469_v34  ;;  %v2550_v46 = vshrl.u32 %v2532_v40, %v2548_v9  ;;  %v2553_v22 = vadd.s32 127, %v2552_v53  ;;  %v2640_v32 = vadd.s32 %v2639_v6, %v2635_v50 }
 0x302   :  { %v2474_v37 = vsel %vm2467_vm13, %v2470_v59, %v2473_v58  ;;  %v2563_v21 = vsel %vm2478_vm1, %v2562_v56, %v4756_v11  ;;  %v2636_v54 = vadd.s32 %v4780_v24, %v4785_v57  ;;  %vm2568_vm8 = vweird.f32 %v4592_v48 }
 0x303   :  { %v2475_v51 = vsel %vm2464_vm12, nan, %v2474_v37  ;;  %v2551_v25 = vor.u32 %v2550_v46, %v2549_v35  ;;  %v2554_v7 = vshll.u32 %v2553_v22, 23  ;;  %v2641_v20 = vadd.s32 536870912, %v2640_v32 }
 0x304   :  { %v2697_v41 = vmul.f32 %v2475_v51, %v4101_v27  ;;  %v2565_v45 = vsel %vm2477_vm2, 0, %v2563_v21  ;;  %vm2582_vm9 = vcmp.lt.s32.totalorder %v4656_v1, 0  ;;  %vm2581_vm11 = vcmp.le.f32.partialorder %v2580_v5, 0.7853982 }
 0x305   :  { %v2555_v8 = vor.u32 4788187, %v2554_v7  ;;  %v2558_v43 = vcvt.s32.f32 %v2551_v25  ;;  %v2642_v14 = vshrl.u32 %v2641_v20, 30  ;;  %v2569_v63 = vadd.s32 3, %v2565_v45 }
 0x306   :  { %v2715_v44 = vsel %vm3707_vm3, %v2697_v41, 0.0  ;;  %vm2672_vm10 = vweird.f32 %v4656_v1 }
 0x307   :  { %v2731_v33 = vadd.f32 %v2715_v44, %v4091_v4  ;;  %v2556_v61 = vand.u32 2147483647, %v2555_v8  ;;  %v2643_v2 = vshll.u32 %v2642_v14, 30  ;;  %v2570_v30 = vand.u32 3, %v2569_v63 }
 0x308   :  { %v2666_v59 = vsub.s32 4, %v2642_v14 }
 0x309   :  { %2747 = vst [vmem:[#allocation6 + $0x68] sm:$0xff] %v2731_v33  ;;  %v2559_v13 = vmul.f32 %v2558_v43, %v2556_v61  ;;  %v2644_v27 = vsub.s32 %v2640_v32, %v2643_v2  ;;  %vm2575_vm5 = vcmp.eq.s32.totalorder %v2570_v30, 2  ;;  %vm2572_vm6 = vcmp.eq.s32.totalorder %v2570_v30, 0  ;;  %v4919_v33 = vld [vmem:[#allocation9_spill] sm:$0xff] }
 0x30a   :  { %vm2571_vm7 = vcmp.lt.s32.totalorder %v2570_v30, 2  ;;  %v2667_v35 = vsel %vm2582_vm9, %v2666_v59, %v2642_v14 }
 0x30b   :  { %v2560_v17 = vxor.u32 2147483648, %v2559_v13  ;;  %v2646_v38 = vsub.s32 0, %v2644_v27 }
 0x30d   :  { %v2561_v23 = vsel %vm2478_vm1, %v2560_v17, %v2559_v13  ;;  %v2876_v55 = vmin.u32 %v2646_v38, %v2644_v27 }
 0x30e   :  { %v2564_v4 = vsel %vm2477_vm2, %v4592_v48, %v2561_v23 }
 0x30f   :  { %3082 = vcosq.f32 %v2564_v4  ;;  %v2648_v31 = vclz %v2876_v55 }
 0x310   :  { %3084 = vsinq.f32 %v2564_v4 }
 0x311   :  { %v2877_v10 = vadd.s32 4294967294, %v2648_v31 }
 0x313   :  { %vm2878_vm4 = vcmp.lt.s32.totalorder %v2877_v10, 0 }
 0x314   :  { %v2651_v47 = vsel %vm2878_vm4, 0, %v2877_v10 }
 0x315   :  { %v2652_v42 = vsub.s32 32, %v2651_v47  ;;  %v2656_v39 = vsub.s32 4294967266, %v2651_v47  ;;  %v2653_v62 = vshll.u32 %v2644_v27, %v2651_v47 }
 0x317   :  { %v2654_v11 = vshrl.u32 %v2636_v54, %v2652_v42  ;;  %v2657_v15 = vadd.s32 127, %v2656_v39 }
 0x319   :  { %v3083_v26 = vpop.eup %3082  ;;  %v2655_v12 = vor.u32 %v2654_v11, %v2653_v62  ;;  %v2658_v3 = vshll.u32 %v2657_v15, 23 }
 0x31a   :  { %v3085_v19 = vpop.eup %3084  ;;  %v2576_v28 = vxor.u32 2147483648, %v3083_v26 }
 0x31b   :  { %v2573_v60 = vxor.u32 2147483648, %v3085_v19  ;;  %v2659_v29 = vor.u32 4788187, %v2658_v3  ;;  %v2662_v40 = vcvt.s32.f32 %v2655_v12 }
 0x31c   :  { %v2577_v16 = vsel %vm2575_vm5, %v2576_v28, %v3085_v19 }
 0x31d   :  { %v2574_v34 = vsel %vm2572_vm6, %v3083_v26, %v2573_v60  ;;  %v2660_v58 = vand.u32 2147483647, %v2659_v29 }
 0x31e   :  { %v2578_v24 = vsel %vm2571_vm7, %v2574_v34, %v2577_v16 }
 0x31f   :  { %v2579_v57 = vsel %vm2568_vm8, nan, %v2578_v24  ;;  %v2663_v53 = vmul.f32 %v2662_v40, %v2660_v58 }
 0x320   :  { %v2698_v9 = vmul.f32 %v2579_v57, %v4206_v36  ;;  %v2669_v36 = vsel %vm2581_vm11, 0, %v2667_v35 }
 0x321   :  { %v2664_v37 = vxor.u32 2147483648, %v2663_v53  ;;  %v2673_v22 = vadd.s32 3, %v2669_v36 }
 0x322   :  { %v2716_v50 = vsel %vm3707_vm3, %v2698_v9, 0.0 }
 0x323   :  { %v2732_v52 = vadd.f32 %v2716_v50, %v4201_v0  ;;  %v2665_v48 = vsel %vm2582_vm9, %v2664_v37, %v2663_v53  ;;  %v2674_v51 = vand.u32 3, %v2673_v22 }
 0x324   :  { %v2668_v46 = vsel %vm2581_vm11, %v4656_v1, %v2665_v48 }
 0x325   :  { %2748 = vst [vmem:[#allocation6 + $0x70] sm:$0xff] %v2732_v52  ;;  %3086 = vcosq.f32 %v2668_v46  ;;  %vm2679_vm12 = vcmp.eq.s32.totalorder %v2674_v51, 2  ;;  %vm2676_vm13 = vcmp.eq.s32.totalorder %v2674_v51, 0  ;;  %vm2675_vm14 = vcmp.lt.s32.totalorder %v2674_v51, 2 }
 0x326   :  { %3088 = vsinq.f32 %v2668_v46 }
 0x32f   :  { %v3087_v6 = vpop.eup %3086 }
 0x330   :  { %v3089_v41 = vpop.eup %3088  ;;  %v2680_v25 = vxor.u32 2147483648, %v3087_v6 }
 0x331   :  { %v2677_v0 = vxor.u32 2147483648, %v3089_v41 }
 0x332   :  { %v2681_v7 = vsel %vm2679_vm12, %v2680_v25, %v3089_v41 }
 0x333   :  { %v2678_v32 = vsel %vm2676_vm13, %v3087_v6, %v2677_v0 }
 0x334   :  { %v2682_v5 = vsel %vm2675_vm14, %v2678_v32, %v2681_v7 }
 0x335   :  { %v2683_v44 = vsel %vm2672_vm10, nan, %v2682_v5 }
 0x336   :  { %v2699_v8 = vmul.f32 %v2683_v44, %v4284_v49 }
 0x338   :  { %v2717_v20 = vsel %vm3707_vm3, %v2699_v8, 0.0 }
 0x339   :  { %v2733_v61 = vadd.f32 %v2717_v20, %v4919_v33 }
 0x33b   :  { %2749 = vst [vmem:[#allocation6 + $0x78] sm:$0xff] %v2733_v61 }
 0x33c   :  { %3123 = shalt.err (!%p3120_p12)
}
 0x33d   :  { %s3124_s29 = scalar_lea.hbm %s4835_s2, 2048 }
 0x33e   :  { %p3125_p13 = scmp.ne.s32.totalorder %s4835_s2, %s3124_s29  ;;  %p3128_p0 = scmp.lt.u32.totalorder %s3124_s29, %s4835_s2 }
 0x340   :  { %p3130_p1 = pnand %p3128_p0, %p3125_p13 }
 0x342   :  { %3133 = shalt.err (!%p3130_p1)
}
 0x343   :  { %s3151_s6 = smov 128   ;;  %s3152_s7 = smov 8  }
 0x344   :  { %2761 = dma.vmem_to_hbm [thread:$0]  %s2756_s26, 2048, %s4835_s2, [#allocation5], %s3151_s6, %s3151_s6, %s3152_s7  }
 0x345   :  { %3136 = dma.done.wait [#allocation5], 2048  }
 0x346   :  { %3137 = vsyncadd [#allocation5], 4294965248 }
 0x347   :  { %2765 = vsyncpa [#allocation4], 1 }
 0x348   :  { %2766 = vsyncpa [#allocation5], 1 }

</bundles_post_ra>
